<compile_context>
chip_gen: v5e
topology: v5e:2x2
jax: 0.10.0
libtpu: 0.0.40
codegen_flags: <defaults>
</compile_context>

<pallas_src>
import jax
import jax.numpy as jnp
import numpy as np
from jax.experimental import pallas as pl
from jax.experimental.pallas import tpu as pltpu

# ---- problem sizes (small, consistent with the module) -----------------------------
N = 2                      # batch
MID_CH = 64                # mid_ch
C4 = MID_CH // 4           # channels per branch = 16
H = W = 16                 # spatial
HW = H * W                 # 256 (lane-dense last dim)
RATIO = 16
CR = MID_CH // RATIO       # ChannelAttention hidden = 4
GROUPS = 16 // 4           # CoordAtt groups
MIP = max(8, C4 // GROUPS) # CoordAtt hidden = 8
BN_EPS = 1e-5

# ---- packed parameter / constant slab layout: (SLAB_ROWS, HW) f32 ------------------
ROW_EH = 0               # rows 0:16   : eh[h, l] = (l // W == h)        (H, HW)
ROW_EW = ROW_EH + H      # rows 16:32  : ew[w, l] = (l %  W == w)        (W, HW)
ROW_CAW1 = 32            # rows 32:36  , cols 0:64 : ca fc1 weight       (CR, MID_CH)
ROW_CAW2 = 40            # rows 40:104 , cols 0:4  : ca fc2 weight       (MID_CH, CR)
ROW_C1 = 104             # rows 104:112, cols 0:16 : conv1*BN weight; col 16: folded bias
ROW_CHW = 112            # rows 112:128, cols 0:8 ch_w | col 8 ch_b | cols 16:24 cw_w | col 24 cw_b
SLAB_ROWS = 128


# ====================================================================================
# Fused kernel: single invocation, both batch elements unrolled; all intermediates
# stay in vregs; all matmuls run at f32 (HIGHEST) precision on the otherwise-idle MXU.
# ====================================================================================
def cad_fused_kernel(xz_ref, pool_ref, slab_ref, o_ref):
    f32 = jnp.float32
    HI = jax.lax.Precision.HIGHEST

    def dot(a, b):
        return jnp.dot(a, b, preferred_element_type=f32, precision=HI)

    for n in range(N):                                     # unrolled (N = 2)
        d = jax.nn.sigmoid(xz_ref[n, MID_CH:MID_CH + 1, :])          # (1, HW)

        # ---------------- ChannelAttention(cat(x) + d) ----------------
        xpd = xz_ref[n, 0:MID_CH, :] + d                             # (C, HW)
        ca_avg = jnp.mean(xpd, axis=1, keepdims=True)                # (C, 1)
        ca_max = jnp.max(xpd, axis=1, keepdims=True)                 # (C, 1)
        v = jnp.concatenate([ca_avg, ca_max], axis=1)                # (C, 2)
        ca_w1 = slab_ref[ROW_CAW1:ROW_CAW1 + CR, 0:MID_CH]           # (CR, C)
        ca_w2 = slab_ref[ROW_CAW2:ROW_CAW2 + MID_CH, 0:CR]           # (C, CR)
        hmid = jnp.maximum(dot(ca_w1, v), 0.0)                       # (CR, 2)
        s = dot(ca_w2, hmid)                                         # (C, 2)
        ca = jax.nn.sigmoid(s[:, 0:1] + s[:, 1:2])                   # (C, 1)

        # ---------------- CoordAtt(sum(x) + d) ----------------
        ip = (xz_ref[n, 0:C4, :] + xz_ref[n, C4:2 * C4, :]
              + xz_ref[n, 2 * C4:3 * C4, :] + xz_ref[n, 3 * C4:4 * C4, :]
              + d)                                                   # (C4, HW)

        # H/W mean-pools + concat in ONE dot against the constant averaging matrix
        # (columns 0:H = mean over w per h, columns H:H+W = mean over h per w).
        ypool = dot(ip, pool_ref[...])                               # (C4, H+W)

        # conv1 (1x1) with folded eval-BN, then h_swish
        y = (dot(slab_ref[ROW_C1:ROW_C1 + MIP, 0:C4], ypool)
             + slab_ref[ROW_C1:ROW_C1 + MIP, C4:C4 + 1])             # (MIP, H+W)
        y = y * (jnp.clip(y + 3.0, 0.0, 6.0) * (1.0 / 6.0))          # h_swish

        # conv_h / conv_w heads, one packed sigmoid over (C4, H+W)
        pre_h = (dot(slab_ref[ROW_CHW:ROW_CHW + C4, 0:MIP], y[:, 0:H])
                 + slab_ref[ROW_CHW:ROW_CHW + C4, MIP:MIP + 1])      # (C4, H)
        pre_w = (dot(slab_ref[ROW_CHW:ROW_CHW + C4, 16:16 + MIP], y[:, H:H + W])
                 + slab_ref[ROW_CHW:ROW_CHW + C4, 24:25])            # (C4, W)
        a = jax.nn.sigmoid(jnp.concatenate([pre_h, pre_w], axis=1))  # (C4, H+W)

        # broadcast a_h over W / a_w over H with exact 0/1 matmuls (one nonzero
        # per output column -> exact at HIGHEST precision)
        ah_full = dot(a[:, 0:H], slab_ref[ROW_EH:ROW_EH + H, :])     # (C4, HW)
        aw_full = dot(a[:, H:H + W], slab_ref[ROW_EW:ROW_EW + W, :]) # (C4, HW)
        hw_a = ip * ah_full * aw_full                                # (C4, HW)

        # ---------------- combine per C4 branch: ca * (x + hw_a) ----------------
        # re-read x from VMEM per branch -> low vreg pressure, 256-lane-dense stores
        for i in range(4):
            r0 = i * C4
            o_ref[n, r0:r0 + C4, :] = (
                ca[r0:r0 + C4] * (xz_ref[n, r0:r0 + C4, :] + hw_a))


# ====================================================================================
# Wrapper
# ====================================================================================
def _pack_constants(p):
    """Build the pooling matrix and the packed weight/constant slab."""
    f32 = jnp.float32
    # spatial broadcast / pooling matrices (static 0/1 patterns; flat l = h*W + w)
    l = np.arange(HW)
    eh = (l[None, :] // W == np.arange(H)[:, None]).astype(np.float32)   # (H, HW)
    ew = (l[None, :] % W == np.arange(W)[:, None]).astype(np.float32)    # (W, HW)
    pool = np.concatenate([eh.T / W, ew.T / H], axis=1).astype(np.float32)  # (HW, H+W)

    # fold eval-mode BN into conv1
    c1_wf = p["c1_w"] * p["bn_scale"]                                     # (MIP, C4)
    c1_bf = p["bn_scale"] * p["c1_b"] + p["bn_shift"]                     # (MIP, 1)

    slab = jnp.zeros((SLAB_ROWS, HW), f32)
    slab = slab.at[ROW_EH:ROW_EH + H, :].set(eh)
    slab = slab.at[ROW_EW:ROW_EW + W, :].set(ew)
    slab = slab.at[ROW_CAW1:ROW_CAW1 + CR, 0:MID_CH].set(p["ca_w1"])
    slab = slab.at[ROW_CAW2:ROW_CAW2 + MID_CH, 0:CR].set(p["ca_w2"])
    slab = slab.at[ROW_C1:ROW_C1 + MIP, 0:C4].set(c1_wf)
    slab = slab.at[ROW_C1:ROW_C1 + MIP, C4:C4 + 1].set(c1_bf)
    slab = slab.at[ROW_CHW:ROW_CHW + C4, 0:MIP].set(p["ch_w"])
    slab = slab.at[ROW_CHW:ROW_CHW + C4, MIP:MIP + 1].set(p["ch_b"])
    slab = slab.at[ROW_CHW:ROW_CHW + C4, 16:16 + MIP].set(p["cw_w"])
    slab = slab.at[ROW_CHW:ROW_CHW + C4, 24:25].set(p["cw_b"])
    return jnp.asarray(pool), slab


def cad_head_forward(x_list, distance, p):
    f32 = jnp.float32
    # one concatenated, lane-dense input (N, C+1, 256); distance is channel 64
    xz = jnp.concatenate(list(x_list) + [distance], axis=1).reshape(N, MID_CH + 1, HW)
    pool, slab = _pack_constants(p)

    out_flat = pl.pallas_call(
        cad_fused_kernel,
        grid=(1,),                       # single step: both batch elems in one body
        in_specs=[pl.BlockSpec((N, MID_CH + 1, HW), lambda i: (0, 0, 0)),
                  pl.BlockSpec((HW, H + W), lambda i: (0, 0)),
                  pl.BlockSpec((SLAB_ROWS, HW), lambda i: (0, 0))],
        out_specs=pl.BlockSpec((N, MID_CH, HW), lambda i: (0, 0, 0)),
        out_shape=jax.ShapeDtypeStruct((N, MID_CH, HW), f32),
        compiler_params=pltpu.CompilerParams(
            dimension_semantics=("arbitrary",)),
    )(xz, pool, slab)

    return out_flat.reshape(N, MID_CH, H, W)


# ====================================================================================
# Deterministic parameter init (shapes from cad_head.__init__ with mid_ch=64, HW=16)
# ====================================================================================
def init_params(key):
    ks = jax.random.split(key, 12)
    p = {}
    # ChannelAttention: fc1 Conv2d(C, C//16, 1, bias=False), fc2 Conv2d(C//16, C, 1, bias=False)
    p["ca_w1"] = 0.1 * jax.random.normal(ks[0], (CR, MID_CH), jnp.float32)
    p["ca_w2"] = 0.1 * jax.random.normal(ks[1], (MID_CH, CR), jnp.float32)
    # CoordAtt: conv1 Conv2d(C4, MIP, 1), bn1, conv_h Conv2d(MIP, C4, 1), conv_w Conv2d(MIP, C4, 1)
    p["c1_w"] = 0.1 * jax.random.normal(ks[2], (MIP, C4), jnp.float32)
    p["c1_b"] = 0.1 * jax.random.normal(ks[3], (MIP, 1), jnp.float32)
    gamma = 1.0 + 0.1 * jax.random.normal(ks[4], (MIP, 1), jnp.float32)
    beta = 0.05 * jax.random.normal(ks[5], (MIP, 1), jnp.float32)
    rm = 0.1 * jax.random.normal(ks[6], (MIP, 1), jnp.float32)
    rv = jnp.abs(0.1 * jax.random.normal(ks[7], (MIP, 1), jnp.float32)) + 1.0
    p["bn_scale"] = gamma / jnp.sqrt(rv + BN_EPS)            # folded eval-mode BN
    p["bn_shift"] = beta - rm * p["bn_scale"]
    p["ch_w"] = 0.1 * jax.random.normal(ks[8], (C4, MIP), jnp.float32)
    p["ch_b"] = 0.1 * jax.random.normal(ks[9], (C4, 1), jnp.float32)
    p["cw_w"] = 0.1 * jax.random.normal(ks[10], (C4, MIP), jnp.float32)
    p["cw_b"] = 0.1 * jax.random.normal(ks[11], (C4, 1), jnp.float32)
    return p


# ====================================================================================
# Pure-JAX reference (mirrors the PyTorch forward, cross=False branch)
# ====================================================================================
def reference(x_list, distance, p):
    d = jax.nn.sigmoid(distance)                            # (N,1,H,W)
    out = jnp.concatenate(x_list, axis=1)                   # (N,C,H,W)
    intra = x_list[0] + x_list[1] + x_list[2] + x_list[3]   # (N,C4,H,W)

    # ChannelAttention(out + d)
    xpd = out + d
    avg = jnp.mean(xpd, axis=(2, 3))                        # (N,C)
    mx = jnp.max(xpd, axis=(2, 3))                          # (N,C)

    def mlp(v):
        return jnp.maximum(v @ p["ca_w1"].T, 0.0) @ p["ca_w2"].T

    ca = jax.nn.sigmoid(mlp(avg) + mlp(mx))[:, :, None, None]

    # CoordAtt(intra + d)
    ip = intra + d
    xh = jnp.mean(ip, axis=3)                               # (N,C4,H)
    xw = jnp.mean(ip, axis=2)                               # (N,C4,W)
    y = jnp.concatenate([xh, xw], axis=2)                   # (N,C4,H+W)
    y = jnp.einsum("mc,nch->nmh", p["c1_w"], y) + p["c1_b"][None]
    y = y * p["bn_scale"][None] + p["bn_shift"][None]
    y = y * (jnp.clip(y + 3.0, 0.0, 6.0) / 6.0)
    yh, yw = y[:, :, :H], y[:, :, H:]
    ah = jax.nn.sigmoid(jnp.einsum("cm,nmh->nch", p["ch_w"], yh) + p["ch_b"][None])
    aw = jax.nn.sigmoid(jnp.einsum("cm,nmw->ncw", p["cw_w"], yw) + p["cw_b"][None])
    hw_a = ip * ah[:, :, :, None] * aw[:, :, None, :]       # (N,C4,H,W)
    hw_rep = jnp.tile(hw_a, (1, 4, 1, 1))                   # (N,C,H,W)
    return ca * (out + hw_rep)


if __name__ == "__main__":
    key = jax.random.PRNGKey(0)
    k1, k2, k3, k4, kd, kp = jax.random.split(key, 6)
    x1 = jax.random.normal(k1, (N, C4, H, W), jnp.float32)
    x2 = jax.random.normal(k2, (N, C4, H, W), jnp.float32)
    x3 = jax.random.normal(k3, (N, C4, H, W), jnp.float32)
    x4 = jax.random.normal(k4, (N, C4, H, W), jnp.float32)
    distance = jax.random.normal(kd, (N, 1, H, W), jnp.float32)
    params = init_params(kp)

    out = cad_head_forward((x1, x2, x3, x4), distance, params)
    out = jax.block_until_ready(out)

    # run the reference at full f32 matmul precision so both sides are ~exact
    with jax.default_matmul_precision("float32"):
        ref = reference([x1, x2, x3, x4], distance, params)
        ref = jax.block_until_ready(ref)

    assert out.shape == (N, MID_CH, H, W)
    np.testing.assert_allclose(np.asarray(out), np.asarray(ref), rtol=1e-4, atol=1e-4)
    print("KERNEL_OK")
</pallas_src>

<mosaic_0001>
module attributes {stable_mosaic.version = 11 : i64} {
  func.func @cad_fused_kernel(%arg0: i32, %arg1: memref<2x65x256xf32, #tpu.memory_space<vmem>>, %arg2: memref<256x32xf32, #tpu.memory_space<vmem>>, %arg3: memref<128x256xf32, #tpu.memory_space<vmem>>, %arg4: memref<2x64x256xf32, #tpu.memory_space<vmem>>) attributes {dimension_semantics = [#tpu.dimension_semantics<arbitrary>], iteration_bounds = array<i64: 1>, scalar_prefetch = 0 : i64, scratch_operands = 0 : i64, tpu.core_type = #tpu.core_type<tc>, window_params = [{pipeline_mode = #tpu.pipeline_mode<synchronous>, transform_indices = @transform_0, window_bounds = array<i64: 2, 65, 256>}, {pipeline_mode = #tpu.pipeline_mode<synchronous>, transform_indices = @transform_1, window_bounds = array<i64: 256, 32>}, {pipeline_mode = #tpu.pipeline_mode<synchronous>, transform_indices = @transform_2, window_bounds = array<i64: 128, 256>}, {pipeline_mode = #tpu.pipeline_mode<synchronous>, transform_indices = @transform_3, window_bounds = array<i64: 2, 64, 256>}]} {
    %c0 = arith.constant 0 : index
    %c64 = arith.constant 64 : index
    %c0_0 = arith.constant 0 : index
    %0 = vector.load %arg1[%c0, %c64, %c0_0] : memref<2x65x256xf32, #tpu.memory_space<vmem>>, vector<1x1x256xf32>
    %1 = vector.shape_cast %0 : vector<1x1x256xf32> to vector<1x256xf32>
    %2 = arith.negf %1 : vector<1x256xf32>
    %3 = math.exp %2 : vector<1x256xf32>
    %cst = arith.constant 1.000000e+00 : f32
    %4 = vector.broadcast %cst : f32 to vector<1x256xf32>
    %5 = arith.addf %4, %3 : vector<1x256xf32>
    %6 = arith.divf %4, %5 : vector<1x256xf32>
    %c0_1 = arith.constant 0 : index
    %c0_2 = arith.constant 0 : index
    %c0_3 = arith.constant 0 : index
    %7 = vector.load %arg1[%c0_1, %c0_2, %c0_3] : memref<2x65x256xf32, #tpu.memory_space<vmem>>, vector<1x64x256xf32>
    %8 = vector.shape_cast %7 : vector<1x64x256xf32> to vector<64x256xf32>
    %9 = vector.broadcast %6 : vector<1x256xf32> to vector<64x256xf32>
    %10 = arith.addf %8, %9 : vector<64x256xf32>
    %cst_4 = arith.constant dense<0.000000e+00> : vector<64xf32>
    %11 = vector.multi_reduction <add>, %10, %cst_4 [1] : vector<64x256xf32> to vector<64xf32>
    %12 = vector.shape_cast %11 : vector<64xf32> to vector<64x1xf32>
    %cst_5 = arith.constant 2.560000e+02 : f32
    %13 = vector.broadcast %cst_5 : f32 to vector<64x1xf32>
    %14 = arith.divf %12, %13 : vector<64x1xf32>
    %cst_6 = arith.constant dense<0xFF800000> : vector<64xf32>
    %15 = vector.multi_reduction <maximumf>, %10, %cst_6 [1] : vector<64x256xf32> to vector<64xf32>
    %16 = vector.shape_cast %15 : vector<64xf32> to vector<64x1xf32>
    %17 = tpu.concatenate %14, %16 in 1 : vector<64x1xf32>, vector<64x1xf32> -> vector<64x2xf32>
    %c32 = arith.constant 32 : index
    %c0_7 = arith.constant 0 : index
    %18 = vector.load %arg3[%c32, %c0_7] : memref<128x256xf32, #tpu.memory_space<vmem>>, vector<4x64xf32>
    %c40 = arith.constant 40 : index
    %c0_8 = arith.constant 0 : index
    %19 = vector.load %arg3[%c40, %c0_8] : memref<128x256xf32, #tpu.memory_space<vmem>>, vector<64x4xf32>
    %cst_9 = arith.constant dense<0.000000e+00> : vector<4x2xf32>
    %20 = tpu.matmul %18, %17, %cst_9 {dimension_numbers = #tpu.dot_dimension_numbers<[1], [0], [0], [1], [0, 0, 1, 1], [], []>, precision = #tpu.contract_precision<fp32>} : vector<4x64xf32>, vector<64x2xf32>, vector<4x2xf32> -> vector<4x2xf32>
    %cst_10 = arith.constant 0.000000e+00 : f32
    %21 = vector.broadcast %cst_10 : f32 to vector<4x2xf32>
    %22 = arith.maximumf %20, %21 : vector<4x2xf32>
    %cst_11 = arith.constant dense<0.000000e+00> : vector<64x2xf32>
    %23 = tpu.matmul %19, %22, %cst_11 {dimension_numbers = #tpu.dot_dimension_numbers<[1], [0], [0], [1], [0, 0, 1, 1], [], []>, precision = #tpu.contract_precision<fp32>} : vector<64x4xf32>, vector<4x2xf32>, vector<64x2xf32> -> vector<64x2xf32>
    %24 = vector.extract_strided_slice %23 {offsets = [0, 0], sizes = [64, 1], strides = [1, 1]} : vector<64x2xf32> to vector<64x1xf32>
    %25 = vector.extract_strided_slice %23 {offsets = [0, 1], sizes = [64, 1], strides = [1, 1]} : vector<64x2xf32> to vector<64x1xf32>
    %26 = arith.addf %24, %25 : vector<64x1xf32>
    %27 = arith.negf %26 : vector<64x1xf32>
    %28 = math.exp %27 : vector<64x1xf32>
    %cst_12 = arith.constant 1.000000e+00 : f32
    %29 = vector.broadcast %cst_12 : f32 to vector<64x1xf32>
    %30 = arith.addf %29, %28 : vector<64x1xf32>
    %31 = arith.divf %29, %30 : vector<64x1xf32>
    %c0_13 = arith.constant 0 : index
    %c0_14 = arith.constant 0 : index
    %c0_15 = arith.constant 0 : index
    %32 = vector.load %arg1[%c0_13, %c0_14, %c0_15] : memref<2x65x256xf32, #tpu.memory_space<vmem>>, vector<1x16x256xf32>
    %33 = vector.shape_cast %32 : vector<1x16x256xf32> to vector<16x256xf32>
    %c0_16 = arith.constant 0 : index
    %c16 = arith.constant 16 : index
    %c0_17 = arith.constant 0 : index
    %34 = vector.load %arg1[%c0_16, %c16, %c0_17] : memref<2x65x256xf32, #tpu.memory_space<vmem>>, vector<1x16x256xf32>
    %35 = vector.shape_cast %34 : vector<1x16x256xf32> to vector<16x256xf32>
    %36 = arith.addf %33, %35 : vector<16x256xf32>
    %c0_18 = arith.constant 0 : index
    %c32_19 = arith.constant 32 : index
    %c0_20 = arith.constant 0 : index
    %37 = vector.load %arg1[%c0_18, %c32_19, %c0_20] : memref<2x65x256xf32, #tpu.memory_space<vmem>>, vector<1x16x256xf32>
    %38 = vector.shape_cast %37 : vector<1x16x256xf32> to vector<16x256xf32>
    %39 = arith.addf %36, %38 : vector<16x256xf32>
    %c0_21 = arith.constant 0 : index
    %c48 = arith.constant 48 : index
    %c0_22 = arith.constant 0 : index
    %40 = vector.load %arg1[%c0_21, %c48, %c0_22] : memref<2x65x256xf32, #tpu.memory_space<vmem>>, vector<1x16x256xf32>
    %41 = vector.shape_cast %40 : vector<1x16x256xf32> to vector<16x256xf32>
    %42 = arith.addf %39, %41 : vector<16x256xf32>
    %43 = vector.broadcast %6 : vector<1x256xf32> to vector<16x256xf32>
    %44 = arith.addf %42, %43 : vector<16x256xf32>
    %c0_23 = arith.constant 0 : index
    %c0_24 = arith.constant 0 : index
    %45 = vector.load %arg2[%c0_23, %c0_24] : memref<256x32xf32, #tpu.memory_space<vmem>>, vector<256x32xf32>
    %cst_25 = arith.constant dense<0.000000e+00> : vector<16x32xf32>
    %46 = tpu.matmul %44, %45, %cst_25 {dimension_numbers = #tpu.dot_dimension_numbers<[1], [0], [0], [1], [0, 0, 1, 1], [], []>, precision = #tpu.contract_precision<fp32>} : vector<16x256xf32>, vector<256x32xf32>, vector<16x32xf32> -> vector<16x32xf32>
    %c104 = arith.constant 104 : index
    %c0_26 = arith.constant 0 : index
    %47 = vector.load %arg3[%c104, %c0_26] : memref<128x256xf32, #tpu.memory_space<vmem>>, vector<8x16xf32>
    %cst_27 = arith.constant dense<0.000000e+00> : vector<8x32xf32>
    %48 = tpu.matmul %47, %46, %cst_27 {dimension_numbers = #tpu.dot_dimension_numbers<[1], [0], [0], [1], [0, 0, 1, 1], [], []>, precision = #tpu.contract_precision<fp32>} : vector<8x16xf32>, vector<16x32xf32>, vector<8x32xf32> -> vector<8x32xf32>
    %c104_28 = arith.constant 104 : index
    %c16_29 = arith.constant 16 : index
    %49 = vector.load %arg3[%c104_28, %c16_29] : memref<128x256xf32, #tpu.memory_space<vmem>>, vector<8x1xf32>
    %50 = vector.broadcast %49 : vector<8x1xf32> to vector<8x32xf32>
    %51 = arith.addf %48, %50 : vector<8x32xf32>
    %cst_30 = arith.constant 3.000000e+00 : f32
    %52 = vector.broadcast %cst_30 : f32 to vector<8x32xf32>
    %53 = arith.addf %51, %52 : vector<8x32xf32>
    %cst_31 = arith.constant 0.000000e+00 : f32
    %cst_32 = arith.constant 6.000000e+00 : f32
    %54 = vector.broadcast %cst_31 : f32 to vector<8x32xf32>
    %55 = arith.maximumf %54, %53 : vector<8x32xf32>
    %56 = vector.broadcast %cst_32 : f32 to vector<8x32xf32>
    %57 = arith.minimumf %56, %55 : vector<8x32xf32>
    %cst_33 = arith.constant 0.166666672 : f32
    %58 = vector.broadcast %cst_33 : f32 to vector<8x32xf32>
    %59 = arith.mulf %57, %58 : vector<8x32xf32>
    %60 = arith.mulf %51, %59 : vector<8x32xf32>
    %c112 = arith.constant 112 : index
    %c0_34 = arith.constant 0 : index
    %61 = vector.load %arg3[%c112, %c0_34] : memref<128x256xf32, #tpu.memory_space<vmem>>, vector<16x8xf32>
    %62 = vector.extract_strided_slice %60 {offsets = [0, 0], sizes = [8, 16], strides = [1, 1]} : vector<8x32xf32> to vector<8x16xf32>
    %cst_35 = arith.constant dense<0.000000e+00> : vector<16x16xf32>
    %63 = tpu.matmul %61, %62, %cst_35 {dimension_numbers = #tpu.dot_dimension_numbers<[1], [0], [0], [1], [0, 0, 1, 1], [], []>, precision = #tpu.contract_precision<fp32>} : vector<16x8xf32>, vector<8x16xf32>, vector<16x16xf32> -> vector<16x16xf32>
    %c112_36 = arith.constant 112 : index
    %c8 = arith.constant 8 : index
    %64 = vector.load %arg3[%c112_36, %c8] : memref<128x256xf32, #tpu.memory_space<vmem>>, vector<16x1xf32>
    %65 = vector.broadcast %64 : vector<16x1xf32> to vector<16x16xf32>
    %66 = arith.addf %63, %65 : vector<16x16xf32>
    %c112_37 = arith.constant 112 : index
    %c16_38 = arith.constant 16 : index
    %67 = vector.load %arg3[%c112_37, %c16_38] : memref<128x256xf32, #tpu.memory_space<vmem>>, vector<16x8xf32>
    %68 = vector.extract_strided_slice %60 {offsets = [0, 16], sizes = [8, 16], strides = [1, 1]} : vector<8x32xf32> to vector<8x16xf32>
    %cst_39 = arith.constant dense<0.000000e+00> : vector<16x16xf32>
    %69 = tpu.matmul %67, %68, %cst_39 {dimension_numbers = #tpu.dot_dimension_numbers<[1], [0], [0], [1], [0, 0, 1, 1], [], []>, precision = #tpu.contract_precision<fp32>} : vector<16x8xf32>, vector<8x16xf32>, vector<16x16xf32> -> vector<16x16xf32>
    %c112_40 = arith.constant 112 : index
    %c24 = arith.constant 24 : index
    %70 = vector.load %arg3[%c112_40, %c24] : memref<128x256xf32, #tpu.memory_space<vmem>>, vector<16x1xf32>
    %71 = vector.broadcast %70 : vector<16x1xf32> to vector<16x16xf32>
    %72 = arith.addf %69, %71 : vector<16x16xf32>
    %73 = tpu.concatenate %66, %72 in 1 : vector<16x16xf32>, vector<16x16xf32> -> vector<16x32xf32>
    %74 = arith.negf %73 : vector<16x32xf32>
    %75 = math.exp %74 : vector<16x32xf32>
    %cst_41 = arith.constant 1.000000e+00 : f32
    %76 = vector.broadcast %cst_41 : f32 to vector<16x32xf32>
    %77 = arith.addf %76, %75 : vector<16x32xf32>
    %78 = arith.divf %76, %77 : vector<16x32xf32>
    %79 = vector.extract_strided_slice %78 {offsets = [0, 0], sizes = [16, 16], strides = [1, 1]} : vector<16x32xf32> to vector<16x16xf32>
    %c0_42 = arith.constant 0 : index
    %c0_43 = arith.constant 0 : index
    %80 = vector.load %arg3[%c0_42, %c0_43] : memref<128x256xf32, #tpu.memory_space<vmem>>, vector<16x256xf32>
    %cst_44 = arith.constant dense<0.000000e+00> : vector<16x256xf32>
    %81 = tpu.matmul %79, %80, %cst_44 {dimension_numbers = #tpu.dot_dimension_numbers<[1], [0], [0], [1], [0, 0, 1, 1], [], []>, precision = #tpu.contract_precision<fp32>} : vector<16x16xf32>, vector<16x256xf32>, vector<16x256xf32> -> vector<16x256xf32>
    %82 = vector.extract_strided_slice %78 {offsets = [0, 16], sizes = [16, 16], strides = [1, 1]} : vector<16x32xf32> to vector<16x16xf32>
    %c16_45 = arith.constant 16 : index
    %c0_46 = arith.constant 0 : index
    %83 = vector.load %arg3[%c16_45, %c0_46] : memref<128x256xf32, #tpu.memory_space<vmem>>, vector<16x256xf32>
    %cst_47 = arith.constant dense<0.000000e+00> : vector<16x256xf32>
    %84 = tpu.matmul %82, %83, %cst_47 {dimension_numbers = #tpu.dot_dimension_numbers<[1], [0], [0], [1], [0, 0, 1, 1], [], []>, precision = #tpu.contract_precision<fp32>} : vector<16x16xf32>, vector<16x256xf32>, vector<16x256xf32> -> vector<16x256xf32>
    %85 = arith.mulf %44, %81 : vector<16x256xf32>
    %86 = arith.mulf %85, %84 : vector<16x256xf32>
    %87 = vector.extract_strided_slice %31 {offsets = [0, 0], sizes = [16, 1], strides = [1, 1]} : vector<64x1xf32> to vector<16x1xf32>
    %c0_48 = arith.constant 0 : index
    %c0_49 = arith.constant 0 : index
    %c0_50 = arith.constant 0 : index
    %88 = vector.load %arg1[%c0_48, %c0_49, %c0_50] : memref<2x65x256xf32, #tpu.memory_space<vmem>>, vector<1x16x256xf32>
    %89 = vector.shape_cast %88 : vector<1x16x256xf32> to vector<16x256xf32>
    %90 = arith.addf %89, %86 : vector<16x256xf32>
    %91 = vector.broadcast %87 : vector<16x1xf32> to vector<16x256xf32>
    %92 = arith.mulf %91, %90 : vector<16x256xf32>
    %c0_51 = arith.constant 0 : index
    %c0_52 = arith.constant 0 : index
    %c0_53 = arith.constant 0 : index
    %93 = vector.load %arg4[%c0_51, %c0_52, %c0_53] : memref<2x64x256xf32, #tpu.memory_space<vmem>>, vector<1x16x256xf32>
    %94 = vector.shape_cast %93 : vector<1x16x256xf32> to vector<16x256xf32>
    %95 = vector.shape_cast %92 : vector<16x256xf32> to vector<1x16x256xf32>
    tpu.vector_store %arg4[%c0_51, %c0_52, %c0_53], %95 {strides = array<i32>} : memref<2x64x256xf32, #tpu.memory_space<vmem>>, vector<1x16x256xf32>,
    %96 = vector.extract_strided_slice %31 {offsets = [16, 0], sizes = [16, 1], strides = [1, 1]} : vector<64x1xf32> to vector<16x1xf32>
    %c0_54 = arith.constant 0 : index
    %c16_55 = arith.constant 16 : index
    %c0_56 = arith.constant 0 : index
    %97 = vector.load %arg1[%c0_54, %c16_55, %c0_56] : memref<2x65x256xf32, #tpu.memory_space<vmem>>, vector<1x16x256xf32>
    %98 = vector.shape_cast %97 : vector<1x16x256xf32> to vector<16x256xf32>
    %99 = arith.addf %98, %86 : vector<16x256xf32>
    %100 = vector.broadcast %96 : vector<16x1xf32> to vector<16x256xf32>
    %101 = arith.mulf %100, %99 : vector<16x256xf32>
    %c0_57 = arith.constant 0 : index
    %c16_58 = arith.constant 16 : index
    %c0_59 = arith.constant 0 : index
    %102 = vector.load %arg4[%c0_57, %c16_58, %c0_59] : memref<2x64x256xf32, #tpu.memory_space<vmem>>, vector<1x16x256xf32>
    %103 = vector.shape_cast %102 : vector<1x16x256xf32> to vector<16x256xf32>
    %104 = vector.shape_cast %101 : vector<16x256xf32> to vector<1x16x256xf32>
    tpu.vector_store %arg4[%c0_57, %c16_58, %c0_59], %104 {strides = array<i32>} : memref<2x64x256xf32, #tpu.memory_space<vmem>>, vector<1x16x256xf32>,
    %105 = vector.extract_strided_slice %31 {offsets = [32, 0], sizes = [16, 1], strides = [1, 1]} : vector<64x1xf32> to vector<16x1xf32>
    %c0_60 = arith.constant 0 : index
    %c32_61 = arith.constant 32 : index
    %c0_62 = arith.constant 0 : index
    %106 = vector.load %arg1[%c0_60, %c32_61, %c0_62] : memref<2x65x256xf32, #tpu.memory_space<vmem>>, vector<1x16x256xf32>
    %107 = vector.shape_cast %106 : vector<1x16x256xf32> to vector<16x256xf32>
    %108 = arith.addf %107, %86 : vector<16x256xf32>
    %109 = vector.broadcast %105 : vector<16x1xf32> to vector<16x256xf32>
    %110 = arith.mulf %109, %108 : vector<16x256xf32>
    %c0_63 = arith.constant 0 : index
    %c32_64 = arith.constant 32 : index
    %c0_65 = arith.constant 0 : index
    %111 = vector.load %arg4[%c0_63, %c32_64, %c0_65] : memref<2x64x256xf32, #tpu.memory_space<vmem>>, vector<1x16x256xf32>
    %112 = vector.shape_cast %111 : vector<1x16x256xf32> to vector<16x256xf32>
    %113 = vector.shape_cast %110 : vector<16x256xf32> to vector<1x16x256xf32>
    tpu.vector_store %arg4[%c0_63, %c32_64, %c0_65], %113 {strides = array<i32>} : memref<2x64x256xf32, #tpu.memory_space<vmem>>, vector<1x16x256xf32>,
    %114 = vector.extract_strided_slice %31 {offsets = [48, 0], sizes = [16, 1], strides = [1, 1]} : vector<64x1xf32> to vector<16x1xf32>
    %c0_66 = arith.constant 0 : index
    %c48_67 = arith.constant 48 : index
    %c0_68 = arith.constant 0 : index
    %115 = vector.load %arg1[%c0_66, %c48_67, %c0_68] : memref<2x65x256xf32, #tpu.memory_space<vmem>>, vector<1x16x256xf32>
    %116 = vector.shape_cast %115 : vector<1x16x256xf32> to vector<16x256xf32>
    %117 = arith.addf %116, %86 : vector<16x256xf32>
    %118 = vector.broadcast %114 : vector<16x1xf32> to vector<16x256xf32>
    %119 = arith.mulf %118, %117 : vector<16x256xf32>
    %c0_69 = arith.constant 0 : index
    %c48_70 = arith.constant 48 : index
    %c0_71 = arith.constant 0 : index
    %120 = vector.load %arg4[%c0_69, %c48_70, %c0_71] : memref<2x64x256xf32, #tpu.memory_space<vmem>>, vector<1x16x256xf32>
    %121 = vector.shape_cast %120 : vector<1x16x256xf32> to vector<16x256xf32>
    %122 = vector.shape_cast %119 : vector<16x256xf32> to vector<1x16x256xf32>
    tpu.vector_store %arg4[%c0_69, %c48_70, %c0_71], %122 {strides = array<i32>} : memref<2x64x256xf32, #tpu.memory_space<vmem>>, vector<1x16x256xf32>,
    %c1 = arith.constant 1 : index
    %c64_72 = arith.constant 64 : index
    %c0_73 = arith.constant 0 : index
    %123 = vector.load %arg1[%c1, %c64_72, %c0_73] : memref<2x65x256xf32, #tpu.memory_space<vmem>>, vector<1x1x256xf32>
    %124 = vector.shape_cast %123 : vector<1x1x256xf32> to vector<1x256xf32>
    %125 = arith.negf %124 : vector<1x256xf32>
    %126 = math.exp %125 : vector<1x256xf32>
    %cst_74 = arith.constant 1.000000e+00 : f32
    %127 = vector.broadcast %cst_74 : f32 to vector<1x256xf32>
    %128 = arith.addf %127, %126 : vector<1x256xf32>
    %129 = arith.divf %127, %128 : vector<1x256xf32>
    %c1_75 = arith.constant 1 : index
    %c0_76 = arith.constant 0 : index
    %c0_77 = arith.constant 0 : index
    %130 = vector.load %arg1[%c1_75, %c0_76, %c0_77] : memref<2x65x256xf32, #tpu.memory_space<vmem>>, vector<1x64x256xf32>
    %131 = vector.shape_cast %130 : vector<1x64x256xf32> to vector<64x256xf32>
    %132 = vector.broadcast %129 : vector<1x256xf32> to vector<64x256xf32>
    %133 = arith.addf %131, %132 : vector<64x256xf32>
    %cst_78 = arith.constant dense<0.000000e+00> : vector<64xf32>
    %134 = vector.multi_reduction <add>, %133, %cst_78 [1] : vector<64x256xf32> to vector<64xf32>
    %135 = vector.shape_cast %134 : vector<64xf32> to vector<64x1xf32>
    %cst_79 = arith.constant 2.560000e+02 : f32
    %136 = vector.broadcast %cst_79 : f32 to vector<64x1xf32>
    %137 = arith.divf %135, %136 : vector<64x1xf32>
    %cst_80 = arith.constant dense<0xFF800000> : vector<64xf32>
    %138 = vector.multi_reduction <maximumf>, %133, %cst_80 [1] : vector<64x256xf32> to vector<64xf32>
    %139 = vector.shape_cast %138 : vector<64xf32> to vector<64x1xf32>
    %140 = tpu.concatenate %137, %139 in 1 : vector<64x1xf32>, vector<64x1xf32> -> vector<64x2xf32>
    %c32_81 = arith.constant 32 : index
    %c0_82 = arith.constant 0 : index
    %141 = vector.load %arg3[%c32_81, %c0_82] : memref<128x256xf32, #tpu.memory_space<vmem>>, vector<4x64xf32>
    %c40_83 = arith.constant 40 : index
    %c0_84 = arith.constant 0 : index
    %142 = vector.load %arg3[%c40_83, %c0_84] : memref<128x256xf32, #tpu.memory_space<vmem>>, vector<64x4xf32>
    %cst_85 = arith.constant dense<0.000000e+00> : vector<4x2xf32>
    %143 = tpu.matmul %141, %140, %cst_85 {dimension_numbers = #tpu.dot_dimension_numbers<[1], [0], [0], [1], [0, 0, 1, 1], [], []>, precision = #tpu.contract_precision<fp32>} : vector<4x64xf32>, vector<64x2xf32>, vector<4x2xf32> -> vector<4x2xf32>
    %cst_86 = arith.constant 0.000000e+00 : f32
    %144 = vector.broadcast %cst_86 : f32 to vector<4x2xf32>
    %145 = arith.maximumf %143, %144 : vector<4x2xf32>
    %cst_87 = arith.constant dense<0.000000e+00> : vector<64x2xf32>
    %146 = tpu.matmul %142, %145, %cst_87 {dimension_numbers = #tpu.dot_dimension_numbers<[1], [0], [0], [1], [0, 0, 1, 1], [], []>, precision = #tpu.contract_precision<fp32>} : vector<64x4xf32>, vector<4x2xf32>, vector<64x2xf32> -> vector<64x2xf32>
    %147 = vector.extract_strided_slice %146 {offsets = [0, 0], sizes = [64, 1], strides = [1, 1]} : vector<64x2xf32> to vector<64x1xf32>
    %148 = vector.extract_strided_slice %146 {offsets = [0, 1], sizes = [64, 1], strides = [1, 1]} : vector<64x2xf32> to vector<64x1xf32>
    %149 = arith.addf %147, %148 : vector<64x1xf32>
    %150 = arith.negf %149 : vector<64x1xf32>
    %151 = math.exp %150 : vector<64x1xf32>
    %cst_88 = arith.constant 1.000000e+00 : f32
    %152 = vector.broadcast %cst_88 : f32 to vector<64x1xf32>
    %153 = arith.addf %152, %151 : vector<64x1xf32>
    %154 = arith.divf %152, %153 : vector<64x1xf32>
    %c1_89 = arith.constant 1 : index
    %c0_90 = arith.constant 0 : index
    %c0_91 = arith.constant 0 : index
    %155 = vector.load %arg1[%c1_89, %c0_90, %c0_91] : memref<2x65x256xf32, #tpu.memory_space<vmem>>, vector<1x16x256xf32>
    %156 = vector.shape_cast %155 : vector<1x16x256xf32> to vector<16x256xf32>
    %c1_92 = arith.constant 1 : index
    %c16_93 = arith.constant 16 : index
    %c0_94 = arith.constant 0 : index
    %157 = vector.load %arg1[%c1_92, %c16_93, %c0_94] : memref<2x65x256xf32, #tpu.memory_space<vmem>>, vector<1x16x256xf32>
    %158 = vector.shape_cast %157 : vector<1x16x256xf32> to vector<16x256xf32>
    %159 = arith.addf %156, %158 : vector<16x256xf32>
    %c1_95 = arith.constant 1 : index
    %c32_96 = arith.constant 32 : index
    %c0_97 = arith.constant 0 : index
    %160 = vector.load %arg1[%c1_95, %c32_96, %c0_97] : memref<2x65x256xf32, #tpu.memory_space<vmem>>, vector<1x16x256xf32>
    %161 = vector.shape_cast %160 : vector<1x16x256xf32> to vector<16x256xf32>
    %162 = arith.addf %159, %161 : vector<16x256xf32>
    %c1_98 = arith.constant 1 : index
    %c48_99 = arith.constant 48 : index
    %c0_100 = arith.constant 0 : index
    %163 = vector.load %arg1[%c1_98, %c48_99, %c0_100] : memref<2x65x256xf32, #tpu.memory_space<vmem>>, vector<1x16x256xf32>
    %164 = vector.shape_cast %163 : vector<1x16x256xf32> to vector<16x256xf32>
    %165 = arith.addf %162, %164 : vector<16x256xf32>
    %166 = vector.broadcast %129 : vector<1x256xf32> to vector<16x256xf32>
    %167 = arith.addf %165, %166 : vector<16x256xf32>
    %c0_101 = arith.constant 0 : index
    %c0_102 = arith.constant 0 : index
    %168 = vector.load %arg2[%c0_101, %c0_102] : memref<256x32xf32, #tpu.memory_space<vmem>>, vector<256x32xf32>
    %cst_103 = arith.constant dense<0.000000e+00> : vector<16x32xf32>
    %169 = tpu.matmul %167, %168, %cst_103 {dimension_numbers = #tpu.dot_dimension_numbers<[1], [0], [0], [1], [0, 0, 1, 1], [], []>, precision = #tpu.contract_precision<fp32>} : vector<16x256xf32>, vector<256x32xf32>, vector<16x32xf32> -> vector<16x32xf32>
    %c104_104 = arith.constant 104 : index
    %c0_105 = arith.constant 0 : index
    %170 = vector.load %arg3[%c104_104, %c0_105] : memref<128x256xf32, #tpu.memory_space<vmem>>, vector<8x16xf32>
    %cst_106 = arith.constant dense<0.000000e+00> : vector<8x32xf32>
    %171 = tpu.matmul %170, %169, %cst_106 {dimension_numbers = #tpu.dot_dimension_numbers<[1], [0], [0], [1], [0, 0, 1, 1], [], []>, precision = #tpu.contract_precision<fp32>} : vector<8x16xf32>, vector<16x32xf32>, vector<8x32xf32> -> vector<8x32xf32>
    %c104_107 = arith.constant 104 : index
    %c16_108 = arith.constant 16 : index
    %172 = vector.load %arg3[%c104_107, %c16_108] : memref<128x256xf32, #tpu.memory_space<vmem>>, vector<8x1xf32>
    %173 = vector.broadcast %172 : vector<8x1xf32> to vector<8x32xf32>
    %174 = arith.addf %171, %173 : vector<8x32xf32>
    %cst_109 = arith.constant 3.000000e+00 : f32
    %175 = vector.broadcast %cst_109 : f32 to vector<8x32xf32>
    %176 = arith.addf %174, %175 : vector<8x32xf32>
    %cst_110 = arith.constant 0.000000e+00 : f32
    %cst_111 = arith.constant 6.000000e+00 : f32
    %177 = vector.broadcast %cst_110 : f32 to vector<8x32xf32>
    %178 = arith.maximumf %177, %176 : vector<8x32xf32>
    %179 = vector.broadcast %cst_111 : f32 to vector<8x32xf32>
    %180 = arith.minimumf %179, %178 : vector<8x32xf32>
    %cst_112 = arith.constant 0.166666672 : f32
    %181 = vector.broadcast %cst_112 : f32 to vector<8x32xf32>
    %182 = arith.mulf %180, %181 : vector<8x32xf32>
    %183 = arith.mulf %174, %182 : vector<8x32xf32>
    %c112_113 = arith.constant 112 : index
    %c0_114 = arith.constant 0 : index
    %184 = vector.load %arg3[%c112_113, %c0_114] : memref<128x256xf32, #tpu.memory_space<vmem>>, vector<16x8xf32>
    %185 = vector.extract_strided_slice %183 {offsets = [0, 0], sizes = [8, 16], strides = [1, 1]} : vector<8x32xf32> to vector<8x16xf32>
    %cst_115 = arith.constant dense<0.000000e+00> : vector<16x16xf32>
    %186 = tpu.matmul %184, %185, %cst_115 {dimension_numbers = #tpu.dot_dimension_numbers<[1], [0], [0], [1], [0, 0, 1, 1], [], []>, precision = #tpu.contract_precision<fp32>} : vector<16x8xf32>, vector<8x16xf32>, vector<16x16xf32> -> vector<16x16xf32>
    %c112_116 = arith.constant 112 : index
    %c8_117 = arith.constant 8 : index
    %187 = vector.load %arg3[%c112_116, %c8_117] : memref<128x256xf32, #tpu.memory_space<vmem>>, vector<16x1xf32>
    %188 = vector.broadcast %187 : vector<16x1xf32> to vector<16x16xf32>
    %189 = arith.addf %186, %188 : vector<16x16xf32>
    %c112_118 = arith.constant 112 : index
    %c16_119 = arith.constant 16 : index
    %190 = vector.load %arg3[%c112_118, %c16_119] : memref<128x256xf32, #tpu.memory_space<vmem>>, vector<16x8xf32>
    %191 = vector.extract_strided_slice %183 {offsets = [0, 16], sizes = [8, 16], strides = [1, 1]} : vector<8x32xf32> to vector<8x16xf32>
    %cst_120 = arith.constant dense<0.000000e+00> : vector<16x16xf32>
    %192 = tpu.matmul %190, %191, %cst_120 {dimension_numbers = #tpu.dot_dimension_numbers<[1], [0], [0], [1], [0, 0, 1, 1], [], []>, precision = #tpu.contract_precision<fp32>} : vector<16x8xf32>, vector<8x16xf32>, vector<16x16xf32> -> vector<16x16xf32>
    %c112_121 = arith.constant 112 : index
    %c24_122 = arith.constant 24 : index
    %193 = vector.load %arg3[%c112_121, %c24_122] : memref<128x256xf32, #tpu.memory_space<vmem>>, vector<16x1xf32>
    %194 = vector.broadcast %193 : vector<16x1xf32> to vector<16x16xf32>
    %195 = arith.addf %192, %194 : vector<16x16xf32>
    %196 = tpu.concatenate %189, %195 in 1 : vector<16x16xf32>, vector<16x16xf32> -> vector<16x32xf32>
    %197 = arith.negf %196 : vector<16x32xf32>
    %198 = math.exp %197 : vector<16x32xf32>
    %cst_123 = arith.constant 1.000000e+00 : f32
    %199 = vector.broadcast %cst_123 : f32 to vector<16x32xf32>
    %200 = arith.addf %199, %198 : vector<16x32xf32>
    %201 = arith.divf %199, %200 : vector<16x32xf32>
    %202 = vector.extract_strided_slice %201 {offsets = [0, 0], sizes = [16, 16], strides = [1, 1]} : vector<16x32xf32> to vector<16x16xf32>
    %c0_124 = arith.constant 0 : index
    %c0_125 = arith.constant 0 : index
    %203 = vector.load %arg3[%c0_124, %c0_125] : memref<128x256xf32, #tpu.memory_space<vmem>>, vector<16x256xf32>
    %cst_126 = arith.constant dense<0.000000e+00> : vector<16x256xf32>
    %204 = tpu.matmul %202, %203, %cst_126 {dimension_numbers = #tpu.dot_dimension_numbers<[1], [0], [0], [1], [0, 0, 1, 1], [], []>, precision = #tpu.contract_precision<fp32>} : vector<16x16xf32>, vector<16x256xf32>, vector<16x256xf32> -> vector<16x256xf32>
    %205 = vector.extract_strided_slice %201 {offsets = [0, 16], sizes = [16, 16], strides = [1, 1]} : vector<16x32xf32> to vector<16x16xf32>
    %c16_127 = arith.constant 16 : index
    %c0_128 = arith.constant 0 : index
    %206 = vector.load %arg3[%c16_127, %c0_128] : memref<128x256xf32, #tpu.memory_space<vmem>>, vector<16x256xf32>
    %cst_129 = arith.constant dense<0.000000e+00> : vector<16x256xf32>
    %207 = tpu.matmul %205, %206, %cst_129 {dimension_numbers = #tpu.dot_dimension_numbers<[1], [0], [0], [1], [0, 0, 1, 1], [], []>, precision = #tpu.contract_precision<fp32>} : vector<16x16xf32>, vector<16x256xf32>, vector<16x256xf32> -> vector<16x256xf32>
    %208 = arith.mulf %167, %204 : vector<16x256xf32>
    %209 = arith.mulf %208, %207 : vector<16x256xf32>
    %210 = vector.extract_strided_slice %154 {offsets = [0, 0], sizes = [16, 1], strides = [1, 1]} : vector<64x1xf32> to vector<16x1xf32>
    %c1_130 = arith.constant 1 : index
    %c0_131 = arith.constant 0 : index
    %c0_132 = arith.constant 0 : index
    %211 = vector.load %arg1[%c1_130, %c0_131, %c0_132] : memref<2x65x256xf32, #tpu.memory_space<vmem>>, vector<1x16x256xf32>
    %212 = vector.shape_cast %211 : vector<1x16x256xf32> to vector<16x256xf32>
    %213 = arith.addf %212, %209 : vector<16x256xf32>
    %214 = vector.broadcast %210 : vector<16x1xf32> to vector<16x256xf32>
    %215 = arith.mulf %214, %213 : vector<16x256xf32>
    %c1_133 = arith.constant 1 : index
    %c0_134 = arith.constant 0 : index
    %c0_135 = arith.constant 0 : index
    %216 = vector.load %arg4[%c1_133, %c0_134, %c0_135] : memref<2x64x256xf32, #tpu.memory_space<vmem>>, vector<1x16x256xf32>
    %217 = vector.shape_cast %216 : vector<1x16x256xf32> to vector<16x256xf32>
    %218 = vector.shape_cast %215 : vector<16x256xf32> to vector<1x16x256xf32>
    tpu.vector_store %arg4[%c1_133, %c0_134, %c0_135], %218 {strides = array<i32>} : memref<2x64x256xf32, #tpu.memory_space<vmem>>, vector<1x16x256xf32>,
    %219 = vector.extract_strided_slice %154 {offsets = [16, 0], sizes = [16, 1], strides = [1, 1]} : vector<64x1xf32> to vector<16x1xf32>
    %c1_136 = arith.constant 1 : index
    %c16_137 = arith.constant 16 : index
    %c0_138 = arith.constant 0 : index
    %220 = vector.load %arg1[%c1_136, %c16_137, %c0_138] : memref<2x65x256xf32, #tpu.memory_space<vmem>>, vector<1x16x256xf32>
    %221 = vector.shape_cast %220 : vector<1x16x256xf32> to vector<16x256xf32>
    %222 = arith.addf %221, %209 : vector<16x256xf32>
    %223 = vector.broadcast %219 : vector<16x1xf32> to vector<16x256xf32>
    %224 = arith.mulf %223, %222 : vector<16x256xf32>
    %c1_139 = arith.constant 1 : index
    %c16_140 = arith.constant 16 : index
    %c0_141 = arith.constant 0 : index
    %225 = vector.load %arg4[%c1_139, %c16_140, %c0_141] : memref<2x64x256xf32, #tpu.memory_space<vmem>>, vector<1x16x256xf32>
    %226 = vector.shape_cast %225 : vector<1x16x256xf32> to vector<16x256xf32>
    %227 = vector.shape_cast %224 : vector<16x256xf32> to vector<1x16x256xf32>
    tpu.vector_store %arg4[%c1_139, %c16_140, %c0_141], %227 {strides = array<i32>} : memref<2x64x256xf32, #tpu.memory_space<vmem>>, vector<1x16x256xf32>,
    %228 = vector.extract_strided_slice %154 {offsets = [32, 0], sizes = [16, 1], strides = [1, 1]} : vector<64x1xf32> to vector<16x1xf32>
    %c1_142 = arith.constant 1 : index
    %c32_143 = arith.constant 32 : index
    %c0_144 = arith.constant 0 : index
    %229 = vector.load %arg1[%c1_142, %c32_143, %c0_144] : memref<2x65x256xf32, #tpu.memory_space<vmem>>, vector<1x16x256xf32>
    %230 = vector.shape_cast %229 : vector<1x16x256xf32> to vector<16x256xf32>
    %231 = arith.addf %230, %209 : vector<16x256xf32>
    %232 = vector.broadcast %228 : vector<16x1xf32> to vector<16x256xf32>
    %233 = arith.mulf %232, %231 : vector<16x256xf32>
    %c1_145 = arith.constant 1 : index
    %c32_146 = arith.constant 32 : index
    %c0_147 = arith.constant 0 : index
    %234 = vector.load %arg4[%c1_145, %c32_146, %c0_147] : memref<2x64x256xf32, #tpu.memory_space<vmem>>, vector<1x16x256xf32>
    %235 = vector.shape_cast %234 : vector<1x16x256xf32> to vector<16x256xf32>
    %236 = vector.shape_cast %233 : vector<16x256xf32> to vector<1x16x256xf32>
    tpu.vector_store %arg4[%c1_145, %c32_146, %c0_147], %236 {strides = array<i32>} : memref<2x64x256xf32, #tpu.memory_space<vmem>>, vector<1x16x256xf32>,
    %237 = vector.extract_strided_slice %154 {offsets = [48, 0], sizes = [16, 1], strides = [1, 1]} : vector<64x1xf32> to vector<16x1xf32>
    %c1_148 = arith.constant 1 : index
    %c48_149 = arith.constant 48 : index
    %c0_150 = arith.constant 0 : index
    %238 = vector.load %arg1[%c1_148, %c48_149, %c0_150] : memref<2x65x256xf32, #tpu.memory_space<vmem>>, vector<1x16x256xf32>
    %239 = vector.shape_cast %238 : vector<1x16x256xf32> to vector<16x256xf32>
    %240 = arith.addf %239, %209 : vector<16x256xf32>
    %241 = vector.broadcast %237 : vector<16x1xf32> to vector<16x256xf32>
    %242 = arith.mulf %241, %240 : vector<16x256xf32>
    %c1_151 = arith.constant 1 : index
    %c48_152 = arith.constant 48 : index
    %c0_153 = arith.constant 0 : index
    %243 = vector.load %arg4[%c1_151, %c48_152, %c0_153] : memref<2x64x256xf32, #tpu.memory_space<vmem>>, vector<1x16x256xf32>
    %244 = vector.shape_cast %243 : vector<1x16x256xf32> to vector<16x256xf32>
    %245 = vector.shape_cast %242 : vector<16x256xf32> to vector<1x16x256xf32>
    tpu.vector_store %arg4[%c1_151, %c48_152, %c0_153], %245 {strides = array<i32>} : memref<2x64x256xf32, #tpu.memory_space<vmem>>, vector<1x16x256xf32>,
    return
  }
  func.func @transform_0(%arg0: i32) -> (i32, i32, i32) {
    %c0_i32 = arith.constant 0 : i32
    %c0_i32_0 = arith.constant 0 : i32
    %c0_i32_1 = arith.constant 0 : i32
    %c0_i32_2 = arith.constant 0 : i32
    return %c0_i32, %c0_i32_0, %c0_i32_1 : i32, i32, i32
  }
  func.func @transform_1(%arg0: i32) -> (i32, i32) {
    %c0_i32 = arith.constant 0 : i32
    %c0_i32_0 = arith.constant 0 : i32
    %c0_i32_1 = arith.constant 0 : i32
    return %c0_i32, %c0_i32_0 : i32, i32
  }
  func.func @transform_2(%arg0: i32) -> (i32, i32) {
    %c0_i32 = arith.constant 0 : i32
    %c0_i32_0 = arith.constant 0 : i32
    %c0_i32_1 = arith.constant 0 : i32
    return %c0_i32, %c0_i32_0 : i32, i32
  }
  func.func @transform_3(%arg0: i32) -> (i32, i32, i32) {
    %c0_i32 = arith.constant 0 : i32
    %c0_i32_0 = arith.constant 0 : i32
    %c0_i32_1 = arith.constant 0 : i32
    %c0_i32_2 = arith.constant 0 : i32
    return %c0_i32, %c0_i32_0, %c0_i32_1 : i32, i32, i32
  }
}

</mosaic_0001>

<bundles_post_ra>
// kernel: tpu_custom_call.1
= control target key start
LH: loop header
LB: loop body
LE: loop exit
PB: predicated region body
PF: predicated region fallthrough
CT: control target
= control target key end

     0   :  { %s9873_s0 = inlined_call_operand.vmem [shape: f32[2,65,256], index: 0, kind: input, shape index: {}]   ;;  %s9874_s1 = inlined_call_operand.vmem [shape: f32[256,32], index: 1, kind: input, shape index: {}]   ;;  %s9875_s2 = inlined_call_operand.vmem [shape: f32[128,256], index: 2, kind: input, shape index: {}]   ;;  %s9876_s3 = inlined_call_operand.hbm [shape: f32[2,64,256], index: 3, kind: output, shape index: {}]  }
   0x1   :  { %v6565_v0 = vld [vmem:[%s9873_s0 + $0x80] ss:$8 sm:$0x3]  ;;  %v6813_v2 = vld [vmem:[%s9873_s0 + $0x10] sm:$0xff]  ;;  %v6823_v4 = vld [vmem:[%s9873_s0 + $0x18] sm:$0xff] }
   0x2   :  { %v6566_v1 = vmul.f32 -1.442695, %v6565_v0  ;;  %v6818_v3 = vld [vmem:[%s9873_s0 + $0x30] sm:$0xff]  ;;  %v6828_v5 = vld [vmem:[%s9873_s0 + $0x38] sm:$0xff]  ;;  %v6843_v10 = vld [vmem:[%s9873_s0] sm:$0xff] }
   0x3   :  { %v990_v6 = vadd.f32 %v6818_v3, %v6813_v2  ;;  %v991_v7 = vadd.f32 %v6828_v5, %v6823_v4  ;;  %v994_v8 = vld [vmem:[%s9873_s0 + $0x50] sm:$0xff]  ;;  %v995_v9 = vld [vmem:[%s9873_s0 + $0x58] sm:$0xff]  ;;  %v6848_v12 = vld [vmem:[%s9873_s0 + $0x8] sm:$0xff] }
   0x4   :  { %6652 = vpow2.f32 %v6566_v1  ;;  %v6853_v13 = vld [vmem:[%s9873_s0 + $0x20] sm:$0xff]  ;;  %v6858_v14 = vld [vmem:[%s9873_s0 + $0x28] sm:$0xff]  ;;  %v50_v15 = vld [vmem:[%s9873_s0 + $0x70] sm:$0xff] }
   0x5   :  { %v998_v11 = vadd.f32 %v994_v8, %v990_v6  ;;  %v999_v16 = vadd.f32 %v995_v9, %v991_v7  ;;  %v988_v17 = vadd.f32 %v6853_v13, %v6843_v10  ;;  %v989_v18 = vadd.f32 %v6858_v14, %v6848_v12 }
   0x6   :  { %8 = vsyncpa [#allocation3], 0  ;;  %v51_v19 = vld [vmem:[%s9873_s0 + $0x78] sm:$0xff]  ;;  %v992_v21 = vld [vmem:[%s9873_s0 + $0x40] sm:$0xff]  ;;  %vm136_vm5 = vcmask 7168   ;;  %vm154_vm6 = vcmask 523264  }
   0x7   :  { %v1002_v20 = vadd.f32 %v998_v11, %v50_v15  ;;  %v993_v22 = vld [vmem:[%s9873_s0 + $0x48] sm:$0xff]  ;;  %v1003_v23 = vadd.f32 %v999_v16, %v51_v19  ;;  %v996_v24 = vadd.f32 %v992_v21, %v988_v17  ;;  %v48_v26 = vld [vmem:[%s9873_s0 + $0x60] sm:$0xff]  ;;  %vm396_vm7 = vcmask 31744   ;;  %s6779_s24 = smov 112   ;;  %s6782_s27 = smov 16  }
   0x8   :  { %v997_v25 = vadd.f32 %v993_v22, %v989_v18  ;;  %v49_v27 = vld [vmem:[%s9873_s0 + $0x68] sm:$0xff]  ;;  %vm421_vm8 = vcmask 1043456   ;;  %vm1790_vm9 = vcmask 130048   ;;  %vm1969_vm10 = vcmask 64512   ;;  %s6783_s28 = smov 127   ;;  %s6552_s13 = sshll.u32 %s9876_s3, 4  ;;  %s6553_s13 = int_to_ptr.hbm [resolvable:$true] %s6552_s13 }
   0x9   :  { %v1000_v29 = vadd.f32 %v996_v24, %v48_v26  ;;  %s6785_s14 = smov [#allocation2]  }
   0xa   :  { %v6653_v28 = vpop.eup %6652  ;;  %v1001_v30 = vadd.f32 %v997_v25, %v49_v27  ;;  %s6550_s15 = sshll.u32 %s6785_s14, 4  ;;  %s6551_s15 = int_to_ptr.vmem [resolvable:$true] %s6550_s15 }
   0xb   :  { %v20_v31 = vadd.f32 1.0, %v6653_v28 }
   0xd   :  { %6654 = vrcp.f32 %v20_v31  ;;  %v32_v34 = vand.u32 2147483648, %v20_v31  ;;  %vm26_vm0 = vweird.f32 %v20_v31  ;;  %v30_v36 = vand.u32 2147483647, %v20_v31 }
   0xf   :  { %v33_v38 = vor.u32 1.1754944e-38, %v32_v34  ;;  %vm31_vm3 = vcmp.eq.f32.partialorder %v30_v36, 8.507059e+37 }
  0x13   :  { %v6655_v32 = vpop.eup %6654 }
  0x14   :  { %v22_v33 = vmul.f32 %v6655_v32, %v20_v31  ;;  %vm27_vm1 = vweird.f32 %v6655_v32 }
  0x15   :  { %vm28_vm2 = vmor %vm26_vm0, %vm27_vm1 }
  0x16   :  { %v23_v35 = vsub.f32 1.0, %v22_v33 }
  0x18   :  { %v24_v37 = vmul.f32 %v6655_v32, %v23_v35 }
  0x1a   :  { %v25_v39 = vadd.f32 %v6655_v32, %v24_v37 }
  0x1c   :  { %v29_v40 = vsel %vm28_vm2, %v6655_v32, %v25_v39 }
  0x1d   :  { %v34_v41 = vsel %vm31_vm3, %v33_v38, %v29_v40 }
  0x1e   :  { %v53_v42 = vperm.slane %v34_v41, 0  ;;  %v54_v43 = vperm.slane %v34_v41, 1 }
  0x20   :  { %v71_v44 = vadd.f32 %v53_v42, %v50_v15  ;;  %v72_v45 = vadd.f32 %v54_v43, %v51_v19  ;;  %v6882_v46 = vadd.f32 %v1002_v20, %v53_v42  ;;  %v6884_v47 = vadd.f32 %v1003_v23, %v54_v43 }
  0x21   :  { %v69_v48 = vadd.f32 %v53_v42, %v48_v26  ;;  %v70_v49 = vadd.f32 %v54_v43, %v49_v27  ;;  %v6886_v50 = vadd.f32 %v1000_v29, %v53_v42  ;;  %v6888_v51 = vadd.f32 %v1001_v30, %v54_v43 }
  0x22   :  { %9913 = vst [vmem:[#allocation5_spill] sm:$0xff] %v6882_v46  ;;  %v133_v52 = vmax.f32 %v71_v44, %v72_v45  ;;  %v94_v53 = vadd.f32 %v72_v45, %v71_v44  ;;  %v67_v55 = vadd.f32 %v994_v8, %v53_v42  ;;  %v68_v56 = vadd.f32 %v995_v9, %v54_v43 }
  0x23   :  { %9914 = vst [vmem:[#allocation6_spill] sm:$0xff] %v6884_v47  ;;  %v130_v54 = vmax.f32 %v69_v48, %v70_v49  ;;  %v65_v57 = vadd.f32 %v992_v21, %v53_v42  ;;  %v66_v58 = vadd.f32 %v993_v22, %v54_v43  ;;  %v91_v59 = vadd.f32 %v70_v49, %v69_v48 }
  0x24   :  { %9915 = vst [vmem:[#allocation7_spill] sm:$0xff] %v6886_v50  ;;  %134 = vmax.xlane.f32.xlu1 %v133_v52  ;;  %95 = vadd.xlane.f32.xlu0 %v94_v53  ;;  %v88_v60 = vadd.f32 %v68_v56, %v67_v55  ;;  %v63_v62 = vadd.f32 %v6818_v3, %v53_v42 }
  0x25   :  { %9916 = vst [vmem:[#allocation8_spill] sm:$0xff] %v6888_v51  ;;  %131 = vmax.xlane.f32.xlu2 %v130_v54  ;;  %v85_v61 = vadd.f32 %v66_v58, %v65_v57  ;;  %v64_v63 = vadd.f32 %v6828_v5, %v54_v43  ;;  %v127_v0 = vmax.f32 %v67_v55, %v68_v56 }
  0x26   :  { %v124_v6 = vmax.f32 %v65_v57, %v66_v58  ;;  %v61_v7 = vadd.f32 %v6853_v13, %v53_v42  ;;  %v62_v8 = vadd.f32 %v6858_v14, %v54_v43  ;;  %v59_v9 = vadd.f32 %v6813_v2, %v53_v42 }
  0x27   :  { %v82_v1 = vadd.f32 %v64_v63, %v63_v62  ;;  %v60_v11 = vadd.f32 %v6823_v4, %v54_v43  ;;  %v121_v15 = vmax.f32 %v63_v62, %v64_v63  ;;  %v57_v5 = vadd.f32 %v6843_v10, %v53_v42 }
  0x28   :  { %v79_v16 = vadd.f32 %v62_v8, %v61_v7  ;;  %v58_v17 = vadd.f32 %v6848_v12, %v54_v43  ;;  %v118_v18 = vmax.f32 %v61_v7, %v62_v8  ;;  %v6777_v2 = vmov 256.0  }
  0x29   :  { %v76_v3 = vadd.f32 %v60_v11, %v59_v9  ;;  %v115_v13 = vmax.f32 %v59_v9, %v60_v11  ;;  %6656 = vrcp.f32 %v6777_v2 }
  0x2a   :  { %v73_v19 = vadd.f32 %v58_v17, %v57_v5  ;;  %v112_v14 = vmax.f32 %v57_v5, %v58_v17 }
  0x2c   :  { %92 = vadd.xlane.f32.xlu0 %v91_v59  ;;  %89 = vadd.xlane.f32.xlu1 %v88_v60  ;;  %v145_v60 = vld [vmem:[%s9875_s2 + $0x40] sm:$0xf] }
  0x2d   :  { %86 = vadd.xlane.f32.xlu2 %v85_v61  ;;  %v156_v8 = vsel %vm154_vm6, %v145_v60, 0 }
  0x2f   :  { %v6657_v4 = vpop.eup %6656 }
  0x30   :  { %v98_v20 = vmul.f32 256.0, %v6657_v4  ;;  %vm102_vm4 = vweird.f32 %v6657_v4 }
  0x32   :  { %v99_v21 = vsub.f32 1.0, %v98_v20 }
  0x34   :  { %128 = vmax.xlane.f32.xlu0 %v127_v0  ;;  %83 = vadd.xlane.f32.xlu1 %v82_v1  ;;  %v100_v22 = vmul.f32 %v6657_v4, %v99_v21 }
  0x35   :  { %125 = vmax.xlane.f32.xlu2 %v124_v6 }
  0x36   :  { %v101_v23 = vadd.f32 %v6657_v4, %v100_v22 }
  0x38   :  { %v6898_v10 = vsel %vm102_vm4, %v6657_v4, %v101_v23 }
  0x39   :  { %9917 = vst [vmem:[#allocation9_spill] sm:$0xff] %v6898_v10 }
  0x3c   :  { %122 = vmax.xlane.f32.xlu1 %v121_v15  ;;  %80 = vadd.xlane.f32.xlu0 %v79_v16 }
  0x3d   :  { %77 = vadd.xlane.f32.xlu2 %v76_v3  ;;  %v6966_v3 = vand.u32 4294901760, %v156_v8 }
  0x44   :  { %119 = vmax.xlane.f32.xlu0 %v118_v18  ;;  %74 = vadd.xlane.f32.xlu1 %v73_v19 }
  0x45   :  { %116 = vmax.xlane.f32.xlu2 %v115_v13 }
  0x4c   :  { %113 = vmax.xlane.f32.xlu0 %v112_v14  ;;  %v183_v14 = vsub.f32 %v156_v8, %v6966_v3 }
  0x97   :  { %v135_v12 = vpop.xlane.xlu1 %134  ;;  %v96_v24 = vpop.xlane.xlu0 %95 }
  0x98   :  { %v111_v25 = vmul.f32 %v6898_v10, %v96_v24  ;;  %v132_v26 = vpop.xlane.xlu2 %131 }
  0x9a   :  { %v144_v27 = vsel %vm136_vm5, %v111_v25, %v135_v12  ;;  %v184_v25 = vand.u32 4294901760, %v183_v14 }
  0x9b   :  { %v6902_v28 = vand.u32 4294901760, %v144_v27 }
  0x9d   :  { %167 = vmatpush.msra.mxu0 %v6902_v28  ;;  %299 = vmatpush.msra.mxu3 %v6902_v28  ;;  %v6907_v29 = vsub.f32 %v144_v27, %v6902_v28 }
  0x9f   :  { %262 = vmatpush.msra.mxu2 %v6907_v29  ;;  %v93_v30 = vpop.xlane.xlu0 %92  ;;  %v90_v31 = vpop.xlane.xlu1 %89  ;;  %v201_v32 = vand.u32 4294901760, %v6907_v29 }
  0xa0   :  { %v110_v33 = vmul.f32 %v6898_v10, %v93_v30  ;;  %v87_v34 = vpop.xlane.xlu2 %86  ;;  %v109_v39 = vmul.f32 %v6898_v10, %v90_v31 }
  0xa1   :  { %v202_v35 = vsub.f32 %v6907_v29, %v201_v32  ;;  %v108_v40 = vmul.f32 %v6898_v10, %v87_v34 }
  0xa2   :  { %v143_v36 = vsel %vm136_vm5, %v110_v33, %v132_v26 }
  0xa3   :  { %v6916_v37 = vand.u32 4294901760, %v143_v36  ;;  %v203_v38 = vand.u32 4294901760, %v202_v35  ;;  %v185_v35 = vsub.f32 %v183_v14, %v184_v25 }
  0xa5   :  { %169 = vmatpush.msra.mxu0 %v6916_v37  ;;  %204 = vmatpush.msra.mxu1 %v203_v38  ;;  %v6922_v41 = vsub.f32 %v143_v36, %v6916_v37 }
  0xa6   :  { %301 = vmatpush.msra.mxu3 %v6916_v37 }
  0xa7   :  { %265 = vmatpush.msra.mxu2 %v6922_v41  ;;  %v129_v42 = vpop.xlane.xlu0 %128  ;;  %v84_v43 = vpop.xlane.xlu1 %83  ;;  %v207_v44 = vand.u32 4294901760, %v6922_v41 }
  0xa8   :  { %v142_v45 = vsel %vm136_vm5, %v109_v39, %v129_v42  ;;  %v126_v48 = vpop.xlane.xlu2 %125  ;;  %v107_v58 = vmul.f32 %v6898_v10, %v84_v43 }
  0xa9   :  { %v6928_v49 = vand.u32 4294901760, %v142_v45  ;;  %v141_v52 = vsel %vm136_vm5, %v108_v40, %v126_v48  ;;  %v208_v53 = vsub.f32 %v6922_v41, %v207_v44 }
  0xaa   :  { %v6934_v54 = vand.u32 4294901760, %v141_v52 }
  0xab   :  { %v6937_v55 = vsub.f32 %v142_v45, %v6928_v49  ;;  %171 = vmatpush.msra.mxu0 %v6928_v49  ;;  %303 = vmatpush.msra.mxu3 %v6928_v49  ;;  %v209_v56 = vand.u32 4294901760, %v208_v53  ;;  %v186_v45 = vand.u32 4294901760, %v185_v35 }
  0xac   :  { %v6942_v57 = vsub.f32 %v141_v52, %v6934_v54 }
  0xad   :  { %173 = vmatpush.msra.mxu0 %v6934_v54  ;;  %210 = vmatpush.msra.mxu1 %v209_v56  ;;  %v213_v59 = vand.u32 4294901760, %v6937_v55 }
  0xae   :  { %268 = vmatpush.msra.mxu2 %v6937_v55  ;;  %305 = vmatpush.msra.mxu3 %v6934_v54  ;;  %v219_v61 = vand.u32 4294901760, %v6942_v57 }
  0xaf   :  { %v123_v62 = vpop.xlane.xlu1 %122  ;;  %v81_v63 = vpop.xlane.xlu0 %80  ;;  %v214_v0 = vsub.f32 %v6937_v55, %v213_v59  ;;  %v147_v55 = vld [vmem:[%s9875_s2 + $0x60] sm:$0xff] }
  0xb0   :  { %271 = vmatpush.msra.mxu2 %v6942_v57  ;;  %v140_v1 = vsel %vm136_vm5, %v107_v58, %v123_v62  ;;  %v78_v6 = vpop.xlane.xlu2 %77  ;;  %v220_v7 = vsub.f32 %v6942_v57, %v219_v61  ;;  %v106_v18 = vmul.f32 %v6898_v10, %v81_v63  ;;  %v401_v58 = vsel %vm396_vm7, %v147_v55, 0  ;;  %v148_v63 = vld [vmem:[%s9875_s2 + $0x70] sm:$0xff] }
  0xb1   :  { %v6962_v9 = vand.u32 4294901760, %v140_v1  ;;  %v215_v11 = vand.u32 4294901760, %v214_v0  ;;  %v105_v5 = vmul.f32 %v6898_v10, %v78_v6  ;;  %v7003_v62 = vand.u32 4294901760, %v401_v58 }
  0xb2   :  { %v221_v16 = vand.u32 4294901760, %v220_v7  ;;  %v404_v6 = vsel %vm396_vm7, %v148_v63, 0 }
  0xb3   :  { %v224_v15 = vsub.f32 %v140_v1, %v6962_v9  ;;  %175 = vmatpush.msra.mxu0 %v6962_v9  ;;  %216 = vmatpush.msra.mxu1 %v215_v11 }
  0xb4   :  { %307 = vmatpush.msra.mxu3 %v6962_v9 }
  0xb5   :  { %222 = vmatpush.msra.mxu1 %v221_v16  ;;  %274 = vmatpush.msra.mxu2 %v224_v15  ;;  %v225_v17 = vand.u32 4294901760, %v224_v15 }
  0xb7   :  { %v120_v19 = vpop.xlane.xlu0 %119  ;;  %v226_v13 = vsub.f32 %v224_v15, %v225_v17  ;;  %v75_v23 = vpop.xlane.xlu1 %74  ;;  %v7012_v15 = vand.u32 4294901760, %v404_v6 }
  0xb8   :  { %v139_v2 = vsel %vm136_vm5, %v106_v18, %v120_v19  ;;  %v117_v4 = vpop.xlane.xlu2 %116  ;;  %v104_v27 = vmul.f32 %v6898_v10, %v75_v23  ;;  %v149_v19 = vld [vmem:[%s9875_s2 + $0x80] sm:$0xff] }
  0xb9   :  { %v176_v20 = vand.u32 4294901760, %v139_v2  ;;  %v138_v21 = vsel %vm136_vm5, %v105_v5, %v117_v4  ;;  %v227_v22 = vand.u32 4294901760, %v226_v13  ;;  %v407_v23 = vsel %vm396_vm7, %v149_v19, 0 }
  0xba   :  { %v178_v12 = vand.u32 4294901760, %v138_v21 }
  0xbb   :  { %v230_v24 = vsub.f32 %v139_v2, %v176_v20  ;;  %177 = vmatpush.msra.mxu0 %v176_v20  ;;  %228 = vmatpush.msra.mxu1 %v227_v22  ;;  %v1022_v2 = vld [vmem:[%s9874_s1 + $0x70] sm:$0xff] }
  0xbc   :  { %v236_v26 = vsub.f32 %v138_v21, %v178_v12  ;;  %309 = vmatpush.msra.mxu3 %v176_v20  ;;  %v7033_v21 = vand.u32 4294901760, %v1022_v2 }
  0xbd   :  { %179 = vmatpush.msra.mxu0 %v178_v12  ;;  %277 = vmatpush.msra.mxu2 %v230_v24  ;;  %v231_v30 = vand.u32 4294901760, %v230_v24 }
  0xbe   :  { %311 = vmatpush.msra.mxu3 %v178_v12  ;;  %v237_v31 = vand.u32 4294901760, %v236_v26 }
  0xbf   :  { %280 = vmatpush.msra.mxu2 %v236_v26  ;;  %v114_v33 = vpop.xlane.xlu0 %113  ;;  %v232_v34 = vsub.f32 %v230_v24, %v231_v30 }
  0xc0   :  { %v137_v36 = vsel %vm136_vm5, %v104_v27, %v114_v33  ;;  %v238_v38 = vsub.f32 %v236_v26, %v237_v31  ;;  %v7044_v27 = vsub.f32 %v1022_v2, %v7033_v21 }
  0xc1   :  { %v180_v39 = vand.u32 4294901760, %v137_v36  ;;  %v233_v40 = vand.u32 4294901760, %v232_v34 }
  0xc2   :  { %v239_v43 = vand.u32 4294901760, %v238_v38  ;;  %v1097_v35 = vand.u32 4294901760, %v7044_v27 }
  0xc3   :  { %v242_v42 = vsub.f32 %v137_v36, %v180_v39  ;;  %181 = vmatpush.msra.mxu0 %v180_v39  ;;  %234 = vmatpush.msra.mxu1 %v233_v40 }
  0xc4   :  { %313 = vmatpush.msra.mxu3 %v180_v39  ;;  %187 = vmatmul.f32.vlgmr.msra.gmra.mxu0 %v186_v45  ;;  %v150_v45 = vld [vmem:[%s9875_s2 + $0x90] sm:$0xff] }
  0xc5   :  { %332 = vmatpush.msrb.mxu0 %v201_v32  ;;  %240 = vmatpush.msra.mxu1 %v239_v43  ;;  %v243_v48 = vand.u32 4294901760, %v242_v42 }
  0xc6   :  { %283 = vmatpush.msra.mxu2 %v242_v42  ;;  %317 = vmatmul.f32.vlgmr.msra.gmra.mxu3 %v184_v25 }
  0xc7   :  { %336 = vmatpush.msrb.mxu0 %v207_v44  ;;  %286 = vmatmul.f32.vlgmr.msra.gmra.mxu2 %v183_v14  ;;  %v244_v52 = vsub.f32 %v242_v42, %v243_v48  ;;  %v7025_v14 = vsub.f32 %v404_v6, %v7012_v15  ;;  %v1019_v42 = vld [vmem:[%s9874_s1 + $0x58] sm:$0xff]  ;;  %v1016_v6 = vld [vmem:[%s9874_s1 + $0x40] sm:$0xff] }
  0xc9   :  { %340 = vmatpush.msrb.mxu0 %v213_v59  ;;  %v245_v53 = vand.u32 4294901760, %v244_v52  ;;  %v1098_v52 = vsub.f32 %v7044_v27, %v1097_v35 }
  0xcb   :  { %344 = vmatpush.msrb.mxu0 %v219_v61  ;;  %246 = vmatpush.msra.mxu1 %v245_v53  ;;  %v7068_v53 = vand.u32 4294901760, %v1019_v42 }
  0xcc   :  { %248 = vmatmul.f32.vlgmr.msra.gmra.mxu1 %v6966_v3 }
  0xcd   :  { %348 = vmatpush.msrb.mxu0 %v225_v17  ;;  %375 = vmatpush.msrb.mxu1 %v6902_v28  ;;  %v146_v28 = vld [vmem:[%s9875_s2 + $0x50] sm:$0xff]  ;;  %v1023_v17 = vld [vmem:[%s9874_s1 + $0x78] sm:$0xff] }
  0xce   :  { %v7022_v13 = vand.u32 4294901760, %v1023_v17 }
  0xcf   :  { %352 = vmatpush.msrb.mxu0 %v231_v30  ;;  %377 = vmatpush.msrb.mxu1 %v6916_v37  ;;  %v398_v37 = vsel %vm396_vm7, %v146_v28, 0  ;;  %v460_v30 = vand.u32 4294901760, %v7025_v14 }
  0xd1   :  { %356 = vmatpush.msrb.mxu0 %v237_v31  ;;  %379 = vmatpush.msrb.mxu1 %v6928_v49  ;;  %v6996_v49 = vand.u32 4294901760, %v398_v37  ;;  %v1020_v31 = vld [vmem:[%s9874_s1 + $0x60] sm:$0xff] }
  0xd2   :  { %v7053_v36 = vand.u32 4294901760, %v1020_v31 }
  0xd3   :  { %360 = vmatpush.msrb.mxu0 %v243_v48  ;;  %381 = vmatpush.msrb.mxu1 %v6934_v54  ;;  %v443_v57 = vsub.f32 %v398_v37, %v6996_v49  ;;  %v461_v37 = vsub.f32 %v7025_v14, %v460_v30 }
  0xd4   :  { %362 = vmatmul.f32.vlgmr.msrb.gmra.mxu0 %v6966_v3 }
  0xd5   :  { %383 = vmatpush.msrb.mxu1 %v6962_v9  ;;  %v444_v61 = vand.u32 4294901760, %v443_v57  ;;  %v7010_v9 = vsub.f32 %v401_v58, %v7003_v62 }
  0xd7   :  { %385 = vmatpush.msrb.mxu1 %v176_v20  ;;  %v445_v8 = vsub.f32 %v443_v57, %v444_v61  ;;  %v452_v5 = vand.u32 4294901760, %v7010_v9  ;;  %v7031_v20 = vsub.f32 %v1023_v17, %v7022_v13 }
  0xd9   :  { %387 = vmatpush.msrb.mxu1 %v178_v12  ;;  %v453_v22 = vsub.f32 %v7010_v9, %v452_v5  ;;  %v1021_v12 = vld [vmem:[%s9874_s1 + $0x68] sm:$0xff]  ;;  %v1091_v25 = vand.u32 4294901760, %v7031_v20 }
  0xda   :  { %v7041_v26 = vand.u32 4294901760, %v1021_v12 }
  0xdb   :  { %389 = vmatpush.msrb.mxu1 %v180_v39  ;;  %v1092_v34 = vsub.f32 %v7031_v20, %v1091_v25  ;;  %v454_v38 = vand.u32 4294901760, %v453_v22  ;;  %v7055_v39 = vand.u32 4294901760, %v407_v23 }
  0xdc   :  { %391 = vmatmul.f32.vlgmr.msrb.gmra.mxu1 %v6966_v3  ;;  %v446_v3 = vand.u32 4294901760, %v445_v8  ;;  %v7058_v40 = vsub.f32 %v1021_v12, %v7041_v26 }
  0xdd   :  { %v1093_v48 = vand.u32 4294901760, %v1092_v34  ;;  %v7087_v55 = vsub.f32 %v407_v23, %v7055_v39 }
  0xde   :  { %v1103_v28 = vand.u32 4294901760, %v7058_v40 }
 0x141   :  { %v188_v29 = vpop.f32.mrf.mxu0 }
 0x149   :  { %v249_v32 = vpop.f32.mrf.mxu1  ;;  %v318_v56 = vpop.f32.mrf.mxu3 }
 0x14a   :  { %v250_v41 = vadd.f32 %v249_v32, %v188_v29  ;;  %v287_v44 = vpop.f32.mrf.mxu2  ;;  %v7072_v29 = vsub.f32 %v1020_v31, %v7053_v36  ;;  %v1018_v32 = vld [vmem:[%s9874_s1 + $0x50] sm:$0xff] }
 0x14c   :  { %v288_v54 = vadd.f32 %v287_v44, %v250_v41  ;;  %v1099_v41 = vand.u32 4294901760, %v1098_v52  ;;  %v7080_v44 = vand.u32 4294901760, %v1018_v32  ;;  %v1109_v58 = vand.u32 4294901760, %v7072_v29 }
 0x14e   :  { %v319_v59 = vadd.f32 %v318_v56, %v288_v54  ;;  %v7083_v54 = vsub.f32 %v1019_v42, %v7068_v53  ;;  %v410_v56 = vsel %vm396_vm7, %v150_v45, 0  ;;  %v7099_v63 = vsub.f32 %v1018_v32, %v7080_v44 }
 0x151   :  { %v363_v60 = vpop.f32.mrf.mxu0 }
 0x152   :  { %v364_v0 = vadd.f32 %v363_v60, %v319_v59  ;;  %v1017_v59 = vld [vmem:[%s9874_s1 + $0x48] sm:$0xff]  ;;  %v1115_v60 = vand.u32 4294901760, %v7083_v54 }
 0x154   :  { %v1116_v8 = vsub.f32 %v7083_v54, %v1115_v60 }
 0x156   :  { %v1117_v22 = vand.u32 4294901760, %v1116_v8 }
 0x159   :  { %v392_v1 = vpop.f32.mrf.mxu1 }
 0x15a   :  { %v393_v7 = vadd.f32 %v392_v1, %v364_v0  ;;  %v1110_v1 = vsub.f32 %v7072_v29, %v1109_v58 }
 0x15c   :  { %v395_v11 = vmax.f32 %v393_v7, 0.0  ;;  %v7106_v7 = vand.u32 4294901760, %v410_v56 }
 0x15e   :  { %v423_v16 = vsel %vm421_vm8, %v395_v11, 0  ;;  %v1121_v11 = vand.u32 4294901760, %v7099_v63 }
 0x15f   :  { %v440_v18 = vand.u32 4294901760, %v423_v16 }
 0x160   :  { %v1122_v19 = vsub.f32 %v7099_v63, %v1121_v11 }
 0x161   :  { %v523_v4 = vsub.f32 %v423_v16, %v440_v18  ;;  %441 = vmatpush.msrb.mxu2 %v440_v18  ;;  %636 = vmatpush.msra.mxu1 %v440_v18  ;;  %v7111_v16 = vand.u32 4294901760, %v1016_v6 }
 0x162   :  { %447 = vmatmul.f32.vlgmr.msrb.gmra.mxu2 %v446_v3  ;;  %640 = vmatmul.f32.vlgmr.msra.gmra.mxu1 %v444_v61  ;;  %v7096_v61 = vand.u32 4294901760, %v1017_v59  ;;  %v468_v3 = vand.u32 4294901760, %v7087_v55 }
 0x163   :  { %578 = vmatpush.msra.mxu0 %v523_v4  ;;  %v524_v24 = vand.u32 4294901760, %v523_v4  ;;  %1094 = vmatpush.msrb.mxu1 %v1093_v48  ;;  %v7130_v12 = vsub.f32 %v1016_v6, %v7111_v16  ;;  %v152_v6 = vld [vmem:[%s9875_s2 + $0xb0] sm:$0xff] }
 0x164   :  { %581 = vmatmul.f32.vlgmr.msra.gmra.mxu0 %v443_v57  ;;  %v1104_v57 = vsub.f32 %v7058_v40, %v1103_v28  ;;  %v7115_v17 = vsub.f32 %v1017_v59, %v7096_v61  ;;  %v469_v34 = vsub.f32 %v7087_v55, %v468_v3 }
 0x165   :  { %704 = vmatpush.msra.mxu2 %v524_v24  ;;  %v525_v33 = vsub.f32 %v523_v4, %v524_v24  ;;  %1041 = vmatpush.msrb.mxu0 %v7022_v13  ;;  %v151_v4 = vld [vmem:[%s9875_s2 + $0xa0] sm:$0xff]  ;;  %v1014_v24 = vld [vmem:[%s9874_s1 + $0x30] sm:$0xff]  ;;  %v1133_v42 = vand.u32 4294901760, %v7130_v12 }
 0x166   :  { %1100 = vmatpush.msrb.mxu1 %v1099_v41  ;;  %v1105_v0 = vand.u32 4294901760, %v1104_v57  ;;  %v1127_v23 = vand.u32 4294901760, %v7115_v17  ;;  %v7140_v31 = vand.u32 4294901760, %v1014_v24  ;;  %v413_v45 = vsel %vm396_vm7, %v151_v4, 0 }
 0x167   :  { %1301 = vmatpush.msrb.mxu2 %v1091_v25  ;;  %v526_v43 = vand.u32 4294901760, %v525_v33  ;;  %1043 = vmatpush.msrb.mxu0 %v7033_v21  ;;  %v7137_v25 = vsub.f32 %v410_v56, %v7106_v7  ;;  %v7177_v59 = vand.u32 4294901760, %v413_v45 }
 0x168   :  { %1106 = vmatpush.msrb.mxu1 %v1105_v0  ;;  %v1011_v0 = vld [vmem:[%s9874_s1 + $0x18] sm:$0xff] }
 0x169   :  { %1305 = vmatpush.msrb.mxu2 %v1097_v35  ;;  %527 = vmatpush.msrb.mxu3 %v526_v43  ;;  %v1123_v35 = vand.u32 4294901760, %v1122_v19  ;;  %v1013_v43 = vld [vmem:[%s9874_s1 + $0x28] sm:$0xff]  ;;  %v476_v41 = vand.u32 4294901760, %v7137_v25 }
 0x16a   :  { %455 = vmatmul.f32.gmra.mxu2 %v454_v38  ;;  %529 = vmatmul.f32.vlgmr.msrb.gmra.mxu3 %v6996_v49  ;;  %v1128_v38 = vsub.f32 %v7115_v17, %v1127_v23  ;;  %v7159_v52 = vand.u32 4294901760, %v1013_v43 }
 0x16b   :  { %754 = vmatpush.msra.mxu3 %v440_v18  ;;  %646 = vmatmul.f32.gmra.mxu1 %v452_v5  ;;  %v1111_v5 = vand.u32 4294901760, %v1110_v1  ;;  %v1015_v18 = vld [vmem:[%s9874_s1 + $0x38] sm:$0xff]  ;;  %v7185_v1 = vand.u32 4294901760, %v1011_v0  ;;  %v477_v19 = vsub.f32 %v7137_v25, %v476_v41 }
 0x16c   :  { %586 = vmatmul.f32.gmra.mxu0 %v7010_v9  ;;  %1309 = vmatpush.msrb.mxu2 %v1103_v28  ;;  %v462_v9 = vand.u32 4294901760, %v461_v37  ;;  %v7123_v2 = vand.u32 4294901760, %v1015_v18  ;;  %v7162_v28 = vsub.f32 %v1014_v24, %v7140_v31  ;;  %v1129_v32 = vand.u32 4294901760, %v1128_v38 }
 0x16d   :  { %1045 = vmatpush.msrb.mxu0 %v7041_v26  ;;  %1372 = vmatpush.msrb.mxu3 %v7022_v13  ;;  %v1134_v37 = vsub.f32 %v7130_v12, %v1133_v42  ;;  %v416_v38 = vsel %vm396_vm7, %v152_v6, 0 }
 0x16e   :  { %1313 = vmatpush.msrb.mxu2 %v1109_v58  ;;  %1112 = vmatpush.msrb.mxu1 %v1111_v5  ;;  %v7143_v33 = vsub.f32 %v1015_v18, %v7123_v2  ;;  %v1145_v56 = vand.u32 4294901760, %v7162_v28  ;;  %v7175_v58 = vsub.f32 %v1013_v43, %v7159_v52  ;;  %v1010_v18 = vld [vmem:[%s9874_s1 + $0x10] sm:$0xff] }
 0x16f   :  { %1047 = vmatpush.msrb.mxu0 %v7053_v36  ;;  %1374 = vmatpush.msrb.mxu3 %v7033_v21  ;;  %v1135_v8 = vand.u32 4294901760, %v1134_v37  ;;  %v7203_v4 = vand.u32 4294901760, %v1010_v18 }
 0x170   :  { %1317 = vmatpush.msrb.mxu2 %v1115_v60  ;;  %v1139_v48 = vand.u32 4294901760, %v7143_v33  ;;  %1118 = vmatpush.msrb.mxu1 %v1117_v22  ;;  %v7206_v22 = vsub.f32 %v1011_v0, %v7185_v1 }
 0x171   :  { %1049 = vmatpush.msrb.mxu0 %v7068_v53  ;;  %1376 = vmatpush.msrb.mxu3 %v7041_v26  ;;  %v7226_v37 = vsub.f32 %v1010_v18, %v7203_v4 }
 0x172   :  { %463 = vmatmul.f32.gmra.mxu2 %v462_v9  ;;  %533 = vmatmul.f32.gmra.mxu3 %v7003_v62  ;;  %v1140_v60 = vsub.f32 %v7143_v33, %v1139_v48  ;;  %v1151_v9 = vand.u32 4294901760, %v7175_v58 }
 0x173   :  { %652 = vmatmul.f32.gmra.mxu1 %v460_v30  ;;  %1051 = vmatpush.msrb.mxu0 %v7080_v44  ;;  %v1012_v30 = vld [vmem:[%s9874_s1 + $0x20] sm:$0xff]  ;;  %v1169_v18 = vand.u32 4294901760, %v7226_v37 }
 0x174   :  { %591 = vmatmul.f32.gmra.mxu0 %v7025_v14  ;;  %v7172_v57 = vand.u32 4294901760, %v1012_v30  ;;  %1321 = vmatpush.msrb.mxu2 %v1121_v11  ;;  %v470_v14 = vand.u32 4294901760, %v469_v34  ;;  %v1146_v11 = vsub.f32 %v7162_v28, %v1145_v56  ;;  %v1141_v24 = vand.u32 4294901760, %v1140_v60 }
 0x175   :  { %1053 = vmatpush.msrb.mxu0 %v7096_v61  ;;  %1124 = vmatpush.msrb.mxu1 %v1123_v35  ;;  %v1009_v35 = vld [vmem:[%s9874_s1 + $0x8] sm:$0xff]  ;;  %v7235_v60 = vand.u32 4294901760, %v416_v38 }
 0x176   :  { %1325 = vmatpush.msrb.mxu2 %v1127_v23  ;;  %v7193_v5 = vsub.f32 %v1012_v30, %v7172_v57  ;;  %1378 = vmatpush.msrb.mxu3 %v7053_v36  ;;  %v7210_v23 = vsub.f32 %v413_v45, %v7177_v59  ;;  %v1147_v43 = vand.u32 4294901760, %v1146_v11  ;;  %v1152_v45 = vsub.f32 %v7175_v58, %v1151_v9 }
 0x177   :  { %1055 = vmatpush.msrb.mxu0 %v7111_v16  ;;  %1130 = vmatpush.msrb.mxu1 %v1129_v32  ;;  %v1163_v32 = vand.u32 4294901760, %v7206_v22  ;;  %v478_v30 = vand.u32 4294901760, %v477_v19 }
 0x178   :  { %1329 = vmatpush.msrb.mxu2 %v1133_v42  ;;  %v1157_v34 = vand.u32 4294901760, %v7193_v5  ;;  %v7220_v42 = vand.u32 4294901760, %v1009_v35  ;;  %1380 = vmatpush.msrb.mxu3 %v7068_v53 }
 0x179   :  { %1057 = vmatpush.msrb.mxu0 %v7123_v2  ;;  %1136 = vmatpush.msrb.mxu1 %v1135_v8  ;;  %v153_v8 = vld [vmem:[%s9875_s2 + $0xc0] sm:$0xff]  ;;  %v1164_v11 = vsub.f32 %v7206_v22, %v1163_v32 }
 0x17a   :  { %471 = vmatmul.f32.gmra.mxu2 %v470_v14  ;;  %537 = vmatmul.f32.gmra.mxu3 %v7012_v15  ;;  %v1158_v0 = vsub.f32 %v7193_v5, %v1157_v34  ;;  %v7239_v6 = vsub.f32 %v1009_v35, %v7220_v42 }
 0x17b   :  { %658 = vmatmul.f32.gmra.mxu1 %v468_v3  ;;  %1059 = vmatpush.msrb.mxu0 %v7140_v31  ;;  %v1008_v3 = vld [vmem:[%s9874_s1] sm:$0xff] }
 0x17c   :  { %596 = vmatmul.f32.gmra.mxu0 %v7087_v55  ;;  %v7232_v14 = vand.u32 4294901760, %v1008_v3  ;;  %1333 = vmatpush.msrb.mxu2 %v1139_v48  ;;  %v484_v55 = vand.u32 4294901760, %v7210_v23  ;;  %v1153_v48 = vand.u32 4294901760, %v1152_v45  ;;  %v1159_v35 = vand.u32 4294901760, %v1158_v0 }
 0x17d   :  { %1061 = vmatpush.msrb.mxu0 %v7159_v52  ;;  %1142 = vmatpush.msrb.mxu1 %v1141_v24  ;;  %v491_v24 = vsub.f32 %v416_v38, %v7235_v60  ;;  %v419_v45 = vsel %vm396_vm7, %v153_v8, 0 }
 0x17e   :  { %1337 = vmatpush.msrb.mxu2 %v1145_v56  ;;  %v7249_v19 = vsub.f32 %v1008_v3, %v7232_v14  ;;  %1382 = vmatpush.msrb.mxu3 %v7080_v44  ;;  %v485_v56 = vsub.f32 %v7210_v23, %v484_v55  ;;  %v1170_v3 = vsub.f32 %v7226_v37, %v1169_v18  ;;  %v7266_v10 = vand.u32 4294901760, %v419_v45 }
 0x17f   :  { %1063 = vmatpush.msrb.mxu0 %v7172_v57  ;;  %1148 = vmatpush.msrb.mxu1 %v1147_v43  ;;  %v1175_v43 = vand.u32 4294901760, %v7239_v6  ;;  %v492_v0 = vand.u32 4294901760, %v491_v24 }
 0x180   :  { %1341 = vmatpush.msrb.mxu2 %v1151_v9  ;;  %v1165_v9 = vand.u32 4294901760, %v1164_v11  ;;  %1384 = vmatpush.msrb.mxu3 %v7096_v61  ;;  %v486_v38 = vand.u32 4294901760, %v485_v56  ;;  %v499_v11 = vsub.f32 %v419_v45, %v7266_v10 }
 0x181   :  { %1065 = vmatpush.msrb.mxu0 %v7185_v1  ;;  %1154 = vmatpush.msrb.mxu1 %v1153_v48  ;;  %v493_v48 = vsub.f32 %v491_v24, %v492_v0 }
 0x182   :  { %479 = vmatmul.f32.gmra.mxu2 %v478_v30  ;;  %541 = vmatmul.f32.gmra.mxu3 %v7055_v39  ;;  %v1181_v30 = vand.u32 4294901760, %v7249_v19 }
 0x183   :  { %664 = vmatmul.f32.gmra.mxu1 %v476_v41  ;;  %1067 = vmatpush.msrb.mxu0 %v7203_v4  ;;  %v1176_v41 = vsub.f32 %v7239_v6, %v1175_v43 }
 0x184   :  { %601 = vmatmul.f32.gmra.mxu0 %v7137_v25  ;;  %1160 = vmatpush.msrb.mxu1 %v1159_v35  ;;  %v1171_v25 = vand.u32 4294901760, %v1170_v3  ;;  %v1182_v8 = vsub.f32 %v7249_v19, %v1181_v30  ;;  %v7282_v35 = vand.u32 4294901760, %v6886_v50 }
 0x185   :  { %1069 = vmatpush.msrb.mxu0 %v7220_v42  ;;  %1345 = vmatpush.msrb.mxu2 %v1157_v34  ;;  %v1177_v34 = vand.u32 4294901760, %v1176_v41 }
 0x186   :  { %1386 = vmatpush.msrb.mxu3 %v7111_v16  ;;  %1166 = vmatpush.msrb.mxu1 %v1165_v9  ;;  %v1183_v56 = vand.u32 4294901760, %v1182_v8 }
 0x187   :  { %1071 = vmatpush.msrb.mxu0 %v7232_v14  ;;  %1349 = vmatpush.msrb.mxu2 %v1163_v32  ;;  %v500_v32 = vand.u32 4294901760, %v499_v11 }
 0x188   :  { %1388 = vmatpush.msrb.mxu3 %v7123_v2  ;;  %1172 = vmatpush.msrb.mxu1 %v1171_v25 }
 0x189   :  { %1196 = vmatpush.msra.mxu0 %v7031_v20  ;;  %1353 = vmatpush.msrb.mxu2 %v1169_v18  ;;  %v494_v20 = vand.u32 4294901760, %v493_v48  ;;  %v1033_v18 = vld [vmem:[%s9874_s1 + $0xc8] sm:$0xff]  ;;  %v1030_v48 = vld [vmem:[%s9874_s1 + $0xb0] sm:$0xff] }
 0x18a   :  { %487 = vmatmul.f32.gmra.mxu2 %v486_v38  ;;  %545 = vmatmul.f32.gmra.mxu3 %v7106_v7  ;;  %v7399_v45 = vand.u32 4294901760, %v1033_v18  ;;  %v1031_v38 = vld [vmem:[%s9874_s1 + $0xb8] sm:$0xff] }
 0x18b   :  { %670 = vmatmul.f32.gmra.mxu1 %v484_v55  ;;  %1199 = vmatpush.msra.mxu0 %v7044_v27  ;;  %v501_v27 = vsub.f32 %v499_v11, %v500_v32 }
 0x18c   :  { %606 = vmatmul.f32.gmra.mxu0 %v7210_v23  ;;  %1178 = vmatpush.msrb.mxu1 %v1177_v34  ;;  %v7426_v8 = vsub.f32 %v1033_v18, %v7399_v45 }
 0x18d   :  { %1202 = vmatpush.msra.mxu0 %v7058_v40  ;;  %1390 = vmatpush.msrb.mxu3 %v7140_v31  ;;  %v7291_v40 = vsub.f32 %v6886_v50, %v7282_v35 }
 0x18e   :  { %1357 = vmatpush.msrb.mxu2 %v1175_v43  ;;  %1184 = vmatpush.msrb.mxu1 %v1183_v56  ;;  %v1032_v43 = vld [vmem:[%s9874_s1 + $0xc0] sm:$0xff] }
 0x18f   :  { %1205 = vmatpush.msra.mxu0 %v7072_v29  ;;  %1392 = vmatpush.msrb.mxu3 %v7159_v52  ;;  %v7299_v29 = vand.u32 4294901760, %v6882_v46 }
 0x190   :  { %1254 = vmatpush.msra.mxu1 %v7022_v13  ;;  %1361 = vmatpush.msrb.mxu2 %v1181_v30  ;;  %v502_v13 = vand.u32 4294901760, %v501_v27  ;;  %v7409_v30 = vand.u32 4294901760, %v1032_v43  ;;  %v7452_v27 = vand.u32 4294901760, %v1030_v48 }
 0x191   :  { %1208 = vmatpush.msra.mxu0 %v7083_v54  ;;  %1394 = vmatpush.msrb.mxu3 %v7172_v57  ;;  %v1074_v54 = vand.u32 4294901760, %v7291_v40 }
 0x192   :  { %495 = vmatmul.f32.gmra.mxu2 %v494_v20  ;;  %549 = vmatmul.f32.gmra.mxu3 %v7177_v59  ;;  %v7441_v56 = vsub.f32 %v1032_v43, %v7409_v30  ;;  %v1029_v20 = vld [vmem:[%s9874_s1 + $0xa8] sm:$0xff] }
 0x193   :  { %676 = vmatmul.f32.gmra.mxu1 %v492_v0  ;;  %1211 = vmatpush.msra.mxu0 %v7099_v63 }
 0x194   :  { %611 = vmatmul.f32.gmra.mxu0 %v491_v24  ;;  %1256 = vmatpush.msra.mxu1 %v7033_v21  ;;  %v1075_v21 = vsub.f32 %v7291_v40, %v1074_v54 }
 0x195   :  { %1214 = vmatpush.msra.mxu0 %v7115_v17  ;;  %1396 = vmatpush.msrb.mxu3 %v7185_v1 }
 0x196   :  { %1258 = vmatpush.msra.mxu1 %v7041_v26  ;;  %v7313_v26 = vsub.f32 %v6882_v46, %v7299_v29  ;;  %v1076_v63 = vand.u32 4294901760, %v1075_v21 }
 0x197   :  { %1217 = vmatpush.msra.mxu0 %v7130_v12  ;;  %1398 = vmatpush.msrb.mxu3 %v7203_v4 }
 0x198   :  { %1260 = vmatpush.msra.mxu1 %v7053_v36  ;;  %v1039_v36 = vld [vmem:[%s9874_s1 + $0xf8] sm:$0xff]  ;;  %v1082_v17 = vand.u32 4294901760, %v7313_v26 }
 0x199   :  { %1220 = vmatpush.msra.mxu0 %v7143_v33  ;;  %1400 = vmatpush.msrb.mxu3 %v7220_v42  ;;  %v7328_v12 = vand.u32 4294901760, %v1039_v36 }
 0x19a   :  { %503 = vmatmul.f32.gmra.mxu2 %v502_v13  ;;  %553 = vmatmul.f32.gmra.mxu3 %v7235_v60  ;;  %v1499_v13 = vand.u32 4294901760, %v7426_v8 }
 0x19b   :  { %682 = vmatmul.f32.gmra.mxu1 %v500_v32  ;;  %1223 = vmatpush.msra.mxu0 %v7162_v28  ;;  %v7346_v28 = vsub.f32 %v1039_v36, %v7328_v12 }
 0x19c   :  { %616 = vmatmul.f32.gmra.mxu0 %v499_v11  ;;  %1262 = vmatpush.msra.mxu1 %v7068_v53  ;;  %v1038_v53 = vld [vmem:[%s9874_s1 + $0xf0] sm:$0xff]  ;;  %v7436_v11 = vand.u32 4294901760, %v1031_v38 }
 0x19d   :  { %1226 = vmatpush.msra.mxu0 %v7175_v58  ;;  %1402 = vmatpush.msrb.mxu3 %v7232_v14  ;;  %v7337_v33 = vand.u32 4294901760, %v1038_v53 }
 0x19e   :  { %1264 = vmatpush.msra.mxu1 %v7080_v44  ;;  %v1037_v44 = vld [vmem:[%s9874_s1 + $0xe8] sm:$0xff]  ;;  %v7466_v36 = vsub.f32 %v1031_v38, %v7436_v11 }
 0x19f   :  { %1229 = vmatpush.msra.mxu0 %v7193_v5  ;;  %v7348_v58 = vand.u32 4294901760, %v1037_v44  ;;  %v1036_v5 = vld [vmem:[%s9874_s1 + $0xe0] sm:$0xff]  ;;  %v1025_v38 = vld [vmem:[%s9874_s1 + $0x88] sm:$0xff] }
 0x1a0   :  { %1266 = vmatpush.msra.mxu1 %v7096_v61  ;;  %v1083_v61 = vsub.f32 %v7313_v26, %v1082_v17  ;;  %v7364_v23 = vand.u32 4294901760, %v1036_v5  ;;  %v1511_v18 = vand.u32 4294901760, %v7466_v36 }
 0x1a1   :  { %1232 = vmatpush.msra.mxu0 %v7206_v22  ;;  %v1035_v22 = vld [vmem:[%s9874_s1 + $0xd8] sm:$0xff]  ;;  %v7369_v55 = vsub.f32 %v1037_v44, %v7348_v58 }
 0x1a2   :  { %557 = vmatmul.f32.gmra.mxu3 %v7266_v10  ;;  %706 = vmatmul.f32.vlgmr.msra.gmra.mxu2 %v6996_v49  ;;  %v7387_v24 = vsub.f32 %v1036_v5, %v7364_v23 }
 0x1a3   :  { %1268 = vmatpush.msra.mxu1 %v7111_v16  ;;  %1235 = vmatpush.msra.mxu0 %v7226_v37  ;;  %v7356_v16 = vsub.f32 %v1038_v53, %v7337_v33  ;;  %v1084_v37 = vand.u32 4294901760, %v1083_v61  ;;  %v7468_v53 = vand.u32 4294901760, %v1029_v20  ;;  %v7480_v61 = vsub.f32 %v1030_v48, %v7452_v27 }
 0x1a4   :  { %1077 = vmatmul.f32.vlgmr.msrb.gmra.mxu0 %v1076_v63  ;;  %1186 = vmatmul.f32.vlgmr.msrb.gmra.mxu1 %v7282_v35  ;;  %v1505_v63 = vand.u32 4294901760, %v7441_v56 }
 0x1a5   :  { %1270 = vmatpush.msra.mxu1 %v7123_v2  ;;  %1238 = vmatpush.msra.mxu0 %v7239_v6  ;;  %v1463_v2 = vand.u32 4294901760, %v7346_v28  ;;  %v1034_v6 = vld [vmem:[%s9874_s1 + $0xd0] sm:$0xff]  ;;  %v7495_v43 = vsub.f32 %v1029_v20, %v7468_v53  ;;  %v1024_v20 = vld [vmem:[%s9874_s1 + $0x80] sm:$0xff] }
 0x1a6   :  { %1568 = vmatpush.msra.mxu2 %v7346_v28 }
 0x1a7   :  { %1272 = vmatpush.msra.mxu1 %v7140_v31  ;;  %1241 = vmatpush.msra.mxu0 %v7249_v19  ;;  %v7376_v31 = vand.u32 4294901760, %v1035_v22  ;;  %v1469_v19 = vand.u32 4294901760, %v7356_v16 }
 0x1a8   :  { %1571 = vmatpush.msra.mxu2 %v7356_v16 }
 0x1a9   :  { %1413 = vmatpush.msrb.mxu0 %v7328_v12  ;;  %1274 = vmatpush.msra.mxu1 %v7159_v52  ;;  %v7389_v52 = vand.u32 4294901760, %v1034_v6  ;;  %v7404_v9 = vsub.f32 %v1035_v22, %v7376_v31  ;;  %v1470_v3 = vsub.f32 %v7356_v16, %v1469_v19  ;;  %v1500_v22 = vsub.f32 %v7426_v8, %v1499_v13 }
 0x1aa   :  { %710 = vmatmul.f32.gmra.mxu2 %v7003_v62  ;;  %756 = vmatmul.f32.vlgmr.msra.gmra.mxu3 %v6996_v49  ;;  %v1464_v49 = vsub.f32 %v7346_v28, %v1463_v2 }
 0x1ab   :  { %1276 = vmatpush.msra.mxu1 %v7172_v57  ;;  %1415 = vmatpush.msrb.mxu0 %v7337_v33  ;;  %v1475_v57 = vand.u32 4294901760, %v7369_v55  ;;  %v7420_v0 = vsub.f32 %v1034_v6, %v7389_v52  ;;  %v1471_v34 = vand.u32 4294901760, %v1470_v3  ;;  %v1506_v3 = vsub.f32 %v7441_v56, %v1505_v63 }
 0x1ac   :  { %1085 = vmatmul.f32.gmra.mxu0 %v1084_v37  ;;  %1190 = vmatmul.f32.gmra.mxu1 %v7299_v29  ;;  %v1465_v41 = vand.u32 4294901760, %v1464_v49  ;;  %v1026_v37 = vld [vmem:[%s9874_s1 + $0x90] sm:$0xff] }
 0x1ad   :  { %1278 = vmatpush.msra.mxu1 %v7185_v1  ;;  %1417 = vmatpush.msrb.mxu0 %v7348_v58  ;;  %v1481_v1 = vand.u32 4294901760, %v7387_v24  ;;  %v1476_v25 = vsub.f32 %v7369_v55, %v1475_v57  ;;  %v1493_v32 = vand.u32 4294901760, %v7420_v0 }
 0x1ae   :  { %1574 = vmatpush.msra.mxu2 %v7369_v55  ;;  %1626 = vmatpush.msra.mxu3 %v7328_v12 }
 0x1af   :  { %1280 = vmatpush.msra.mxu1 %v7203_v4  ;;  %1419 = vmatpush.msrb.mxu0 %v7364_v23  ;;  %v1487_v4 = vand.u32 4294901760, %v7404_v9  ;;  %v1494_v44 = vsub.f32 %v7420_v0, %v1493_v32 }
 0x1b0   :  { %1577 = vmatpush.msra.mxu2 %v7387_v24  ;;  %1628 = vmatpush.msra.mxu3 %v7337_v33 }
 0x1b1   :  { %1282 = vmatpush.msra.mxu1 %v7220_v42  ;;  %1421 = vmatpush.msrb.mxu0 %v7376_v31  ;;  %v1482_v42 = vsub.f32 %v7387_v24, %v1481_v1  ;;  %v1488_v21 = vsub.f32 %v7404_v9, %v1487_v4 }
 0x1b2   :  { %714 = vmatmul.f32.gmra.mxu2 %v7012_v15  ;;  %760 = vmatmul.f32.gmra.mxu3 %v7003_v62  ;;  %v1477_v62 = vand.u32 4294901760, %v1476_v25  ;;  %v1517_v25 = vand.u32 4294901760, %v7480_v61 }
 0x1b3   :  { %1284 = vmatpush.msra.mxu1 %v7232_v14  ;;  %1423 = vmatpush.msrb.mxu0 %v7389_v52  ;;  %v1028_v14 = vld [vmem:[%s9874_s1 + $0xa0] sm:$0xff]  ;;  %v1489_v6 = vand.u32 4294901760, %v1488_v21  ;;  %v7528_v21 = vand.u32 4294901760, %v1025_v38 }
 0x1b4   :  { %1244 = vmatmul.f32.vlgmr.msra.gmra.mxu0 %v7291_v40  ;;  %1288 = vmatmul.f32.vlgmr.msra.gmra.mxu1 %v1074_v54  ;;  %v1027_v40 = vld [vmem:[%s9874_s1 + $0x98] sm:$0xff]  ;;  %v1483_v54 = vand.u32 4294901760, %v1482_v42  ;;  %v7482_v5 = vand.u32 4294901760, %v1028_v14  ;;  %v1512_v42 = vsub.f32 %v7466_v36, %v1511_v18 }
 0x1b5   :  { %1466 = vmatpush.msrb.mxu1 %v1465_v41  ;;  %1425 = vmatpush.msrb.mxu0 %v7399_v45  ;;  %v7497_v49 = vand.u32 4294901760, %v1027_v40  ;;  %v1495_v41 = vand.u32 4294901760, %v1494_v44  ;;  %v1518_v44 = vsub.f32 %v7480_v61, %v1517_v25 }
 0x1b6   :  { %1580 = vmatpush.msra.mxu2 %v7404_v9  ;;  %1630 = vmatpush.msra.mxu3 %v7348_v58  ;;  %v7511_v48 = vsub.f32 %v1028_v14, %v7482_v5 }
 0x1b7   :  { %1472 = vmatpush.msrb.mxu1 %v1471_v34  ;;  %1427 = vmatpush.msrb.mxu0 %v7409_v30  ;;  %v7513_v34 = vand.u32 4294901760, %v1026_v37  ;;  %v7526_v14 = vsub.f32 %v1027_v40, %v7497_v49 }
 0x1b8   :  { %1583 = vmatpush.msra.mxu2 %v7420_v0  ;;  %1632 = vmatpush.msra.mxu3 %v7364_v23 }
 0x1b9   :  { %1478 = vmatpush.msrb.mxu1 %v1477_v62  ;;  %1429 = vmatpush.msrb.mxu0 %v7436_v11  ;;  %v9879_v62 = vand.u32 4294901760, %v7495_v43  ;;  %v7539_v40 = vsub.f32 %v1026_v37, %v7513_v34  ;;  %v1519_v37 = vand.u32 4294901760, %v1518_v44 }
 0x1ba   :  { %718 = vmatmul.f32.gmra.mxu2 %v7055_v39  ;;  %764 = vmatmul.f32.gmra.mxu3 %v7012_v15  ;;  %v1501_v15 = vand.u32 4294901760, %v1500_v22  ;;  %v9880_v22 = vand.u32 4294901760, %v7511_v48 }
 0x1bb   :  { %1484 = vmatpush.msrb.mxu1 %v1483_v54  ;;  %1431 = vmatpush.msrb.mxu0 %v7452_v27  ;;  %v1507_v54 = vand.u32 4294901760, %v1506_v3  ;;  %v1535_v3 = vand.u32 4294901760, %v7526_v14 }
 0x1bc   :  { %1249 = vmatmul.f32.gmra.mxu0 %v7313_v26  ;;  %1586 = vmatpush.msra.mxu2 %v7426_v8  ;;  %v1513_v26 = vand.u32 4294901760, %v1512_v42  ;;  %v1541_v42 = vand.u32 4294901760, %v7539_v40 }
 0x1bd   :  { %1490 = vmatpush.msrb.mxu1 %v1489_v6  ;;  %1433 = vmatpush.msrb.mxu0 %v7468_v53  ;;  %v7541_v6 = vand.u32 4294901760, %v1024_v20 }
 0x1be   :  { %1294 = vmatmul.f32.gmra.mxu1 %v1082_v17  ;;  %1589 = vmatpush.msra.mxu2 %v7441_v56  ;;  %v1524_v17 = vsub.f32 %v7495_v43, %v9879_v62 }
 0x1bf   :  { %1496 = vmatpush.msrb.mxu1 %v1495_v41  ;;  %1435 = vmatpush.msrb.mxu0 %v7482_v5  ;;  %v7551_v41 = vsub.f32 %v1025_v38, %v7528_v21  ;;  %v7561_v62 = vsub.f32 %v1024_v20, %v7541_v6  ;;  %v7566_v38 = vand.u32 4294901760, %v6888_v51 }
 0x1c0   :  { %1592 = vmatpush.msra.mxu2 %v7466_v36  ;;  %1634 = vmatpush.msra.mxu3 %v7376_v31 }
 0x1c1   :  { %1502 = vmatpush.msrb.mxu1 %v1501_v15  ;;  %1437 = vmatpush.msrb.mxu0 %v7497_v49  ;;  %v1530_v15 = vsub.f32 %v7511_v48, %v9880_v22  ;;  %v1547_v44 = vand.u32 4294901760, %v7551_v41  ;;  %v1542_v22 = vsub.f32 %v7539_v40, %v1541_v42 }
 0x1c2   :  { %722 = vmatmul.f32.gmra.mxu2 %v7106_v7  ;;  %768 = vmatmul.f32.gmra.mxu3 %v7055_v39  ;;  %v1525_v39 = vand.u32 4294901760, %v1524_v17  ;;  %v7585_v17 = vsub.f32 %v6888_v51, %v7566_v38 }
 0x1c3   :  { %1508 = vmatpush.msrb.mxu1 %v1507_v54  ;;  %1439 = vmatpush.msrb.mxu0 %v7513_v34  ;;  %v1536_v54 = vsub.f32 %v7526_v14, %v1535_v3  ;;  %v1531_v20 = vand.u32 4294901760, %v1530_v15  ;;  %v1548_v15 = vsub.f32 %v7551_v41, %v1547_v44  ;;  %v1543_v28 = vand.u32 4294901760, %v1542_v22 }
 0x1c4   :  { %1595 = vmatpush.msra.mxu2 %v7480_v61  ;;  %1636 = vmatpush.msra.mxu3 %v7389_v52  ;;  %v7606_v22 = vand.u32 4294901760, %v6884_v47 }
 0x1c5   :  { %1514 = vmatpush.msrb.mxu1 %v1513_v26  ;;  %1441 = vmatpush.msrb.mxu0 %v7528_v21  ;;  %v1553_v26 = vand.u32 4294901760, %v7561_v62 }
 0x1c6   :  { %1598 = vmatpush.msra.mxu2 %v7495_v43  ;;  %1638 = vmatpush.msra.mxu3 %v7399_v45  ;;  %v7623_v24 = vsub.f32 %v6884_v47, %v7606_v22 }
 0x1c7   :  { %1520 = vmatpush.msrb.mxu1 %v1519_v37  ;;  %1443 = vmatpush.msrb.mxu0 %v7541_v6  ;;  %v1537_v37 = vand.u32 4294901760, %v1536_v54 }
 0x1c8   :  { %1601 = vmatpush.msra.mxu2 %v7511_v48  ;;  %1640 = vmatpush.msra.mxu3 %v7409_v30 }
 0x1c9   :  { %1673 = vmatpush.msra.mxu0 %v1463_v2  ;;  %1526 = vmatpush.msrb.mxu1 %v1525_v39  ;;  %v1554_v2 = vsub.f32 %v7561_v62, %v1553_v26  ;;  %v1549_v39 = vand.u32 4294901760, %v1548_v15 }
 0x1ca   :  { %726 = vmatmul.f32.gmra.mxu2 %v7177_v59  ;;  %772 = vmatmul.f32.gmra.mxu3 %v7106_v7  ;;  %v1446_v7 = vand.u32 4294901760, %v7585_v17 }
 0x1cb   :  { %1532 = vmatpush.msrb.mxu1 %v1531_v20  ;;  %1677 = vmatpush.msra.mxu0 %v1469_v19  ;;  %v1555_v16 = vand.u32 4294901760, %v1554_v2 }
 0x1cc   :  { %1604 = vmatpush.msra.mxu2 %v7526_v14  ;;  %1642 = vmatpush.msra.mxu3 %v7436_v11  ;;  %v1447_v19 = vsub.f32 %v7585_v17, %v1446_v7 }
 0x1cd   :  { %1538 = vmatpush.msrb.mxu1 %v1537_v37  ;;  %1681 = vmatpush.msra.mxu0 %v1475_v57 }
 0x1ce   :  { %1607 = vmatpush.msra.mxu2 %v7539_v40  ;;  %1644 = vmatpush.msra.mxu3 %v7452_v27  ;;  %v1448_v55 = vand.u32 4294901760, %v1447_v19 }
 0x1cf   :  { %1544 = vmatpush.msrb.mxu1 %v1543_v28  ;;  %1685 = vmatpush.msra.mxu0 %v1481_v1 }
 0x1d0   :  { %1610 = vmatpush.msra.mxu2 %v7551_v41  ;;  %1646 = vmatpush.msra.mxu3 %v7468_v53 }
 0x1d1   :  { %1550 = vmatpush.msrb.mxu1 %v1549_v39  ;;  %1689 = vmatpush.msra.mxu0 %v1487_v4 }
 0x1d2   :  { %730 = vmatmul.f32.gmra.mxu2 %v7235_v60  ;;  %776 = vmatmul.f32.gmra.mxu3 %v7177_v59  ;;  %v1454_v59 = vand.u32 4294901760, %v7623_v24 }
 0x1d3   :  { %1556 = vmatpush.msrb.mxu1 %v1555_v16  ;;  %1693 = vmatpush.msra.mxu0 %v1493_v32 }
 0x1d4   :  { %1613 = vmatpush.msra.mxu2 %v7561_v62  ;;  %1648 = vmatpush.msra.mxu3 %v7482_v5 }
 0x1d5   :  { %1744 = vmatpush.msra.mxu1 %v7328_v12  ;;  %1697 = vmatpush.msra.mxu0 %v1499_v13  ;;  %v1455_v12 = vsub.f32 %v7623_v24, %v1454_v59 }
 0x1d6   :  { %1449 = vmatmul.f32.vlgmr.msrb.gmra.mxu0 %v1448_v55  ;;  %1650 = vmatpush.msra.mxu3 %v7497_v49 }
 0x1d7   :  { %1746 = vmatpush.msra.mxu1 %v7337_v33  ;;  %1701 = vmatpush.msra.mxu0 %v1505_v63  ;;  %v1456_v33 = vand.u32 4294901760, %v1455_v12 }
 0x1d8   :  { %1558 = vmatmul.f32.vlgmr.msrb.gmra.mxu1 %v7566_v38  ;;  %1652 = vmatpush.msra.mxu3 %v7513_v34 }
 0x1d9   :  { %1748 = vmatpush.msra.mxu1 %v7348_v58  ;;  %1705 = vmatpush.msra.mxu0 %v1511_v18  ;;  %v9918_v58 = vand.u32 4294901760, %v7495_v43 }
 0x1da   :  { %734 = vmatmul.f32.gmra.mxu2 %v7266_v10  ;;  %780 = vmatmul.f32.gmra.mxu3 %v7235_v60  ;;  %v9919_v60 = vand.u32 4294901760, %v7511_v48 }
 0x1db   :  { %1750 = vmatpush.msra.mxu1 %v7364_v23  ;;  %1709 = vmatpush.msra.mxu0 %v1517_v25 }
 0x1dc   :  { %1654 = vmatpush.msra.mxu3 %v7528_v21 }
 0x1dd   :  { %1752 = vmatpush.msra.mxu1 %v7376_v31  ;;  %1713 = vmatpush.msra.mxu0 %v9918_v58 }
 0x1de   :  { %1656 = vmatpush.msra.mxu3 %v7541_v6  ;;  %1457 = vmatmul.f32.gmra.mxu0 %v1456_v33 }
 0x1df   :  { %1754 = vmatpush.msra.mxu1 %v7389_v52  ;;  %1717 = vmatpush.msra.mxu0 %v9919_v60 }
 0x1e0   :  { %1562 = vmatmul.f32.gmra.mxu1 %v7606_v22 }
 0x1e1   :  { %1756 = vmatpush.msra.mxu1 %v7399_v45  ;;  %1721 = vmatpush.msra.mxu0 %v1535_v3  ;;  %v7694_v45 = vpop.f32.mrf.mxu1 }
 0x1e2   :  { %784 = vmatmul.f32.gmra.mxu3 %v7266_v10  ;;  %1363 = vmatmul.f32.vlgmr.msrb.gmra.mxu2 %v7282_v35 }
 0x1e3   :  { %1758 = vmatpush.msra.mxu1 %v7409_v30  ;;  %1725 = vmatpush.msra.mxu0 %v1541_v42 }
 0x1e5   :  { %v7661_v23 = vpop.f32.mrf.mxu2  ;;  %1760 = vmatpush.msra.mxu1 %v7436_v11  ;;  %1729 = vmatpush.msra.mxu0 %v1547_v44 }
 0x1e7   :  { %1762 = vmatpush.msra.mxu1 %v7452_v27  ;;  %1733 = vmatpush.msra.mxu0 %v1553_v26 }
 0x1e8   :  { %1735 = vmatmul.f32.vlgmr.msra.gmra.mxu0 %v7566_v38 }
 0x1e9   :  { %1764 = vmatpush.msra.mxu1 %v7468_v53  ;;  %v7706_v1 = vpop.f32.mrf.mxu1 }
 0x1ea   :  { %1367 = vmatmul.f32.gmra.mxu2 %v7299_v29  ;;  %1404 = vmatmul.f32.vlgmr.msrb.gmra.mxu3 %v7282_v35  ;;  %v7687_v35 = vpop.f32.mrf.mxu0  ;;  %9925 = vst [vmem:[#allocation15_spill] sm:$0xff] %v7706_v1 }
 0x1eb   :  { %1766 = vmatpush.msra.mxu1 %v7482_v5 }
 0x1ed   :  { %v7676_v10 = vpop.f32.mrf.mxu2  ;;  %v7678_v31 = vpop.f32.mrf.mxu3  ;;  %1768 = vmatpush.msra.mxu1 %v7497_v49 }
 0x1ee   :  { %9920 = vst [vmem:[#allocation10_spill] sm:$0xff] %v7676_v10 }
 0x1ef   :  { %1770 = vmatpush.msra.mxu1 %v7513_v34 }
 0x1f0   :  { %1739 = vmatmul.f32.gmra.mxu0 %v7606_v22 }
 0x1f1   :  { %1772 = vmatpush.msra.mxu1 %v7528_v21  ;;  %v7714_v11 = vpop.f32.mrf.mxu1 }
 0x1f2   :  { %1408 = vmatmul.f32.gmra.mxu3 %v7299_v29  ;;  %1616 = vmatmul.f32.vlgmr.msra.gmra.mxu2 %v7585_v17  ;;  %v7704_v30 = vpop.f32.mrf.mxu0  ;;  %9928 = vst [vmem:[#allocation18_spill] sm:$0xff] %v7714_v11 }
 0x1f3   :  { %1774 = vmatpush.msra.mxu1 %v7541_v6  ;;  %9924 = vst [vmem:[#allocation14_spill] sm:$0xff] %v7704_v30 }
 0x1f4   :  { %1776 = vmatmul.f32.vlgmr.msra.gmra.mxu1 %v7566_v38 }
 0x1f5   :  { %v7690_v52 = vpop.f32.mrf.mxu2  ;;  %v7692_v57 = vpop.f32.mrf.mxu3 }
 0x1f6   :  { %9921 = vst [vmem:[#allocation11_spill] sm:$0xff] %v7690_v52 }
 0x1f7   :  { %9922 = vst [vmem:[#allocation12_spill] sm:$0xff] %v7692_v57 }
 0x1f9   :  { %v7722_v13 = vpop.f32.mrf.mxu1 }
 0x1fa   :  { %1621 = vmatmul.f32.gmra.mxu2 %v7623_v24  ;;  %1660 = vmatmul.f32.vlgmr.msra.gmra.mxu3 %v1446_v7  ;;  %v7712_v4 = vpop.f32.mrf.mxu0 }
 0x1fb   :  { %9927 = vst [vmem:[#allocation17_spill] sm:$0xff] %v7712_v4 }
 0x1fc   :  { %1780 = vmatmul.f32.gmra.mxu1 %v7606_v22 }
 0x1fd   :  { %v7700_v29 = vpop.f32.mrf.mxu2  ;;  %v7702_v9 = vpop.f32.mrf.mxu3 }
 0x1fe   :  { %9923 = vst [vmem:[#allocation13_spill] sm:$0xff] %v7702_v9 }
 0x201   :  { %v7734_v18 = vpop.f32.mrf.mxu1 }
 0x202   :  { %1666 = vmatmul.f32.gmra.mxu3 %v1454_v59  ;;  %v7720_v27 = vpop.f32.mrf.mxu0  ;;  %9934 = vst [vmem:[#allocation24_spill] sm:$0xff] %v7734_v18 }
 0x205   :  { %v7708_v0 = vpop.f32.mrf.mxu2  ;;  %v7710_v8 = vpop.f32.mrf.mxu3 }
 0x206   :  { %9926 = vst [vmem:[#allocation16_spill] sm:$0xff] %v7708_v0 }
 0x209   :  { %v7742_v48 = vpop.f32.mrf.mxu1 }
 0x20a   :  { %v7728_v63 = vpop.f32.mrf.mxu0  ;;  %9937 = vst [vmem:[#allocation27_spill] sm:$0xff] %v7742_v48 }
 0x20b   :  { %9932 = vst [vmem:[#allocation22_spill] sm:$0xff] %v7728_v63 }
 0x20d   :  { %v7716_v56 = vpop.f32.mrf.mxu2  ;;  %v7718_v32 = vpop.f32.mrf.mxu3 }
 0x20e   :  { %9929 = vst [vmem:[#allocation19_spill] sm:$0xff] %v7716_v56 }
 0x20f   :  { %9930 = vst [vmem:[#allocation20_spill] sm:$0xff] %v7718_v32 }
 0x211   :  { %v7750_v21 = vpop.f32.mrf.mxu1 }
 0x212   :  { %v7740_v25 = vpop.f32.mrf.mxu0 }
 0x213   :  { %9936 = vst [vmem:[#allocation26_spill] sm:$0xff] %v7740_v25 }
 0x215   :  { %v7724_v36 = vpop.f32.mrf.mxu2  ;;  %v7726_v53 = vpop.f32.mrf.mxu3 }
 0x216   :  { %9931 = vst [vmem:[#allocation21_spill] sm:$0xff] %v7726_v53 }
 0x219   :  { %v7758_v41 = vpop.f32.mrf.mxu1 }
 0x21a   :  { %v7748_v14 = vpop.f32.mrf.mxu0  ;;  %9942 = vst [vmem:[#allocation32_spill] sm:$0xff] %v7758_v41 }
 0x21d   :  { %v7730_v61 = vpop.f32.mrf.mxu2  ;;  %v7732_v5 = vpop.f32.mrf.mxu3 }
 0x21e   :  { %9933 = vst [vmem:[#allocation23_spill] sm:$0xff] %v7730_v61 }
 0x221   :  { %v1187_v44 = vpop.f32.mrf.mxu1 }
 0x222   :  { %v7756_v3 = vpop.f32.mrf.mxu0 }
 0x223   :  { %9941 = vst [vmem:[#allocation31_spill] sm:$0xff] %v7756_v3 }
 0x225   :  { %v7736_v43 = vpop.f32.mrf.mxu3  ;;  %v7738_v49 = vpop.f32.mrf.mxu2 }
 0x226   :  { %9935 = vst [vmem:[#allocation25_spill] sm:$0xff] %v7736_v43 }
 0x229   :  { %v1191_v28 = vpop.f32.mrf.mxu1 }
 0x22a   :  { %v1078_v54 = vpop.f32.mrf.mxu0 }
 0x22b   :  { %v1188_v33 = vadd.f32 %v1187_v44, %v1078_v54  ;;  %v7785_v54 = vld [vmem:[%s9875_s2 + $0xd0] sm:$0xff] }
 0x22d   :  { %v7744_v34 = vpop.f32.mrf.mxu2  ;;  %v7746_v62 = vpop.f32.mrf.mxu3 }
 0x22e   :  { %9938 = vst [vmem:[#allocation28_spill] sm:$0xff] %v7744_v34 }
 0x231   :  { %v1289_v22 = vpop.f32.mrf.mxu1 }
 0x232   :  { %v1086_v17 = vpop.f32.mrf.mxu0 }
 0x233   :  { %v1192_v46 = vadd.f32 %v1191_v28, %v1086_v17 }
 0x235   :  { %v7752_v40 = vpop.f32.mrf.mxu2  ;;  %v7754_v6 = vpop.f32.mrf.mxu3 }
 0x236   :  { %9939 = vst [vmem:[#allocation29_spill] sm:$0xff] %v7752_v40 }
 0x237   :  { %9940 = vst [vmem:[#allocation30_spill] sm:$0xff] %v7754_v6 }
 0x23a   :  { %v1245_v7 = vpop.f32.mrf.mxu0 }
 0x23b   :  { %v1295_v24 = vpop.f32.mrf.mxu1  ;;  %v1246_v51 = vadd.f32 %v1245_v7, %v1188_v33 }
 0x23d   :  { %v7760_v42 = vpop.f32.mrf.mxu2  ;;  %v7762_v38 = vpop.f32.mrf.mxu3 }
 0x23e   :  { %9943 = vst [vmem:[#allocation33_spill] sm:$0xff] %v7762_v38 }
 0x242   :  { %v1250_v55 = vpop.f32.mrf.mxu0 }
 0x243   :  { %v1251_v38 = vadd.f32 %v1250_v55, %v1192_v46 }
 0x245   :  { %v7764_v20 = vpop.f32.mrf.mxu2  ;;  %v7766_v26 = vpop.f32.mrf.mxu3  ;;  %v1296_v56 = vadd.f32 %v1295_v24, %v1251_v38 }
 0x246   :  { %9944 = vst [vmem:[#allocation34_spill] sm:$0xff] %v7764_v20 }
 0x24d   :  { %v7768_v37 = vpop.f32.mrf.mxu2  ;;  %v7770_v15 = vpop.f32.mrf.mxu3 }
 0x24e   :  { %9945 = vst [vmem:[#allocation35_spill] sm:$0xff] %v7768_v37  ;;  %v1290_v37 = vadd.f32 %v1289_v22, %v1246_v51  ;;  %v1791_v51 = vsel %vm1790_vm9, %v7785_v54, 0 }
 0x24f   :  { %9946 = vst [vmem:[#allocation36_spill] sm:$0xff] %v7770_v15 }
 0x253   :  { %v1450_v58 = vpop.f32.mrf.mxu0 }
 0x255   :  { %v7772_v2 = vpop.f32.mrf.mxu2  ;;  %v7774_v39 = vpop.f32.mrf.mxu3 }
 0x256   :  { %9947 = vst [vmem:[#allocation37_spill] sm:$0xff] %v7774_v39  ;;  %v1559_v60 = vpop.f32.mrf.mxu1 }
 0x25b   :  { %v1458_v48 = vpop.f32.mrf.mxu0 }
 0x25d   :  { %v7776_v16 = vpop.f32.mrf.mxu2  ;;  %v7778_v19 = vpop.f32.mrf.mxu3 }
 0x25e   :  { %9948 = vst [vmem:[#allocation38_spill] sm:$0xff] %v7776_v16  ;;  %v1563_v40 = vpop.f32.mrf.mxu1 }
 0x265   :  { %v7780_v59 = vpop.f32.mrf.mxu3  ;;  %v1364_v12 = vpop.f32.mrf.mxu2 }
 0x266   :  { %9949 = vst [vmem:[#allocation39_spill] sm:$0xff] %v7780_v59  ;;  %v1365_v39 = vadd.f32 %v1364_v12, %v1290_v37  ;;  %v1736_v17 = vpop.f32.mrf.mxu0 }
 0x26d   :  { %v1368_v50 = vpop.f32.mrf.mxu2  ;;  %v1405_v47 = vpop.f32.mrf.mxu3 }
 0x26e   :  { %v1406_v25 = vadd.f32 %v1405_v47, %v1365_v39  ;;  %v1369_v9 = vadd.f32 %v1368_v50, %v1296_v56 }
 0x270   :  { %v1451_v11 = vadd.f32 %v1450_v58, %v1406_v25  ;;  %v7789_v25 = vand.u32 4294901760, %v1791_v51 }
 0x271   :  { %v1777_v37 = vpop.f32.mrf.mxu1 }
 0x272   :  { %v1560_v44 = vadd.f32 %v1559_v60, %v1451_v11  ;;  %9950 = vst [vmem:[#allocation40_spill] sm:$0xff] %v7789_v25  ;;  %v7792_v55 = vsub.f32 %v1791_v51, %v7789_v25  ;;  %v6778_v11 = vmov 16  }
 0x273   :  { %6639 = vset.pattern.permute.xlu1 %v6778_v11 }
 0x274   :  { %9951 = vst [vmem:[#allocation41_spill] sm:$0xff] %v7792_v55  ;;  %1787 = vperm.xlu1 %6639, %v7785_v54   ;;  %v7797_v12 = vand.u32 4294901760, %v7792_v55 }
 0x275   :  { %v1409_v53 = vpop.f32.mrf.mxu3  ;;  %v1617_v4 = vpop.f32.mrf.mxu2 }
 0x276   :  { %v1410_v7 = vadd.f32 %v1409_v53, %v1369_v9  ;;  %v1618_v46 = vadd.f32 %v1617_v4, %v1560_v44  ;;  %v1740_v53 = vpop.f32.mrf.mxu0  ;;  %9952 = vst [vmem:[#allocation42_spill] sm:$0xff] %v7797_v12  ;;  %v1814_v44 = vsub.f32 %v7792_v55, %v7797_v12 }
 0x278   :  { %v1459_v28 = vadd.f32 %v1458_v48, %v1410_v7  ;;  %v7801_v51 = vand.u32 4294901760, %v1814_v44 }
 0x279   :  { %v1781_v33 = vpop.f32.mrf.mxu1 }
 0x27a   :  { %v1564_v39 = vadd.f32 %v1563_v40, %v1459_v28  ;;  %9953 = vst [vmem:[#allocation43_spill] sm:$0xff] %v7801_v51 }
 0x27d   :  { %v1661_v47 = vpop.f32.mrf.mxu3  ;;  %v1622_v56 = vpop.f32.mrf.mxu2 }
 0x27e   :  { %v1662_v38 = vadd.f32 %v1661_v47, %v1618_v46  ;;  %v1623_v9 = vadd.f32 %v1622_v56, %v1564_v39 }
 0x280   :  { %v1737_v50 = vadd.f32 %v1736_v17, %v1662_v38 }
 0x282   :  { %v1778_v22 = vadd.f32 %v1777_v37, %v1737_v50 }
 0x284   :  { %v1809_v24 = vand.u32 4294901760, %v1778_v22 }
 0x285   :  { %v1667_v4 = vpop.f32.mrf.mxu3 }
 0x286   :  { %v1668_v48 = vadd.f32 %v1667_v4, %v1623_v9  ;;  %v1841_v40 = vsub.f32 %v1778_v22, %v1809_v24 }
 0x288   :  { %v1741_v58 = vadd.f32 %v1740_v53, %v1668_v48  ;;  %v1842_v46 = vand.u32 4294901760, %v1841_v40  ;;  %v7812_v48 = vld [vmem:[%s9875_s2 + $0xe0] sm:$0xff] }
 0x289   :  { %2159 = vrot.lane.b32.xlu2 %v7812_v48, %s6779_s24 }
 0x28a   :  { %v1782_v60 = vadd.f32 %v1781_v33, %v1741_v58  ;;  %v1843_v28 = vsub.f32 %v1841_v40, %v1842_v46  ;;  %v1970_v33 = vsel %vm1969_vm10, %v7812_v48, 0 }
 0x28c   :  { %v1807_v7 = vand.u32 4294901760, %v1782_v60  ;;  %v1844_v50 = vand.u32 4294901760, %v1843_v28 }
 0x28e   :  { %v1835_v17 = vsub.f32 %v1782_v60, %v1807_v7  ;;  %1808 = vmatpush.msrb.mxu2 %v1807_v7  ;;  %1944 = vmatpush.msrb.mxu1 %v1807_v7  ;;  %v1991_v60 = vand.u32 4294901760, %v1970_v33 }
 0x290   :  { %1810 = vmatpush.msrb.mxu2 %v1809_v24  ;;  %1946 = vmatpush.msrb.mxu1 %v1809_v24  ;;  %v1836_v47 = vand.u32 4294901760, %v1835_v17 }
 0x291   :  { %1948 = vmatmul.f32.vlgmr.msrb.gmra.mxu1 %v7789_v25  ;;  %1816 = vmatmul.f32.vlgmr.msrb.gmra.mxu2 %v7801_v51 }
 0x292   :  { %1867 = vmatpush.msra.mxu2 %v1835_v17  ;;  %1919 = vmatpush.msrb.mxu0 %v1836_v47  ;;  %v1837_v37 = vsub.f32 %v1835_v17, %v1836_v47  ;;  %v7821_v17 = vld [vmem:[%s9875_s2 + $0xf0] sm:$0xff]  ;;  %v1992_v47 = vsub.f32 %v1970_v33, %v1991_v60 }
 0x293   :  { %v1972_v28 = vsel %vm1969_vm10, %v7821_v17, 0  ;;  %2161 = vrot.lane.b32.xlu2 %v7821_v17, %s6779_s24 }
 0x294   :  { %1870 = vmatpush.msra.mxu2 %v1841_v40  ;;  %1923 = vmatpush.msrb.mxu0 %v1842_v46  ;;  %v1838_v38 = vand.u32 4294901760, %v1837_v37 }
 0x295   :  { %1925 = vmatmul.f32.vlgmr.msrb.gmra.mxu0 %v7789_v25 }
 0x296   :  { %1839 = vmatpush.msrb.mxu3 %v1838_v38 }
 0x298   :  { %1845 = vmatpush.msrb.mxu3 %v1844_v50  ;;  %v1993_v50 = vand.u32 4294901760, %v1992_v47 }
 0x299   :  { %1847 = vmatmul.f32.vlgmr.msrb.gmra.mxu3 %v7789_v25  ;;  %1873 = vmatmul.f32.vlgmr.msra.gmra.mxu2 %v7792_v55 }
 0x29a   :  { %1892 = vmatpush.msra.mxu3 %v1807_v7 }
 0x29c   :  { %1894 = vmatpush.msra.mxu3 %v1809_v24 }
 0x2a1   :  { %1898 = vmatmul.f32.vlgmr.msra.gmra.mxu3 %v7797_v12 }
 0x2e6   :  { %v1788_v39 = vpop.permute.xlu1 %1787 }
 0x30e   :  { %v1949_v7 = vpop.f32.mrf.mxu1 }
 0x312   :  { %v1926_v40 = vpop.f32.mrf.mxu0 }
 0x314   :  { %v1817_v56 = vpop.f32.mrf.mxu2 }
 0x315   :  { %v1818_v22 = vadd.f32 %v1817_v56, %v1788_v39  ;;  %v7827_v56 = vand.u32 4294901760, %v1972_v28 }
 0x317   :  { %9954 = vst [vmem:[#allocation44_spill] sm:$0xff] %v7827_v56 }
 0x31c   :  { %v1848_v9 = vpop.f32.mrf.mxu3  ;;  %v1874_v53 = vpop.f32.mrf.mxu2 }
 0x31d   :  { %v1849_v4 = vadd.f32 %v1848_v9, %v1818_v22  ;;  %v1994_v9 = vsub.f32 %v1992_v47, %v1993_v50 }
 0x31f   :  { %v1875_v24 = vadd.f32 %v1874_v53, %v1849_v4  ;;  %v7830_v4 = vsub.f32 %v1972_v28, %v7827_v56  ;;  %v1995_v33 = vand.u32 4294901760, %v1994_v9 }
 0x321   :  { %9955 = vst [vmem:[#allocation45_spill] sm:$0xff] %v7830_v4 }
 0x324   :  { %v1899_v58 = vpop.f32.mrf.mxu3 }
 0x325   :  { %v1900_v44 = vadd.f32 %v1899_v58, %v1875_v24  ;;  %v7833_v58 = vand.u32 4294901760, %v7830_v4 }
 0x327   :  { %v1927_v46 = vadd.f32 %v1926_v40, %v1900_v44  ;;  %9956 = vst [vmem:[#allocation46_spill] sm:$0xff] %v7833_v58 }
 0x329   :  { %v1950_v37 = vadd.f32 %v1949_v7, %v1927_v46  ;;  %v2002_v7 = vsub.f32 %v7830_v4, %v7833_v58 }
 0x32b   :  { %v1952_v38 = vadd.f32 3.0, %v1950_v37  ;;  %v7838_v28 = vand.u32 4294901760, %v2002_v7 }
 0x32d   :  { %v1953_v39 = vmax.f32 %v1952_v38, 0.0  ;;  %9957 = vst [vmem:[#allocation47_spill] sm:$0xff] %v7838_v28 }
 0x32f   :  { %v1954_v22 = vmin.f32 %v1953_v39, 6.0  ;;  %v9885_v39 = vmov 8  }
 0x330   :  { %6642 = vset.pattern.permute.xlu2 %v9885_v39 }
 0x331   :  { %v1955_v53 = vmul.f32 0.16666667, %v1954_v22  ;;  %1961 = vperm.xlu2 %6642, %v7812_v48  }
 0x333   :  { %v1956_v24 = vmul.f32 %v1955_v53, %v1950_v37 }
 0x335   :  { %2164 = vrot.lane.b32.xlu0 %v1956_v24, %s6779_s24  ;;  %v1989_v40 = vand.u32 4294901760, %v1956_v24 }
 0x337   :  { %1990 = vmatpush.msrb.mxu2 %v1989_v40  ;;  %2083 = vmatpush.msra.mxu1 %v1989_v40  ;;  %v2024_v44 = vsub.f32 %v1956_v24, %v1989_v40 }
 0x338   :  { %1996 = vmatmul.f32.vlgmr.msrb.gmra.mxu2 %v1995_v33  ;;  %2087 = vmatmul.f32.vlgmr.msra.gmra.mxu1 %v1993_v50  ;;  %v2160_v50 = vpop.permute.xlu2 %2159 }
 0x339   :  { %2055 = vmatpush.msra.mxu0 %v2024_v44  ;;  %v2025_v46 = vand.u32 4294901760, %v2024_v44 }
 0x33a   :  { %2058 = vmatmul.f32.vlgmr.msra.gmra.mxu0 %v1992_v47  ;;  %v6780_v47 = vmov 24  }
 0x33b   :  { %2115 = vmatpush.msra.mxu2 %v2025_v46  ;;  %v2026_v37 = vsub.f32 %v2024_v44, %v2025_v46  ;;  %6640 = vset.pattern.permute.xlu1 %v6780_v47 }
 0x33c   :  { %6641 = vset.pattern.permute.xlu0 %v6780_v47  ;;  %2152 = vperm.xlu1 %6640, %v7812_v48  }
 0x33d   :  { %v2027_v38 = vand.u32 4294901760, %v2026_v37  ;;  %2156 = vperm.xlu0 %6641, %v7821_v17   ;;  %6646 = vset.pattern.permute.xlu2 %v6780_v47 }
 0x33f   :  { %2028 = vmatpush.msrb.mxu3 %v2027_v38 }
 0x340   :  { %2004 = vmatmul.f32.gmra.mxu2 %v7838_v28  ;;  %2030 = vmatmul.f32.vlgmr.msrb.gmra.mxu3 %v1991_v60  ;;  %v2162_v9 = vpop.permute.xlu2 %2161 }
 0x341   :  { %2141 = vmatpush.msra.mxu3 %v1989_v40  ;;  %2093 = vmatmul.f32.gmra.mxu1 %v7833_v58  ;;  %v2169_v24 = vsel %vm1969_vm10, %v2162_v9, 0 }
 0x342   :  { %2063 = vmatmul.f32.gmra.mxu0 %v7830_v4  ;;  %v2196_v33 = vand.u32 4294901760, %v2169_v24 }
 0x344   :  { %6643 = vset.pattern.permute.xlu1 %v9885_v39  ;;  %v2197_v44 = vsub.f32 %v2169_v24, %v2196_v33 }
 0x345   :  { %6644 = vset.pattern.permute.xlu0 %v6778_v11  ;;  %1966 = vperm.xlu1 %6643, %v7821_v17  }
 0x346   :  { %v2198_v37 = vand.u32 4294901760, %v2197_v44 }
 0x348   :  { %2117 = vmatmul.f32.vlgmr.msra.gmra.mxu2 %v1991_v60  ;;  %2034 = vmatmul.f32.gmra.mxu3 %v7827_v56  ;;  %v2199_v48 = vsub.f32 %v2197_v44, %v2198_v37 }
 0x34d   :  { %6645 = vset.pattern.permute.xlu1 %v6780_v47 }
 0x350   :  { %2121 = vmatmul.f32.gmra.mxu2 %v7827_v56  ;;  %2143 = vmatmul.f32.vlgmr.msra.gmra.mxu3 %v1991_v60  ;;  %v2167_v60 = vsel %vm1969_vm10, %v2160_v50, 0 }
 0x351   :  { %v2188_v22 = vand.u32 4294901760, %v2167_v60 }
 0x353   :  { %v2189_v53 = vsub.f32 %v2167_v60, %v2188_v22  ;;  %v2200_v60 = vand.u32 4294901760, %v2199_v48 }
 0x355   :  { %v2190_v11 = vand.u32 4294901760, %v2189_v53 }
 0x357   :  { %v2191_v40 = vsub.f32 %v2189_v53, %v2190_v11 }
 0x358   :  { %2147 = vmatmul.f32.gmra.mxu3 %v7827_v56 }
 0x359   :  { %v2192_v7 = vand.u32 4294901760, %v2191_v40 }
 0x3a7   :  { %v2165_v46 = vpop.permute.xlu0 %2164 }
 0x3a8   :  { %v2186_v38 = vand.u32 4294901760, %v2165_v46 }
 0x3aa   :  { %v2221_v39 = vsub.f32 %v2165_v46, %v2186_v38  ;;  %2187 = vmatpush.msrb.mxu0 %v2186_v38  ;;  %2280 = vmatpush.msrb.mxu3 %v2186_v38 }
 0x3ab   :  { %2193 = vmatmul.f32.vlgmr.msrb.gmra.mxu0 %v2192_v7  ;;  %2284 = vmatmul.f32.vlgmr.msrb.gmra.mxu3 %v2190_v11 }
 0x3ac   :  { %v2222_v50 = vand.u32 4294901760, %v2221_v39  ;;  %2252 = vmatpush.msrb.mxu2 %v2221_v39 }
 0x3ad   :  { %2255 = vmatmul.f32.vlgmr.msrb.gmra.mxu2 %v2189_v53 }
 0x3ae   :  { %v2223_v47 = vsub.f32 %v2221_v39, %v2222_v50  ;;  %2312 = vmatpush.msra.mxu0 %v2222_v50 }
 0x3af   :  { %v2157_v16 = vpop.permute.xlu0 %2156 }
 0x3b0   :  { %v2224_v9 = vand.u32 4294901760, %v2223_v47 }
 0x3b2   :  { %2225 = vmatpush.msrb.mxu1 %v2224_v9 }
 0x3b3   :  { %2201 = vmatmul.f32.gmra.mxu0 %v2200_v60  ;;  %2227 = vmatmul.f32.vlgmr.msrb.gmra.mxu1 %v2188_v22  ;;  %v2153_v60 = vpop.permute.xlu1 %2152 }
 0x3b4   :  { %2290 = vmatmul.f32.gmra.mxu3 %v2198_v37  ;;  %2338 = vmatpush.msra.mxu1 %v2186_v38 }
 0x3b5   :  { %2260 = vmatmul.f32.gmra.mxu2 %v2197_v44  ;;  %v7863_v7 = vpop.f32.mrf.mxu1 }
 0x3b7   :  { %v7857_v40 = vpop.f32.mrf.mxu0 }
 0x3bb   :  { %2231 = vmatmul.f32.gmra.mxu1 %v2196_v33  ;;  %2314 = vmatmul.f32.vlgmr.msra.gmra.mxu0 %v2188_v22  ;;  %v1997_v24 = vpop.f32.mrf.mxu2 }
 0x3be   :  { %v7871_v38 = vpop.f32.mrf.mxu1 }
 0x3bf   :  { %v7865_v46 = vpop.f32.mrf.mxu0 }
 0x3c3   :  { %2318 = vmatmul.f32.gmra.mxu0 %v2196_v33  ;;  %2340 = vmatmul.f32.vlgmr.msra.gmra.mxu1 %v2188_v22  ;;  %v7855_v11 = vpop.f32.mrf.mxu3  ;;  %v7859_v39 = vpop.f32.mrf.mxu2 }
 0x3cb   :  { %2344 = vmatmul.f32.gmra.mxu1 %v2196_v33  ;;  %v7861_v53 = vpop.f32.mrf.mxu3  ;;  %v7867_v37 = vpop.f32.mrf.mxu2 }
 0x3d3   :  { %v7869_v44 = vpop.f32.mrf.mxu3  ;;  %v7873_v33 = vpop.f32.mrf.mxu2 }
 0x3db   :  { %v7875_v48 = vpop.f32.mrf.mxu3 }
 0x428   :  { %v2194_v22 = vpop.f32.mrf.mxu0 }
 0x429   :  { %v2195_v9 = vadd.f32 %v2194_v22, %v2153_v60 }
 0x42e   :  { %v2285_v3 = vpop.f32.mrf.mxu3 }
 0x430   :  { %v2202_v50 = vpop.f32.mrf.mxu0  ;;  %v2228_v47 = vpop.f32.mrf.mxu1 }
 0x431   :  { %v2229_v52 = vadd.f32 %v2228_v47, %v2195_v9  ;;  %v2256_v59 = vpop.f32.mrf.mxu2  ;;  %v2203_v43 = vadd.f32 %v2202_v50, %v2157_v16  ;;  %v6593_v16 = vld [vmem:[%s9873_s0 + $0x100] sm:$0xff] }
 0x433   :  { %v2257_v15 = vadd.f32 %v2256_v59, %v2229_v52  ;;  %v6577_v52 = vld [vmem:[%s9873_s0 + $0x110] ss:$8 sm:$0x3]  ;;  %v7888_v59 = vld [vmem:[%s9873_s0 + $0xa0] sm:$0xff] }
 0x435   :  { %v2286_v18 = vadd.f32 %v2285_v3, %v2257_v15 }
 0x437   :  { %v2291_v1 = vpop.f32.mrf.mxu3 }
 0x438   :  { %v2232_v41 = vpop.f32.mrf.mxu1  ;;  %v2315_v20 = vpop.f32.mrf.mxu0 }
 0x439   :  { %v2233_v61 = vadd.f32 %v2232_v41, %v2203_v43  ;;  %v2316_v6 = vadd.f32 %v2315_v20, %v2286_v18  ;;  %v2261_v63 = vpop.f32.mrf.mxu2  ;;  %v6578_v18 = vmul.f32 -1.442695, %v6577_v52 }
 0x43b   :  { %v2262_v32 = vadd.f32 %v2261_v63, %v2233_v61  ;;  %6658 = vpow2.f32 %v6578_v18 }
 0x43d   :  { %v2292_v47 = vadd.f32 %v2291_v1, %v2262_v32 }
 0x440   :  { %v2341_v34 = vpop.f32.mrf.mxu1  ;;  %v2319_v22 = vpop.f32.mrf.mxu0 }
 0x441   :  { %v2342_v0 = vadd.f32 %v2341_v34, %v2316_v6  ;;  %v2320_v60 = vadd.f32 %v2319_v22, %v2292_v47  ;;  %v6659_v43 = vpop.eup %6658  ;;  %v6594_v47 = vld [vmem:[%s9873_s0 + $0x108] sm:$0xff] }
 0x442   :  { %v3292_v63 = vadd.f32 1.0, %v6659_v43 }
 0x443   :  { %2350 = vrot.lane.b32.xlu2 %v2342_v0, %s6782_s27  ;;  %v1962_v0 = vpop.permute.xlu2 %1961 }
 0x444   :  { %6660 = vrcp.f32 %v3292_v63  ;;  %v1998_v1 = vadd.f32 %v1997_v24, %v1962_v0  ;;  %v3304_v32 = vand.u32 2147483648, %v3292_v63  ;;  %vm3298_vm11 = vweird.f32 %v3292_v63  ;;  %v7893_v24 = vld [vmem:[%s9873_s0 + $0xc0] sm:$0xff] }
 0x445   :  { %v4251_v52 = vadd.f32 %v7893_v24, %v7888_v59 }
 0x446   :  { %v3305_v20 = vor.u32 1.1754944e-38, %v3304_v32  ;;  %v2032_v50 = vadd.f32 %v7855_v11, %v1998_v1 }
 0x448   :  { %v2345_v9 = vpop.f32.mrf.mxu1 }
 0x449   :  { %v2346_v30 = vadd.f32 %v2345_v9, %v2320_v60  ;;  %v7902_v60 = vld [vmem:[%s9873_s0 + $0xa8] sm:$0xff] }
 0x44a   :  { %v6661_v61 = vpop.eup %6660  ;;  %v7907_v9 = vld [vmem:[%s9873_s0 + $0xc8] sm:$0xff] }
 0x44b   :  { %2352 = vrot.lane.b32.xlu1 %v2346_v30, %s6782_s27  ;;  %v3294_v34 = vmul.f32 %v6661_v61, %v3292_v63  ;;  %vm3299_vm12 = vweird.f32 %v6661_v61  ;;  %v3302_v30 = vand.u32 2147483647, %v3292_v63  ;;  %v4252_v43 = vadd.f32 %v7907_v9, %v7902_v60  ;;  %v7920_v63 = vld [vmem:[%s9873_s0 + $0xe0] sm:$0xff] }
 0x44c   :  { %vm3300_vm13 = vmor %vm3298_vm11, %vm3299_vm12  ;;  %v4259_v0 = vadd.f32 %v7920_v63, %v4251_v52 }
 0x44d   :  { %v3295_v6 = vsub.f32 1.0, %v3294_v34  ;;  %vm3303_vm14 = vcmp.eq.f32.partialorder %v3302_v30, 8.507059e+37  ;;  %v7928_v34 = vld [vmem:[%s9873_s0 + $0xe8] sm:$0xff] }
 0x44e   :  { %v4260_v32 = vadd.f32 %v7928_v34, %v4252_v43  ;;  %v7935_v30 = vadd.f32 %v6593_v16, %v4259_v0 }
 0x44f   :  { %v3296_v3 = vmul.f32 %v6661_v61, %v3295_v6 }
 0x450   :  { %v7947_v57 = vadd.f32 %v6594_v47, %v4260_v32 }
 0x451   :  { %v3297_v41 = vadd.f32 %v6661_v61, %v3296_v3 }
 0x453   :  { %v3301_v15 = vsel %vm3300_vm13, %v6661_v61, %v3297_v41  ;;  %v2398_v61 = vld [vmem:[%s9875_s2 + $0x10] sm:$0xff]  ;;  %v2060_v41 = vadd.f32 %v7857_v40, %v2032_v50 }
 0x454   :  { %v3306_v22 = vsel %vm3303_vm14, %v3305_v20, %v3301_v15  ;;  %v2420_v6 = vand.u32 4294901760, %v2398_v61  ;;  %v7940_v20 = vld [vmem:[%s9873_s0 + $0xd0] sm:$0xff]  ;;  %v7945_v15 = vld [vmem:[%s9873_s0 + $0xd8] sm:$0xff] }
 0x455   :  { %v7911_v18 = vperm.slane %v3306_v22, 0  ;;  %v7913_v11 = vperm.slane %v3306_v22, 1 }
 0x456   :  { %v2456_v22 = vsub.f32 %v2398_v61, %v2420_v6  ;;  %2522 = vmatpush.msrb.mxu1 %v2420_v6  ;;  %2421 = vmatpush.msra.mxu2 %v2420_v6  ;;  %v2396_v61 = vld [vmem:[%s9875_s2] sm:$0xff] }
 0x457   :  { %v3343_v3 = vadd.f32 %v6593_v16, %v7911_v18  ;;  %v3344_v1 = vadd.f32 %v6594_v47, %v7913_v11  ;;  %v7951_v16 = vadd.f32 %v7940_v20, %v7911_v18  ;;  %v7955_v50 = vadd.f32 %v7945_v15, %v7913_v11 }
 0x458   :  { %v2457_v40 = vand.u32 4294901760, %v2456_v22  ;;  %2492 = vmatpush.msrb.mxu0 %v2456_v22  ;;  %v2089_v47 = vadd.f32 %v7863_v7, %v2060_v41  ;;  %v3339_v4 = vadd.f32 %v7920_v63, %v7911_v18 }
 0x459   :  { %v3398_v52 = vmax.f32 %v3343_v3, %v3344_v1  ;;  %v3366_v43 = vadd.f32 %v3344_v1, %v3343_v3  ;;  %v2422_v3 = vand.u32 4294901760, %v2396_v61 }
 0x45a   :  { %v2458_v0 = vsub.f32 %v2456_v22, %v2457_v40 }
 0x45b   :  { %v2462_v32 = vsub.f32 %v2396_v61, %v2422_v3  ;;  %2524 = vmatpush.msrb.mxu1 %v2422_v3  ;;  %2423 = vmatpush.msra.mxu2 %v2422_v3 }
 0x45c   :  { %v2459_v1 = vand.u32 4294901760, %v2458_v0 }
 0x45d   :  { %2555 = vmatpush.msrb.mxu2 %v2457_v40  ;;  %v2463_v10 = vand.u32 4294901760, %v2462_v32  ;;  %2495 = vmatpush.msrb.mxu0 %v2462_v32  ;;  %v1967_v40 = vpop.permute.xlu1 %1966 }
 0x45e   :  { %2460 = vmatpush.msra.mxu3 %v2459_v1 }
 0x45f   :  { %v2464_v28 = vsub.f32 %v2462_v32, %v2463_v10  ;;  %2559 = vmatpush.msrb.mxu2 %v2463_v10 }
 0x461   :  { %v2465_v41 = vand.u32 4294901760, %v2464_v28 }
 0x463   :  { %2466 = vmatpush.msra.mxu3 %v2465_v41 }
 0x465   :  { %2584 = vmatpush.msrb.mxu3 %v2420_v6 }
 0x467   :  { %2586 = vmatpush.msrb.mxu3 %v2422_v3 }
 0x46c   :  { %3399 = vmax.xlane.f32.xlu2 %v3398_v52  ;;  %v3357_v52 = vadd.f32 %v7955_v50, %v7951_v16 }
 0x474   :  { %3358 = vadd.xlane.f32.xlu2 %v3357_v52 }
 0x475   :  { %3367 = vadd.xlane.f32.xlu1 %v3366_v43  ;;  %v2119_v43 = vadd.f32 %v7867_v37, %v2089_v47  ;;  %v2006_v37 = vadd.f32 %v7859_v39, %v1967_v40 }
 0x477   :  { %v2145_v7 = vadd.f32 %v7869_v44, %v2119_v43  ;;  %v2036_v10 = vadd.f32 %v7861_v53, %v2006_v37 }
 0x479   :  { %v2065_v44 = vadd.f32 %v7865_v46, %v2036_v10 }
 0x47b   :  { %v2095_v52 = vadd.f32 %v7871_v38, %v2065_v44 }
 0x47d   :  { %v2123_v41 = vadd.f32 %v7873_v33, %v2095_v52  ;;  %v6607_v52 = vld [vmem:[%s9873_s0 + $0xb0] sm:$0xff] }
 0x49d   :  { %v2351_v22 = vpop.permute.xlu2 %2350 }
 0x49e   :  { %v2356_v61 = vsel %vm1790_vm9, %v2145_v7, %v2351_v22  ;;  %v2149_v22 = vadd.f32 %v7875_v48, %v2123_v41  ;;  %v2397_v48 = vld [vmem:[%s9875_s2 + $0x8] sm:$0xff] }
 0x49f   :  { %v6575_v0 = vmul.f32 -1.442695, %v2356_v61  ;;  %v2612_v44 = vand.u32 4294901760, %v2397_v48 }
 0x4a1   :  { %6662 = vpow2.f32 %v6575_v0  ;;  %v2399_v0 = vld [vmem:[%s9875_s2 + $0x18] sm:$0xff]  ;;  %v2652_v41 = vsub.f32 %v2397_v48, %v2612_v44 }
 0x4a2   :  { %v2610_v37 = vand.u32 4294901760, %v2399_v0  ;;  %v6592_v48 = vld [vmem:[%s9873_s0 + $0xf8] sm:$0xff] }
 0x4a4   :  { %2611 = vmatpush.msra.mxu0 %v2610_v37 }
 0x4a6   :  { %2613 = vmatpush.msra.mxu0 %v2612_v44 }
 0x4a7   :  { %v6663_v58 = vpop.eup %6662 }
 0x4a8   :  { %v2364_v47 = vadd.f32 1.0, %v6663_v58 }
 0x4aa   :  { %6664 = vrcp.f32 %v2364_v47  ;;  %v2377_v43 = vand.u32 2147483648, %v2364_v47  ;;  %v2375_v6 = vand.u32 2147483647, %v2364_v47  ;;  %vm2371_vm0 = vweird.f32 %v2364_v47 }
 0x4ac   :  { %v2378_v58 = vor.u32 1.1754944e-38, %v2377_v43  ;;  %vm2376_vm2 = vcmp.eq.f32.partialorder %v2375_v6, 8.507059e+37  ;;  %v6608_v6 = vld [vmem:[%s9873_s0 + $0xb8] sm:$0xff] }
 0x4b0   :  { %v6665_v1 = vpop.eup %6664 }
 0x4b1   :  { %v2367_v28 = vmul.f32 %v6665_v1, %v2364_v47  ;;  %vm2372_vm15 = vweird.f32 %v6665_v1 }
 0x4b2   :  { %vm2373_vm1 = vmor %vm2371_vm0, %vm2372_vm15 }
 0x4b3   :  { %v2368_v32 = vsub.f32 1.0, %v2367_v28 }
 0x4b5   :  { %v2369_v7 = vmul.f32 %v6665_v1, %v2368_v32  ;;  %v7997_v32 = vld [vmem:[%s9873_s0 + $0x90] sm:$0xff] }
 0x4b7   :  { %v2370_v3 = vadd.f32 %v6665_v1, %v2369_v7  ;;  %v8005_v7 = vld [vmem:[%s9873_s0 + $0x98] sm:$0xff] }
 0x4b9   :  { %v2374_v39 = vsel %vm2373_vm1, %v6665_v1, %v2370_v3  ;;  %v2646_v1 = vsub.f32 %v2399_v0, %v2610_v37  ;;  %v4249_v3 = vadd.f32 %v6607_v52, %v7997_v32 }
 0x4ba   :  { %v2379_v53 = vsel %vm2376_vm2, %v2378_v58, %v2374_v39  ;;  %v4250_v39 = vadd.f32 %v6608_v6, %v8005_v7 }
 0x4bb   :  { %2790 = vrot.lane.b32.xlu0 %v2379_v53, %s6779_s24  ;;  %v2401_v46 = vsel %vm1790_vm9, %v2379_v53, 0  ;;  %v2647_v43 = vand.u32 4294901760, %v2646_v1 }
 0x4bc   :  { %v7974_v38 = vand.u32 4294901760, %v2401_v46  ;;  %v4258_v0 = vadd.f32 %v7945_v15, %v4250_v39  ;;  %v3340_v15 = vadd.f32 %v7928_v34, %v7913_v11 }
 0x4bd   :  { %v2353_v61 = vpop.permute.xlu1 %2352  ;;  %v2648_v53 = vsub.f32 %v2646_v1, %v2647_v43 }
 0x4be   :  { %v7980_v33 = vsub.f32 %v2401_v46, %v7974_v38  ;;  %v2357_v40 = vsel %vm1790_vm9, %v2149_v22, %v2353_v61  ;;  %2468 = vmatmul.f32.vlgmr.msra.gmra.mxu3 %v7974_v38  ;;  %v4257_v46 = vadd.f32 %v7940_v20, %v4249_v3  ;;  %v2653_v22 = vand.u32 4294901760, %v2652_v41  ;;  %v6591_v61 = vld [vmem:[%s9873_s0 + $0xf0] sm:$0xff] }
 0x4bf   :  { %v6576_v47 = vmul.f32 -1.442695, %v2357_v40  ;;  %2712 = vmatpush.msra.mxu3 %v2610_v37  ;;  %v2649_v40 = vand.u32 4294901760, %v2648_v53  ;;  %v8025_v3 = vadd.f32 %v6592_v48, %v4258_v0  ;;  %v3360_v39 = vadd.f32 %v3340_v15, %v3339_v4 }
 0x4c0   :  { %v7988_v10 = vand.u32 4294901760, %v7980_v33  ;;  %2498 = vmatmul.f32.vlgmr.msrb.gmra.mxu0 %v7980_v33 }
 0x4c1   :  { %6666 = vpow2.f32 %v6576_v47  ;;  %2714 = vmatpush.msra.mxu3 %v2612_v44  ;;  %2745 = vmatpush.msrb.mxu0 %v2647_v43  ;;  %v2654_v43 = vsub.f32 %v2652_v41, %v2653_v22 }
 0x4c2   :  { %v2427_v28 = vsub.f32 %v7980_v33, %v7988_v10  ;;  %2528 = vmatmul.f32.vlgmr.msrb.gmra.mxu1 %v7988_v10  ;;  %3361 = vadd.xlane.f32.xlu1 %v3360_v39  ;;  %v3341_v39 = vadd.f32 %v6591_v61, %v7911_v18 }
 0x4c3   :  { %2749 = vmatpush.msrb.mxu0 %v2653_v22  ;;  %2650 = vmatpush.msra.mxu1 %v2649_v40  ;;  %v2655_v56 = vand.u32 4294901760, %v2654_v43 }
 0x4c4   :  { %v8011_v58 = vand.u32 4294901760, %v2427_v28  ;;  %v8023_v28 = vadd.f32 %v6591_v61, %v4257_v46  ;;  %v3392_v46 = vmax.f32 %v3339_v4, %v3340_v15 }
 0x4c5   :  { %2656 = vmatpush.msra.mxu1 %v2655_v56  ;;  %v3333_v56 = vadd.f32 %v6607_v52, %v7911_v18 }
 0x4c6   :  { %2429 = vmatmul.f32.vlgmr.msra.gmra.mxu2 %v8011_v58 }
 0x4c7   :  { %v6667_v47 = vpop.eup %6666  ;;  %2682 = vmatpush.msra.mxu2 %v2646_v1  ;;  %2774 = vmatpush.msrb.mxu1 %v2610_v37  ;;  %v3334_v37 = vadd.f32 %v6608_v6, %v7913_v11 }
 0x4c8   :  { %v2365_v20 = vadd.f32 1.0, %v6667_v47 }
 0x4c9   :  { %2685 = vmatpush.msra.mxu2 %v2652_v41  ;;  %2776 = vmatpush.msrb.mxu1 %v2612_v44  ;;  %v3351_v43 = vadd.f32 %v3334_v37, %v3333_v56  ;;  %v3383_v6 = vmax.f32 %v3333_v56, %v3334_v37 }
 0x4ca   :  { %6668 = vrcp.f32 %v2365_v20  ;;  %v2392_v0 = vand.u32 2147483648, %v2365_v20  ;;  %v2390_v47 = vand.u32 2147483647, %v2365_v20  ;;  %3393 = vmax.xlane.f32.xlu1 %v3392_v46  ;;  %vm2386_vm4 = vweird.f32 %v2365_v20 }
 0x4cc   :  { %v2393_v34 = vor.u32 1.1754944e-38, %v2392_v0  ;;  %vm2391_vm12 = vcmp.eq.f32.partialorder %v2390_v47, 8.507059e+37  ;;  %v3330_v0 = vadd.f32 %v8005_v7, %v7913_v11  ;;  %v3335_v47 = vadd.f32 %v7893_v24, %v7911_v18 }
 0x4cd   :  { %v3389_v24 = vmax.f32 %v7951_v16, %v7955_v50  ;;  %v3331_v7 = vadd.f32 %v7888_v59, %v7911_v18  ;;  %v2786_v16 = vld [vmem:[%s9875_s2 + $0x20] sm:$0xff] }
 0x4d0   :  { %v6669_v53 = vpop.eup %6668 }
 0x4d1   :  { %v2382_v1 = vmul.f32 %v6669_v53, %v2365_v20  ;;  %vm2387_vm3 = vweird.f32 %v6669_v53 }
 0x4d2   :  { %vm2388_vm11 = vmor %vm2386_vm4, %vm2387_vm3  ;;  %3352 = vadd.xlane.f32.xlu1 %v3351_v43 }
 0x4d3   :  { %v2383_v22 = vsub.f32 1.0, %v2382_v1  ;;  %v3342_v1 = vadd.f32 %v6592_v48, %v7913_v11  ;;  %v3329_v48 = vadd.f32 %v7997_v32, %v7911_v18 }
 0x4d5   :  { %v2384_v40 = vmul.f32 %v6669_v53, %v2383_v22  ;;  %v3363_v46 = vadd.f32 %v3342_v1, %v3341_v39  ;;  %v3395_v61 = vmax.f32 %v3341_v39, %v3342_v1  ;;  %v2789_v39 = vld [vmem:[%s9875_s2 + $0x38] sm:$0xff] }
 0x4d6   :  { %v3002_v1 = vand.u32 4294901760, %v2789_v39 }
 0x4d7   :  { %v2385_v63 = vadd.f32 %v6669_v53, %v2384_v40  ;;  %v3377_v40 = vmax.f32 %v3329_v48, %v3330_v0 }
 0x4d9   :  { %v2389_v41 = vsel %vm2388_vm11, %v6669_v53, %v2385_v63  ;;  %v3336_v63 = vadd.f32 %v7907_v9, %v7913_v11  ;;  %v3345_v9 = vadd.f32 %v3330_v0, %v3329_v48 }
 0x4da   :  { %v2394_v44 = vsel %vm2391_vm12, %v2393_v34, %v2389_v41  ;;  %3384 = vmax.xlane.f32.xlu1 %v3383_v6  ;;  %v2814_v34 = vand.u32 4294901760, %v2786_v16 }
 0x4db   :  { %2792 = vrot.lane.b32.xlu2 %v2394_v44, %s6779_s24  ;;  %v2404_v4 = vsel %vm1790_vm9, %v2394_v44, 0  ;;  %v3386_v32 = vmax.f32 %v3335_v47, %v3336_v63 }
 0x4dc   :  { %v2432_v15 = vand.u32 4294901760, %v2404_v4  ;;  %v2854_v56 = vsub.f32 %v2786_v16, %v2814_v34 }
 0x4de   :  { %v2433_v20 = vsub.f32 %v2404_v4, %v2432_v15  ;;  %2472 = vmatmul.f32.gmra.mxu3 %v2432_v15  ;;  %v2855_v37 = vand.u32 4294901760, %v2854_v56 }
 0x4e0   :  { %2503 = vmatmul.f32.gmra.mxu0 %v2433_v20  ;;  %v2434_v53 = vand.u32 4294901760, %v2433_v20  ;;  %v2856_v4 = vsub.f32 %v2854_v56, %v2855_v37 }
 0x4e2   :  { %2534 = vmatmul.f32.gmra.mxu1 %v2434_v53  ;;  %v2435_v52 = vsub.f32 %v2433_v20, %v2434_v53  ;;  %3378 = vmax.xlane.f32.xlu1 %v3377_v40  ;;  %v2857_v43 = vand.u32 4294901760, %v2856_v4 }
 0x4e4   :  { %v2436_v22 = vand.u32 4294901760, %v2435_v52 }
 0x4e5   :  { %3364 = vadd.xlane.f32.xlu0 %v3363_v46 }
 0x4e6   :  { %2437 = vmatmul.f32.gmra.mxu2 %v2436_v22  ;;  %2588 = vmatmul.f32.vlgmr.msrb.gmra.mxu3 %v7974_v38 }
 0x4e8   :  { %2619 = vmatmul.f32.vlgmr.msra.gmra.mxu0 %v8011_v58  ;;  %v3354_v58 = vadd.f32 %v3336_v63, %v3335_v47 }
 0x4ea   :  { %2658 = vmatmul.f32.vlgmr.msra.gmra.mxu1 %v7974_v38 }
 0x4ed   :  { %3396 = vmax.xlane.f32.xlu0 %v3395_v61 }
 0x4ee   :  { %2561 = vmatmul.f32.vlgmr.msrb.gmra.mxu2 %v7974_v38  ;;  %2592 = vmatmul.f32.gmra.mxu3 %v2432_v15 }
 0x4f0   :  { %2627 = vmatmul.f32.gmra.mxu0 %v2436_v22  ;;  %v531_v22 = vadd.f32 %v7678_v31, %v7661_v23  ;;  %v543_v23 = vadd.f32 %v7710_v8, %v7700_v29  ;;  %v555_v29 = vadd.f32 %v7732_v5, %v7724_v36 }
 0x4f2   :  { %2662 = vmatmul.f32.gmra.mxu1 %v2432_v15  ;;  %v583_v47 = vadd.f32 %v7687_v35, %v531_v22 }
 0x4f5   :  { %3355 = vadd.xlane.f32.xlu0 %v3354_v58  ;;  %v3400_v58 = vpop.xlane.xlu2 %3399 }
 0x4f6   :  { %2565 = vmatmul.f32.gmra.mxu2 %v2432_v15  ;;  %2718 = vmatmul.f32.vlgmr.msra.gmra.mxu3 %v7988_v10  ;;  %v3332_v10 = vadd.f32 %v7902_v60, %v7913_v11 }
 0x4f8   :  { %2751 = vmatmul.f32.vlgmr.msrb.gmra.mxu0 %v7974_v38  ;;  %v3348_v41 = vadd.f32 %v3332_v10, %v3331_v7 }
 0x4fa   :  { %2778 = vmatmul.f32.vlgmr.msrb.gmra.mxu1 %v7974_v38  ;;  %v2788_v38 = vld [vmem:[%s9875_s2 + $0x30] sm:$0xff] }
 0x4fd   :  { %3387 = vmax.xlane.f32.xlu0 %v3386_v32  ;;  %v642_v32 = vadd.f32 %v7694_v45, %v583_v47 }
 0x4fe   :  { %2688 = vmatmul.f32.vlgmr.msra.gmra.mxu2 %v7980_v33  ;;  %2724 = vmatmul.f32.gmra.mxu3 %v2434_v53  ;;  %v2812_v33 = vand.u32 4294901760, %v2788_v38  ;;  %v8071_v53 = vsub.f32 %v2789_v39, %v3002_v1 }
 0x4ff   :  { %v708_v31 = vadd.f32 %v7738_v49, %v642_v32 }
 0x500   :  { %2755 = vmatmul.f32.gmra.mxu0 %v2432_v15  ;;  %v2848_v50 = vsub.f32 %v2788_v38, %v2812_v33  ;;  %2914 = vmatpush.msra.mxu1 %v2812_v33  ;;  %v3039_v52 = vand.u32 4294901760, %v8071_v53 }
 0x501   :  { %2813 = vmatpush.msrb.mxu2 %v2812_v33  ;;  %v8091_v35 = vadd.f32 %v7746_v62, %v708_v31 }
 0x502   :  { %2782 = vmatmul.f32.gmra.mxu1 %v2432_v15  ;;  %v2849_v59 = vand.u32 4294901760, %v2848_v50  ;;  %2884 = vmatpush.msra.mxu0 %v2848_v50  ;;  %v3380_v15 = vmax.f32 %v3331_v7, %v3332_v10  ;;  %v3040_v61 = vsub.f32 %v8071_v53, %v3039_v52  ;;  %v9960_v7 = vld [vmem:[#allocation9_spill] sm:$0xff] }
 0x503   :  { %2916 = vmatpush.msra.mxu1 %v2814_v34  ;;  %2815 = vmatpush.msrb.mxu2 %v2814_v34  ;;  %9959 = vst [vmem:[#allocation48_spill] sm:$0xff] %v8091_v35 }
 0x504   :  { %3390 = vmax.xlane.f32.xlu2 %v3389_v24  ;;  %v2850_v60 = vsub.f32 %v2848_v50, %v2849_v59  ;;  %2887 = vmatpush.msra.mxu0 %v2854_v56  ;;  %v3041_v0 = vand.u32 4294901760, %v3040_v61  ;;  %v3368_v24 = vpop.xlane.xlu1 %3367 }
 0x505   :  { %3346 = vadd.xlane.f32.xlu0 %v3345_v9  ;;  %2947 = vmatpush.msra.mxu2 %v2849_v59  ;;  %v598_v9 = vadd.f32 %v7720_v27, %v543_v23  ;;  %v3376_v10 = vmul.f32 %v3368_v24, %v9960_v7 }
 0x506   :  { %2693 = vmatmul.f32.gmra.mxu2 %v2433_v20  ;;  %v2851_v44 = vand.u32 4294901760, %v2850_v60  ;;  %v2787_v20 = vld [vmem:[%s9875_s2 + $0x28] sm:$0xff]  ;;  %3003 = vmatpush.msrb.mxu0 %v3002_v1 }
 0x507   :  { %2951 = vmatpush.msra.mxu2 %v2855_v37  ;;  %v3004_v46 = vand.u32 4294901760, %v2787_v20  ;;  %3042 = vmatpush.msrb.mxu1 %v3041_v0  ;;  %v660_v45 = vadd.f32 %v7722_v13, %v598_v9  ;;  %v3408_v8 = vsel %vm136_vm5, %v3376_v10, %v3400_v58 }
 0x508   :  { %2852 = vmatpush.msrb.mxu3 %v2851_v44  ;;  %v8108_v50 = vand.u32 4294901760, %v3408_v8 }
 0x509   :  { %3005 = vmatpush.msrb.mxu0 %v3004_v46  ;;  %v8075_v6 = vsub.f32 %v2787_v20, %v3004_v46  ;;  %v720_v27 = vadd.f32 %v7760_v42, %v660_v45 }
 0x50a   :  { %2858 = vmatpush.msrb.mxu3 %v2857_v43  ;;  %v8114_v5 = vsub.f32 %v3408_v8, %v8108_v50 }
 0x50b   :  { %v3045_v48 = vand.u32 4294901760, %v8075_v6  ;;  %v8106_v16 = vadd.f32 %v7766_v26, %v720_v27 }
 0x50c   :  { %3349 = vadd.xlane.f32.xlu2 %v3348_v41  ;;  %2976 = vmatpush.msra.mxu3 %v2812_v33  ;;  %v613_v33 = vadd.f32 %v7748_v14, %v555_v29 }
 0x50d   :  { %v3046_v40 = vsub.f32 %v8075_v6, %v3045_v48  ;;  %9961 = vst [vmem:[#allocation9_spill] sm:$0xff] %v8106_v16 }
 0x50e   :  { %2978 = vmatpush.msra.mxu3 %v2814_v34  ;;  %v678_v36 = vadd.f32 %v7750_v21, %v613_v33  ;;  %v3464_v21 = vand.u32 4294901760, %v8114_v5 }
 0x50f   :  { %v3047_v63 = vand.u32 4294901760, %v3046_v40 }
 0x510   :  { %v732_v26 = vadd.f32 %v7772_v2, %v678_v36  ;;  %v3465_v44 = vsub.f32 %v8114_v5, %v3464_v21 }
 0x511   :  { %3048 = vmatpush.msrb.mxu1 %v3047_v63 }
 0x512   :  { %v8119_v60 = vadd.f32 %v7778_v19, %v732_v26  ;;  %v3466_v43 = vand.u32 4294901760, %v3465_v44 }
 0x514   :  { %3381 = vmax.xlane.f32.xlu2 %v3380_v15  ;;  %9962 = vst [vmem:[#allocation49_spill] sm:$0xff] %v8119_v60 }
 0x519   :  { %5048 = vperm.xlu0 %6644, %v7785_v54   ;;  %v9958_v54 = vmov 8  }
 0x521   :  { %6648 = vset.pattern.permute.xlu0 %v9958_v54 }
 0x522   :  { %5226 = vperm.xlu0 %6648, %v7821_v17   ;;  %v8096_v17 = vpop.xlane.xlu2 %3358 }
 0x523   :  { %v3373_v33 = vmul.f32 %v8096_v17, %v9960_v7 }
 0x52a   :  { %796 = vrot.lane.b32.xlu0 %v8091_v35, %s6783_s28 }
 0x52d   :  { %v2791_v49 = vpop.permute.xlu0 %2790 }
 0x52e   :  { %v2794_v62 = vsel %vm1790_vm9, %v2791_v49, 0 }
 0x52f   :  { %v2816_v38 = vand.u32 4294901760, %v2794_v62 }
 0x531   :  { %v2817_v34 = vsub.f32 %v2794_v62, %v2816_v38  ;;  %2860 = vmatmul.f32.vlgmr.msrb.gmra.mxu3 %v2816_v38  ;;  %v3409_v62 = vld [vmem:[%s9875_s2 + $0x40] sm:$0xf] }
 0x532   :  { %802 = vrot.lane.b32.xlu0 %v8106_v16, %s6783_s28  ;;  %3104 = vmatpush.msrb.mxu3 %v3002_v1  ;;  %v3419_v36 = vsel %vm154_vm6, %v3409_v62, 0 }
 0x533   :  { %v2818_v13 = vand.u32 4294901760, %v2817_v34  ;;  %2890 = vmatmul.f32.vlgmr.msra.gmra.mxu0 %v2817_v34 }
 0x534   :  { %3106 = vmatpush.msrb.mxu3 %v3004_v46  ;;  %3137 = vmatpush.msra.mxu0 %v3039_v52 }
 0x535   :  { %v2819_v14 = vsub.f32 %v2817_v34, %v2818_v13  ;;  %v2793_v42 = vpop.permute.xlu2 %2792  ;;  %2920 = vmatmul.f32.vlgmr.msra.gmra.mxu1 %v2818_v13  ;;  %v3362_v15 = vpop.xlane.xlu1 %3361 }
 0x536   :  { %v2796_v41 = vsel %vm1790_vm9, %v2793_v42, 0  ;;  %3141 = vmatpush.msra.mxu0 %v3045_v48  ;;  %3166 = vmatpush.msra.mxu1 %v3002_v1  ;;  %v3374_v39 = vmul.f32 %v3362_v15, %v9960_v7 }
 0x537   :  { %v2820_v59 = vand.u32 4294901760, %v2819_v14  ;;  %v2824_v56 = vand.u32 4294901760, %v2796_v41 }
 0x538   :  { %3168 = vmatpush.msra.mxu1 %v3004_v46 }
 0x539   :  { %v2825_v37 = vsub.f32 %v2796_v41, %v2824_v56  ;;  %2821 = vmatmul.f32.vlgmr.msrb.gmra.mxu2 %v2820_v59  ;;  %2864 = vmatmul.f32.gmra.mxu3 %v2824_v56 }
 0x53a   :  { %808 = vrot.lane.b32.xlu0 %v8119_v60, %s6783_s28  ;;  %3074 = vmatpush.msrb.mxu2 %v8071_v53 }
 0x53b   :  { %2895 = vmatmul.f32.gmra.mxu0 %v2825_v37  ;;  %v2826_v2 = vand.u32 4294901760, %v2825_v37 }
 0x53c   :  { %3077 = vmatpush.msrb.mxu2 %v8075_v6 }
 0x53d   :  { %2926 = vmatmul.f32.gmra.mxu1 %v2826_v2  ;;  %v2827_v19 = vsub.f32 %v2825_v37, %v2826_v2  ;;  %v3394_v1 = vpop.xlane.xlu1 %3393 }
 0x53e   :  { %v3406_v20 = vsel %vm136_vm5, %v3374_v39, %v3394_v1 }
 0x53f   :  { %v2828_v4 = vand.u32 4294901760, %v2827_v19  ;;  %v8134_v46 = vand.u32 4294901760, %v3406_v20 }
 0x541   :  { %2829 = vmatmul.f32.gmra.mxu2 %v2828_v4  ;;  %2980 = vmatmul.f32.vlgmr.msra.gmra.mxu3 %v2816_v38  ;;  %v8138_v6 = vsub.f32 %v3406_v20, %v8134_v46 }
 0x542   :  { %3467 = vmatpush.msra.mxu3 %v3466_v43 }
 0x543   :  { %3011 = vmatmul.f32.vlgmr.msrb.gmra.mxu0 %v2820_v59  ;;  %v3476_v0 = vand.u32 4294901760, %v8138_v6  ;;  %v8183_v59 = vand.u32 4294901760, %v3419_v36 }
 0x544   :  { %3525 = vmatpush.msrb.mxu0 %v8114_v5 }
 0x545   :  { %3050 = vmatmul.f32.vlgmr.msrb.gmra.mxu1 %v2816_v38  ;;  %v3353_v47 = vpop.xlane.xlu1 %3352  ;;  %v3477_v58 = vsub.f32 %v8138_v6, %v3476_v0 }
 0x546   :  { %3562 = vmatpush.msrb.mxu1 %v8108_v50  ;;  %v3371_v10 = vmul.f32 %v3353_v47, %v9960_v7 }
 0x547   :  { %v3478_v24 = vand.u32 4294901760, %v3477_v58 }
 0x549   :  { %2953 = vmatmul.f32.vlgmr.msra.gmra.mxu2 %v2816_v38  ;;  %2984 = vmatmul.f32.gmra.mxu3 %v2824_v56  ;;  %v8220_v5 = vpop.f32.mrf.mxu2 }
 0x54a   :  { %3430 = vmatpush.msra.mxu2 %v8108_v50  ;;  %9964 = vst [vmem:[#allocation51_spill] sm:$0xff] %v8220_v5 }
 0x54b   :  { %3019 = vmatmul.f32.gmra.mxu0 %v2828_v4  ;;  %v3446_v4 = vsub.f32 %v3419_v36, %v8183_v59 }
 0x54d   :  { %3054 = vmatmul.f32.gmra.mxu1 %v2824_v56  ;;  %v3385_v45 = vpop.xlane.xlu1 %3384 }
 0x54e   :  { %v3403_v49 = vsel %vm136_vm5, %v3371_v10, %v3385_v45 }
 0x551   :  { %2957 = vmatmul.f32.gmra.mxu2 %v2824_v56  ;;  %3110 = vmatmul.f32.vlgmr.msrb.gmra.mxu3 %v2818_v13 }
 0x553   :  { %3143 = vmatmul.f32.vlgmr.msra.gmra.mxu0 %v2816_v38 }
 0x555   :  { %3170 = vmatmul.f32.vlgmr.msra.gmra.mxu1 %v2816_v38  ;;  %v8169_v38 = vand.u32 4294901760, %v3403_v49  ;;  %v3379_v44 = vpop.xlane.xlu1 %3378 }
 0x557   :  { %v8181_v26 = vsub.f32 %v3403_v49, %v8169_v38 }
 0x558   :  { %v3365_v53 = vpop.xlane.xlu0 %3364 }
 0x559   :  { %3080 = vmatmul.f32.vlgmr.msrb.gmra.mxu2 %v2817_v34  ;;  %3116 = vmatmul.f32.gmra.mxu3 %v2826_v2  ;;  %v3375_v52 = vmul.f32 %v3365_v53, %v9960_v7  ;;  %v3494_v19 = vand.u32 4294901760, %v8181_v26 }
 0x55b   :  { %3147 = vmatmul.f32.gmra.mxu0 %v2824_v56  ;;  %v3495_v53 = vsub.f32 %v8181_v26, %v3494_v19 }
 0x55d   :  { %3174 = vmatmul.f32.gmra.mxu1 %v2824_v56  ;;  %v3496_v47 = vand.u32 4294901760, %v3495_v53 }
 0x560   :  { %v3397_v22 = vpop.xlane.xlu0 %3396 }
 0x561   :  { %3085 = vmatmul.f32.gmra.mxu2 %v2825_v37  ;;  %v3407_v61 = vsel %vm136_vm5, %v3375_v52, %v3397_v22  ;;  %v3447_v52 = vand.u32 4294901760, %v3446_v4 }
 0x562   :  { %v8141_v48 = vand.u32 4294901760, %v3407_v61 }
 0x564   :  { %v8145_v40 = vsub.f32 %v3407_v61, %v8141_v48  ;;  %3432 = vmatpush.msra.mxu2 %v8141_v48  ;;  %3564 = vmatpush.msrb.mxu1 %v8141_v48 }
 0x566   :  { %3528 = vmatpush.msrb.mxu0 %v8145_v40  ;;  %3434 = vmatpush.msra.mxu2 %v8134_v46  ;;  %v3470_v63 = vand.u32 4294901760, %v8145_v40 }
 0x567   :  { %3566 = vmatpush.msrb.mxu1 %v8134_v46 }
 0x568   :  { %v3356_v32 = vpop.xlane.xlu0 %3355  ;;  %3531 = vmatpush.msrb.mxu0 %v8138_v6  ;;  %v3471_v23 = vsub.f32 %v8145_v40, %v3470_v63 }
 0x569   :  { %v3372_v9 = vmul.f32 %v3356_v32, %v9960_v7 }
 0x56a   :  { %v3472_v31 = vand.u32 4294901760, %v3471_v23 }
 0x56c   :  { %3473 = vmatpush.msra.mxu3 %v3472_v31  ;;  %v3448_v31 = vsub.f32 %v3446_v4, %v3447_v52 }
 0x56e   :  { %3479 = vmatpush.msra.mxu3 %v3478_v24 }
 0x570   :  { %v3388_v29 = vpop.xlane.xlu0 %3387 }
 0x571   :  { %v3404_v8 = vsel %vm136_vm5, %v3372_v9, %v3388_v29  ;;  %v3449_v29 = vand.u32 4294901760, %v3448_v31 }
 0x572   :  { %v8164_v27 = vand.u32 4294901760, %v3404_v8 }
 0x574   :  { %v8174_v34 = vsub.f32 %v3404_v8, %v8164_v27 }
 0x576   :  { %v3488_v17 = vand.u32 4294901760, %v8174_v34 }
 0x577   :  { %v3391_v13 = vpop.xlane.xlu2 %3390 }
 0x578   :  { %v3405_v14 = vsel %vm136_vm5, %v3373_v33, %v3391_v13  ;;  %v3347_v41 = vpop.xlane.xlu0 %3346  ;;  %v3489_v39 = vsub.f32 %v8174_v34, %v3488_v17 }
 0x579   :  { %v8178_v42 = vand.u32 4294901760, %v3405_v14  ;;  %v3369_v37 = vmul.f32 %v3347_v41, %v9960_v7 }
 0x57a   :  { %v3490_v22 = vand.u32 4294901760, %v3489_v39 }
 0x57b   :  { %v3481_v56 = vsub.f32 %v3405_v14, %v8178_v42  ;;  %3436 = vmatpush.msra.mxu2 %v8178_v42  ;;  %3568 = vmatpush.msrb.mxu1 %v8178_v42  ;;  %v3401_v1 = vsel %vm136_vm5, %v3369_v37, %v3379_v44 }
 0x57c   :  { %v3443_v61 = vand.u32 4294901760, %v3401_v1 }
 0x57d   :  { %3438 = vmatpush.msra.mxu2 %v8164_v27  ;;  %3534 = vmatpush.msrb.mxu0 %v3481_v56  ;;  %v3482_v2 = vand.u32 4294901760, %v3481_v56 }
 0x57e   :  { %3570 = vmatpush.msrb.mxu1 %v8164_v27  ;;  %v3505_v32 = vsub.f32 %v3401_v1, %v3443_v61 }
 0x57f   :  { %v3350_v43 = vpop.xlane.xlu2 %3349  ;;  %3440 = vmatpush.msra.mxu2 %v8169_v38  ;;  %3537 = vmatpush.msrb.mxu0 %v8174_v34  ;;  %v3483_v15 = vsub.f32 %v3481_v56, %v3482_v2 }
 0x580   :  { %3572 = vmatpush.msrb.mxu1 %v8169_v38  ;;  %v3370_v58 = vmul.f32 %v3350_v43, %v9960_v7  ;;  %v3506_v45 = vand.u32 4294901760, %v3505_v32 }
 0x581   :  { %3540 = vmatpush.msrb.mxu0 %v8181_v26  ;;  %v3484_v20 = vand.u32 4294901760, %v3483_v15 }
 0x582   :  { %v3507_v49 = vsub.f32 %v3505_v32, %v3506_v45 }
 0x583   :  { %3485 = vmatpush.msra.mxu3 %v3484_v20 }
 0x584   :  { %v3508_v33 = vand.u32 4294901760, %v3507_v49  ;;  %v3410_v49 = vld [vmem:[%s9875_s2 + $0x50] sm:$0xff] }
 0x585   :  { %3491 = vmatpush.msra.mxu3 %v3490_v22 }
 0x587   :  { %v3382_v23 = vpop.xlane.xlu2 %3381  ;;  %3497 = vmatpush.msra.mxu3 %v3496_v47 }
 0x588   :  { %v3402_v24 = vsel %vm136_vm5, %v3370_v58, %v3382_v23 }
 0x589   :  { %v3441_v9 = vand.u32 4294901760, %v3402_v24 }
 0x58b   :  { %v3499_v10 = vsub.f32 %v3402_v24, %v3441_v9  ;;  %3442 = vmatpush.msra.mxu2 %v3441_v9  ;;  %3574 = vmatpush.msrb.mxu1 %v3441_v9 }
 0x58d   :  { %3444 = vmatpush.msra.mxu2 %v3443_v61  ;;  %3543 = vmatpush.msrb.mxu0 %v3499_v10  ;;  %v3500_v8 = vand.u32 4294901760, %v3499_v10 }
 0x58e   :  { %3576 = vmatpush.msrb.mxu1 %v3443_v61  ;;  %3450 = vmatmul.f32.vlgmr.msra.gmra.mxu2 %v3449_v29 }
 0x58f   :  { %3595 = vmatpush.msrb.mxu2 %v3464_v21  ;;  %3546 = vmatpush.msrb.mxu0 %v3505_v32  ;;  %v3501_v7 = vsub.f32 %v3499_v10, %v3500_v8  ;;  %v8222_v21 = vpop.f32.mrf.mxu0 }
 0x590   :  { %3549 = vmatmul.f32.vlgmr.msrb.gmra.mxu0 %v3446_v4  ;;  %3580 = vmatmul.f32.vlgmr.msrb.gmra.mxu1 %v3447_v52  ;;  %9965 = vst [vmem:[#allocation52_spill] sm:$0xff] %v8222_v21 }
 0x591   :  { %3599 = vmatpush.msrb.mxu2 %v3470_v63  ;;  %v3502_v62 = vand.u32 4294901760, %v3501_v7 }
 0x593   :  { %3603 = vmatpush.msrb.mxu2 %v3476_v0  ;;  %3503 = vmatpush.msra.mxu3 %v3502_v62 }
 0x595   :  { %3607 = vmatpush.msrb.mxu2 %v3482_v2  ;;  %3509 = vmatpush.msra.mxu3 %v3508_v33  ;;  %v3660_v33 = vsel %vm396_vm7, %v3410_v49, 0  ;;  %v4284_v49 = vld [vmem:[%s9874_s1 + $0x78] sm:$0xff] }
 0x596   :  { %3511 = vmatmul.f32.vlgmr.msra.gmra.mxu3 %v8183_v59 }
 0x597   :  { %3611 = vmatpush.msrb.mxu2 %v3488_v17  ;;  %3638 = vmatpush.msrb.mxu3 %v8108_v50  ;;  %v8218_v50 = vpop.f32.mrf.mxu3  ;;  %v8230_v0 = vpop.f32.mrf.mxu0 }
 0x598   :  { %9963 = vst [vmem:[#allocation50_spill] sm:$0xff] %v8218_v50 }
 0x599   :  { %3615 = vmatpush.msrb.mxu2 %v3494_v19  ;;  %3640 = vmatpush.msrb.mxu3 %v8141_v48  ;;  %v8228_v48 = vpop.f32.mrf.mxu2  ;;  %9969 = vst [vmem:[#allocation56_spill] sm:$0xff] %v8230_v0 }
 0x59a   :  { %9968 = vst [vmem:[#allocation55_spill] sm:$0xff] %v8228_v48 }
 0x59b   :  { %3619 = vmatpush.msrb.mxu2 %v3500_v8  ;;  %3642 = vmatpush.msrb.mxu3 %v8134_v46  ;;  %v8224_v46 = vpop.f32.mrf.mxu1 }
 0x59c   :  { %9966 = vst [vmem:[#allocation53_spill] sm:$0xff] %v8224_v46  ;;  %v4282_v46 = vld [vmem:[%s9874_s1 + $0x68] sm:$0xff] }
 0x59d   :  { %3623 = vmatpush.msrb.mxu2 %v3506_v45  ;;  %3644 = vmatpush.msrb.mxu3 %v8178_v42 }
 0x59e   :  { %3625 = vmatmul.f32.vlgmr.msrb.gmra.mxu2 %v8183_v59 }
 0x59f   :  { %3646 = vmatpush.msrb.mxu3 %v8164_v27  ;;  %v8226_v6 = vpop.f32.mrf.mxu3 }
 0x5a0   :  { %9967 = vst [vmem:[#allocation54_spill] sm:$0xff] %v8226_v6 }
 0x5a1   :  { %3648 = vmatpush.msrb.mxu3 %v8169_v38  ;;  %v8236_v27 = vpop.f32.mrf.mxu2  ;;  %v8238_v38 = vpop.f32.mrf.mxu0 }
 0x5a2   :  { %9972 = vst [vmem:[#allocation59_spill] sm:$0xff] %v8236_v27 }
 0x5a3   :  { %3650 = vmatpush.msrb.mxu3 %v3441_v9  ;;  %v8232_v40 = vpop.f32.mrf.mxu1  ;;  %9973 = vst [vmem:[#allocation60_spill] sm:$0xff] %v8238_v38 }
 0x5a4   :  { %9970 = vst [vmem:[#allocation57_spill] sm:$0xff] %v8232_v40 }
 0x5a5   :  { %3652 = vmatpush.msrb.mxu3 %v3443_v61 }
 0x5a6   :  { %3654 = vmatmul.f32.vlgmr.msrb.gmra.mxu3 %v8183_v59 }
 0x5a7   :  { %v8234_v63 = vpop.f32.mrf.mxu3 }
 0x5a8   :  { %9971 = vst [vmem:[#allocation58_spill] sm:$0xff] %v8234_v63 }
 0x5a9   :  { %v8244_v36 = vpop.f32.mrf.mxu2  ;;  %v8246_v14 = vpop.f32.mrf.mxu0 }
 0x5aa   :  { %9976 = vst [vmem:[#allocation63_spill] sm:$0xff] %v8244_v36  ;;  %v4275_v36 = vld [vmem:[%s9874_s1 + $0x30] sm:$0xff] }
 0x5ab   :  { %v8240_v34 = vpop.f32.mrf.mxu1  ;;  %9977 = vst [vmem:[#allocation64_spill] sm:$0xff] %v8246_v14 }
 0x5ac   :  { %9974 = vst [vmem:[#allocation61_spill] sm:$0xff] %v8240_v34 }
 0x5af   :  { %v8242_v13 = vpop.f32.mrf.mxu3 }
 0x5b0   :  { %9975 = vst [vmem:[#allocation62_spill] sm:$0xff] %v8242_v13 }
 0x5b1   :  { %v8252_v41 = vpop.f32.mrf.mxu2  ;;  %v8254_v59 = vpop.f32.mrf.mxu0 }
 0x5b2   :  { %9980 = vst [vmem:[#allocation67_spill] sm:$0xff] %v8252_v41 }
 0x5b3   :  { %v8248_v42 = vpop.f32.mrf.mxu1  ;;  %9981 = vst [vmem:[#allocation68_spill] sm:$0xff] %v8254_v59 }
 0x5b4   :  { %9978 = vst [vmem:[#allocation65_spill] sm:$0xff] %v8248_v42 }
 0x5b7   :  { %v8250_v26 = vpop.f32.mrf.mxu3 }
 0x5b8   :  { %9979 = vst [vmem:[#allocation66_spill] sm:$0xff] %v8250_v26 }
 0x5b9   :  { %v8260_v37 = vpop.f32.mrf.mxu2  ;;  %v8262_v2 = vpop.f32.mrf.mxu0 }
 0x5ba   :  { %9984 = vst [vmem:[#allocation71_spill] sm:$0xff] %v8260_v37 }
 0x5bb   :  { %v8256_v56 = vpop.f32.mrf.mxu1  ;;  %9985 = vst [vmem:[#allocation72_spill] sm:$0xff] %v8262_v2 }
 0x5bc   :  { %9982 = vst [vmem:[#allocation69_spill] sm:$0xff] %v8256_v56 }
 0x5bf   :  { %v8258_v17 = vpop.f32.mrf.mxu3 }
 0x5c0   :  { %9983 = vst [vmem:[#allocation70_spill] sm:$0xff] %v8258_v17 }
 0x5c1   :  { %v8268_v4 = vpop.f32.mrf.mxu2  ;;  %v8270_v43 = vpop.f32.mrf.mxu0 }
 0x5c2   :  { %9988 = vst [vmem:[#allocation75_spill] sm:$0xff] %v8268_v4 }
 0x5c3   :  { %v8264_v44 = vpop.f32.mrf.mxu1  ;;  %9989 = vst [vmem:[#allocation76_spill] sm:$0xff] %v8270_v43  ;;  %v8330_v43 = vand.u32 4294901760, %v4284_v49 }
 0x5c4   :  { %9986 = vst [vmem:[#allocation73_spill] sm:$0xff] %v8264_v44 }
 0x5c7   :  { %v8266_v19 = vpop.f32.mrf.mxu3 }
 0x5c8   :  { %9987 = vst [vmem:[#allocation74_spill] sm:$0xff] %v8266_v19 }
 0x5c9   :  { %v8276_v1 = vpop.f32.mrf.mxu2  ;;  %v8278_v20 = vpop.f32.mrf.mxu0 }
 0x5ca   :  { %9992 = vst [vmem:[#allocation79_spill] sm:$0xff] %v8276_v1 }
 0x5cb   :  { %v8272_v15 = vpop.f32.mrf.mxu1  ;;  %9993 = vst [vmem:[#allocation80_spill] sm:$0xff] %v8278_v20 }
 0x5cc   :  { %9990 = vst [vmem:[#allocation77_spill] sm:$0xff] %v8272_v15 }
 0x5cf   :  { %v8274_v39 = vpop.f32.mrf.mxu3 }
 0x5d0   :  { %9991 = vst [vmem:[#allocation78_spill] sm:$0xff] %v8274_v39 }
 0x5d1   :  { %v8284_v22 = vpop.f32.mrf.mxu2  ;;  %v8286_v61 = vpop.f32.mrf.mxu0 }
 0x5d2   :  { %9996 = vst [vmem:[#allocation83_spill] sm:$0xff] %v8284_v22  ;;  %v8318_v22 = vand.u32 4294901760, %v3660_v33 }
 0x5d3   :  { %v8280_v53 = vpop.f32.mrf.mxu1  ;;  %9997 = vst [vmem:[#allocation84_spill] sm:$0xff] %v8286_v61 }
 0x5d4   :  { %9994 = vst [vmem:[#allocation81_spill] sm:$0xff] %v8280_v53  ;;  %v8324_v27 = vsub.f32 %v3660_v33, %v8318_v22  ;;  %v8339_v33 = vsub.f32 %v4284_v49, %v8330_v43  ;;  %v4281_v49 = vld [vmem:[%s9874_s1 + $0x60] sm:$0xff] }
 0x5d5   :  { %v8362_v34 = vand.u32 4294901760, %v4281_v49  ;;  %v4277_v53 = vld [vmem:[%s9874_s1 + $0x40] sm:$0xff] }
 0x5d6   :  { %v8422_v20 = vand.u32 4294901760, %v4277_v53 }
 0x5d7   :  { %v8282_v52 = vpop.f32.mrf.mxu3 }
 0x5d8   :  { %9995 = vst [vmem:[#allocation82_spill] sm:$0xff] %v8282_v52 }
 0x5d9   :  { %v8292_v32 = vpop.f32.mrf.mxu2  ;;  %v8294_v23 = vpop.f32.mrf.mxu0 }
 0x5da   :  { %10000 = vst [vmem:[#allocation87_spill] sm:$0xff] %v8292_v32 }
 0x5db   :  { %v8288_v47 = vpop.f32.mrf.mxu1  ;;  %10001 = vst [vmem:[#allocation88_spill] sm:$0xff] %v8294_v23 }
 0x5dc   :  { %9998 = vst [vmem:[#allocation85_spill] sm:$0xff] %v8288_v47 }
 0x5df   :  { %v8290_v58 = vpop.f32.mrf.mxu3 }
 0x5e0   :  { %9999 = vst [vmem:[#allocation86_spill] sm:$0xff] %v8290_v58  ;;  %v8378_v58 = vsub.f32 %v4281_v49, %v8362_v34 }
 0x5e1   :  { %v8300_v9 = vpop.f32.mrf.mxu2  ;;  %v8302_v10 = vpop.f32.mrf.mxu0 }
 0x5e2   :  { %10004 = vst [vmem:[#allocation91_spill] sm:$0xff] %v8300_v9  ;;  %v8350_v9 = vand.u32 4294901760, %v4282_v46 }
 0x5e3   :  { %v8296_v31 = vpop.f32.mrf.mxu1  ;;  %10005 = vst [vmem:[#allocation92_spill] sm:$0xff] %v8302_v10 }
 0x5e4   :  { %10002 = vst [vmem:[#allocation89_spill] sm:$0xff] %v8296_v31 }
 0x5e7   :  { %v8298_v24 = vpop.f32.mrf.mxu3 }
 0x5e8   :  { %10003 = vst [vmem:[#allocation90_spill] sm:$0xff] %v8298_v24 }
 0x5e9   :  { %v8308_v8 = vpop.f32.mrf.mxu2  ;;  %v8310_v7 = vpop.f32.mrf.mxu0 }
 0x5ea   :  { %10008 = vst [vmem:[#allocation95_spill] sm:$0xff] %v8308_v8  ;;  %v10017_v8 = vand.u32 4294901760, %v8339_v33 }
 0x5eb   :  { %v8304_v45 = vpop.f32.mrf.mxu1  ;;  %10009 = vst [vmem:[#allocation96_spill] sm:$0xff] %v8310_v7 }
 0x5ec   :  { %10006 = vst [vmem:[#allocation93_spill] sm:$0xff] %v8304_v45  ;;  %v3411_v45 = vld [vmem:[%s9875_s2 + $0x60] sm:$0xff] }
 0x5ed   :  { %v3663_v24 = vsel %vm396_vm7, %v3411_v45, 0 }
 0x5ef   :  { %v8306_v29 = vpop.f32.mrf.mxu3 }
 0x5f0   :  { %10007 = vst [vmem:[#allocation94_spill] sm:$0xff] %v8306_v29 }
 0x5f3   :  { %v8315_v62 = vpop.f32.mrf.mxu1 }
 0x5f4   :  { %10010 = vst [vmem:[#allocation97_spill] sm:$0xff] %v8315_v62 }
 0x60d   :  { %v3550_v10 = vpop.f32.mrf.mxu0  ;;  %v3581_v59 = vpop.f32.mrf.mxu1 }
 0x611   :  { %v3451_v52 = vpop.f32.mrf.mxu2 }
 0x619   :  { %v3512_v56 = vpop.f32.mrf.mxu3 }
 0x61a   :  { %v3513_v63 = vadd.f32 %v3512_v56, %v3451_v52  ;;  %v4283_v52 = vld [vmem:[%s9874_s1 + $0x70] sm:$0xff] }
 0x61b   :  { %v8341_v45 = vand.u32 4294901760, %v4283_v52 }
 0x61c   :  { %v3551_v15 = vadd.f32 %v3550_v10, %v3513_v63  ;;  %v3705_v63 = vand.u32 4294901760, %v8324_v27  ;;  %v8336_v10 = vand.u32 4294901760, %v3663_v24 }
 0x61d   :  { %v8353_v19 = vsub.f32 %v4283_v52, %v8341_v45  ;;  %v8367_v52 = vsub.f32 %v4282_v46, %v8350_v9  ;;  %v4279_v46 = vld [vmem:[%s9874_s1 + $0x50] sm:$0xff] }
 0x61e   :  { %v3582_v56 = vadd.f32 %v3581_v59, %v3551_v15  ;;  %v3412_v59 = vld [vmem:[%s9875_s2 + $0x70] sm:$0xff]  ;;  %v3706_v47 = vsub.f32 %v8324_v27, %v3705_v63  ;;  %v8360_v61 = vsub.f32 %v3663_v24, %v8336_v10  ;;  %v8387_v50 = vand.u32 4294901760, %v4279_v46 }
 0x61f   :  { %v3666_v15 = vsel %vm396_vm7, %v3412_v59, 0  ;;  %v10012_v44 = vand.u32 4294901760, %v8353_v19  ;;  %v3413_v59 = vld [vmem:[%s9875_s2 + $0x80] sm:$0xff] }
 0x620   :  { %v8385_v21 = vand.u32 4294901760, %v3666_v15  ;;  %v3707_v5 = vand.u32 4294901760, %v3706_v47  ;;  %v10013_v47 = vand.u32 4294901760, %v8367_v52 }
 0x621   :  { %v3626_v26 = vpop.f32.mrf.mxu2  ;;  %v4359_v49 = vsub.f32 %v8353_v19, %v10012_v44 }
 0x622   :  { %v3627_v4 = vadd.f32 %v3626_v26, %v3582_v56  ;;  %v4280_v26 = vld [vmem:[%s9874_s1 + $0x58] sm:$0xff]  ;;  %v10011_v56 = vand.u32 4294901760, %v8339_v33  ;;  %v4365_v32 = vsub.f32 %v8367_v52, %v10013_v47  ;;  %v8418_v29 = vsub.f32 %v3666_v15, %v8385_v21 }
 0x623   :  { %v8375_v24 = vand.u32 4294901760, %v4280_v26  ;;  %v3669_v47 = vsel %vm396_vm7, %v3413_v59, 0 }
 0x624   :  { %v4353_v62 = vsub.f32 %v8339_v33, %v10011_v56  ;;  %v8440_v40 = vand.u32 4294901760, %v3669_v47 }
 0x626   :  { %v4354_v7 = vand.u32 4294901760, %v4353_v62  ;;  %v10014_v62 = vand.u32 4294901760, %v8360_v61 }
 0x629   :  { %v3655_v41 = vpop.f32.mrf.mxu3 }
 0x62a   :  { %v3656_v38 = vadd.f32 %v3655_v41, %v3627_v4  ;;  %v4278_v4 = vld [vmem:[%s9874_s1 + $0x48] sm:$0xff] }
 0x62b   :  { %v8406_v44 = vand.u32 4294901760, %v4278_v4 }
 0x62c   :  { %v3658_v41 = vmax.f32 %v3656_v38, 0.0  ;;  %v8394_v38 = vsub.f32 %v4280_v26, %v8375_v24  ;;  %v8409_v26 = vsub.f32 %v4279_v46, %v8387_v50  ;;  %v4360_v46 = vand.u32 4294901760, %v4359_v49 }
 0x62d   :  { %v8433_v59 = vsub.f32 %v4278_v4, %v8406_v44 }
 0x62e   :  { %v3684_v56 = vsel %vm421_vm8, %v3658_v41, 0  ;;  %v3714_v41 = vsub.f32 %v8360_v61, %v10014_v62  ;;  %v10015_v62 = vand.u32 4294901760, %v8378_v58 }
 0x62f   :  { %v3701_v13 = vand.u32 4294901760, %v3684_v56  ;;  %v10032_v60 = vand.u32 4294901760, %v8433_v59 }
 0x630   :  { %v4371_v15 = vsub.f32 %v8378_v58, %v10015_v62  ;;  %v3715_v62 = vand.u32 4294901760, %v3714_v41  ;;  %v3414_v41 = vld [vmem:[%s9875_s2 + $0x90] sm:$0xff] }
 0x631   :  { %v3784_v2 = vsub.f32 %v3684_v56, %v3701_v13  ;;  %3702 = vmatpush.msra.mxu0 %v3701_v13  ;;  %3897 = vmatpush.msra.mxu3 %v3701_v13  ;;  %v4276_v56 = vld [vmem:[%s9874_s1 + $0x38] sm:$0xff]  ;;  %v3672_v23 = vsel %vm396_vm7, %v3414_v41, 0 }
 0x632   :  { %3708 = vmatmul.f32.vlgmr.msra.gmra.mxu0 %v3707_v5  ;;  %3901 = vmatmul.f32.vlgmr.msra.gmra.mxu3 %v3705_v63  ;;  %v4366_v5 = vand.u32 4294901760, %v4365_v32  ;;  %v8435_v49 = vand.u32 4294901760, %v4276_v56  ;;  %v10016_v32 = vand.u32 4294901760, %v8394_v38  ;;  %v8448_v63 = vsub.f32 %v4277_v53, %v8422_v20 }
 0x633   :  { %3839 = vmatpush.msra.mxu2 %v3784_v2  ;;  %v3785_v17 = vand.u32 4294901760, %v3784_v2  ;;  %4355 = vmatpush.msrb.mxu3 %v4354_v7  ;;  %v10018_v53 = vand.u32 4294901760, %v8409_v26 }
 0x634   :  { %3842 = vmatmul.f32.vlgmr.msra.gmra.mxu2 %v8324_v27  ;;  %v4377_v4 = vsub.f32 %v8394_v38, %v10016_v32  ;;  %v10019_v27 = vand.u32 4294901760, %v8353_v19 }
 0x635   :  { %3965 = vmatpush.msrb.mxu0 %v3785_v17  ;;  %v3786_v7 = vsub.f32 %v3784_v2, %v3785_v17  ;;  %4302 = vmatpush.msrb.mxu2 %v8330_v43  ;;  %v8453_v17 = vand.u32 4294901760, %v4275_v36  ;;  %v4274_v2 = vld [vmem:[%s9874_s1 + $0x28] sm:$0xff]  ;;  %v4383_v32 = vsub.f32 %v8409_v26, %v10018_v53  ;;  %v10020_v53 = vand.u32 4294901760, %v8418_v29 }
 0x636   :  { %4361 = vmatpush.msrb.mxu3 %v4360_v46  ;;  %v4372_v46 = vand.u32 4294901760, %v4371_v15  ;;  %v4273_v15 = vld [vmem:[%s9874_s1 + $0x20] sm:$0xff] }
 0x637   :  { %4562 = vmatpush.msra.mxu0 %v10017_v8  ;;  %v3787_v31 = vand.u32 4294901760, %v3786_v7  ;;  %4304 = vmatpush.msrb.mxu2 %v8341_v45  ;;  %v8466_v7 = vsub.f32 %v4276_v56, %v8435_v49  ;;  %v3722_v56 = vsub.f32 %v8418_v29, %v10020_v53  ;;  %v4378_v8 = vand.u32 4294901760, %v4377_v4 }
 0x638   :  { %4367 = vmatpush.msrb.mxu3 %v4366_v5  ;;  %v8471_v5 = vsub.f32 %v3669_v47, %v8440_v40  ;;  %v10021_v47 = vand.u32 4294901760, %v8360_v61  ;;  %v8488_v39 = vsub.f32 %v4275_v36, %v8453_v17  ;;  %v10022_v53 = vand.u32 4294901760, %v8433_v59  ;;  %v4272_v36 = vld [vmem:[%s9874_s1 + $0x18] sm:$0xff] }
 0x639   :  { %4566 = vmatpush.msra.mxu0 %v10019_v27  ;;  %3788 = vmatpush.msra.mxu1 %v3787_v31  ;;  %v8482_v31 = vand.u32 4294901760, %v4274_v2  ;;  %v9892_v27 = vand.u32 4294901760, %v8466_v7  ;;  %v8495_v1 = vand.u32 4294901760, %v4273_v15  ;;  %v3723_v41 = vand.u32 4294901760, %v3722_v56  ;;  %v4271_v56 = vld [vmem:[%s9874_s1 + $0x10] sm:$0xff] }
 0x63a   :  { %4306 = vmatpush.msrb.mxu2 %v8350_v9  ;;  %3716 = vmatmul.f32.gmra.mxu0 %v3715_v62  ;;  %v4384_v62 = vand.u32 4294901760, %v4383_v32  ;;  %v4389_v4 = vsub.f32 %v8433_v59, %v10022_v53  ;;  %v10024_v32 = vand.u32 4294901760, %v8448_v63  ;;  %v8526_v37 = vand.u32 4294901760, %v4272_v36 }
 0x63b   :  { %3790 = vmatmul.f32.vlgmr.msra.gmra.mxu1 %v8318_v22  ;;  %3907 = vmatmul.f32.gmra.mxu3 %v10021_v47  ;;  %v8510_v53 = vsub.f32 %v4274_v2, %v8482_v31  ;;  %v3415_v2 = vld [vmem:[%s9875_s2 + $0xa0] sm:$0xff]  ;;  %v10026_v0 = vand.u32 4294901760, %v8471_v5  ;;  %v8546_v14 = vand.u32 4294901760, %v4271_v56 }
 0x63c   :  { %4015 = vmatpush.msrb.mxu1 %v3701_v13  ;;  %3847 = vmatmul.f32.gmra.mxu2 %v8360_v61  ;;  %v10023_v61 = vand.u32 4294901760, %v8367_v52  ;;  %v4395_v47 = vsub.f32 %v8448_v63, %v10024_v32  ;;  %v4401_v32 = vsub.f32 %v8466_v7, %v9892_v27  ;;  %v8529_v13 = vsub.f32 %v4273_v15, %v8495_v1 }
 0x63d   :  { %4373 = vmatpush.msrb.mxu3 %v4372_v46  ;;  %4308 = vmatpush.msrb.mxu2 %v8362_v34  ;;  %v8504_v46 = vand.u32 4294901760, %v3672_v23  ;;  %v3675_v6 = vsel %vm396_vm7, %v3415_v2, 0  ;;  %v8558_v42 = vsub.f32 %v4272_v36, %v8526_v37  ;;  %v4269_v2 = vld [vmem:[%s9874_s1] sm:$0xff]  ;;  %v10031_v36 = vand.u32 4294901760, %v8510_v53 }
 0x63e   :  { %4570 = vmatpush.msra.mxu0 %v10023_v61  ;;  %4633 = vmatpush.msra.mxu1 %v8330_v43  ;;  %v10025_v61 = vand.u32 4294901760, %v8378_v58  ;;  %v4396_v27 = vand.u32 4294901760, %v4395_v47  ;;  %v8588_v16 = vand.u32 4294901760, %v4269_v2 }
 0x63f   :  { %4379 = vmatpush.msrb.mxu3 %v4378_v8  ;;  %4310 = vmatpush.msrb.mxu2 %v8375_v24  ;;  %v4390_v8 = vand.u32 4294901760, %v4389_v4  ;;  %v4270_v4 = vld [vmem:[%s9874_s1 + $0x8] sm:$0xff]  ;;  %v8543_v15 = vsub.f32 %v3672_v23, %v8504_v46  ;;  %v4402_v23 = vand.u32 4294901760, %v4401_v32  ;;  %v4413_v32 = vsub.f32 %v8510_v53, %v10031_v36 }
 0x640   :  { %4574 = vmatpush.msra.mxu0 %v10025_v61  ;;  %4635 = vmatpush.msra.mxu1 %v8341_v45  ;;  %v10027_v61 = vand.u32 4294901760, %v8394_v38  ;;  %v8560_v48 = vand.u32 4294901760, %v4270_v4 }
 0x641   :  { %4385 = vmatpush.msrb.mxu3 %v4384_v62  ;;  %v3730_v62 = vsub.f32 %v8471_v5, %v10026_v0  ;;  %4312 = vmatpush.msrb.mxu2 %v8387_v50  ;;  %v10028_v0 = vand.u32 4294901760, %v8418_v29 }
 0x642   :  { %4578 = vmatpush.msra.mxu0 %v10027_v61  ;;  %v10029_v61 = vand.u32 4294901760, %v8488_v39  ;;  %4637 = vmatpush.msra.mxu1 %v8350_v9  ;;  %v8591_v35 = vsub.f32 %v4270_v4, %v8560_v48  ;;  %v10035_v4 = vand.u32 4294901760, %v8471_v5 }
 0x643   :  { %3724 = vmatmul.f32.gmra.mxu0 %v3723_v41  ;;  %3794 = vmatmul.f32.gmra.mxu1 %v8336_v10 }
 0x644   :  { %3913 = vmatmul.f32.gmra.mxu3 %v10028_v0  ;;  %4314 = vmatpush.msrb.mxu2 %v8406_v44  ;;  %v4407_v41 = vsub.f32 %v8488_v39, %v10029_v61  ;;  %v3731_v0 = vand.u32 4294901760, %v3730_v62  ;;  %v10030_v61 = vand.u32 4294901760, %v8409_v26  ;;  %v8575_v62 = vsub.f32 %v4271_v56, %v8546_v14 }
 0x645   :  { %3852 = vmatmul.f32.gmra.mxu2 %v8418_v29  ;;  %4391 = vmatpush.msrb.mxu3 %v4390_v8  ;;  %v3737_v29 = vand.u32 4294901760, %v8543_v15  ;;  %v8569_v8 = vand.u32 4294901760, %v3675_v6  ;;  %v4424_v56 = vand.u32 4294901760, %v8558_v42  ;;  %v9898_v55 = vand.u32 4294901760, %v8591_v35 }
 0x646   :  { %4316 = vmatpush.msrb.mxu2 %v8422_v20  ;;  %4582 = vmatpush.msra.mxu0 %v10030_v61  ;;  %v4408_v47 = vand.u32 4294901760, %v4407_v41  ;;  %v10033_v61 = vand.u32 4294901760, %v8529_v13 }
 0x647   :  { %4397 = vmatpush.msrb.mxu3 %v4396_v27  ;;  %v3416_v27 = vld [vmem:[%s9875_s2 + $0xb0] sm:$0xff]  ;;  %4639 = vmatpush.msra.mxu1 %v8362_v34  ;;  %v3738_v41 = vsub.f32 %v8543_v15, %v3737_v29 }
 0x648   :  { %4318 = vmatpush.msrb.mxu2 %v8435_v49  ;;  %4586 = vmatpush.msra.mxu0 %v10032_v60  ;;  %v4419_v36 = vsub.f32 %v8529_v13, %v10033_v61  ;;  %v10034_v60 = vand.u32 4294901760, %v8448_v63  ;;  %v4414_v61 = vand.u32 4294901760, %v4413_v32  ;;  %v3678_v12 = vsel %vm396_vm7, %v3416_v27, 0 }
 0x649   :  { %4403 = vmatpush.msrb.mxu3 %v4402_v23  ;;  %v8600_v23 = vsub.f32 %v3675_v6, %v8569_v8  ;;  %v8611_v6 = vsub.f32 %v4269_v2, %v8588_v16  ;;  %v10036_v32 = vand.u32 4294901760, %v8466_v7  ;;  %v8617_v27 = vand.u32 4294901760, %v3678_v12  ;;  %4641 = vmatpush.msra.mxu1 %v8375_v24 }
 0x64a   :  { %4320 = vmatpush.msrb.mxu2 %v8453_v17  ;;  %4590 = vmatpush.msra.mxu0 %v10034_v60  ;;  %v4425_v60 = vsub.f32 %v8558_v42, %v4424_v56  ;;  %v10038_v2 = vand.u32 4294901760, %v8488_v39 }
 0x64b   :  { %3732 = vmatmul.f32.gmra.mxu0 %v3731_v0  ;;  %3798 = vmatmul.f32.gmra.mxu1 %v8385_v21  ;;  %v4420_v0 = vand.u32 4294901760, %v4419_v36  ;;  %v3745_v54 = vand.u32 4294901760, %v8600_v23 }
 0x64c   :  { %3919 = vmatmul.f32.gmra.mxu3 %v10035_v4  ;;  %4322 = vmatpush.msrb.mxu2 %v8482_v31  ;;  %v3739_v4 = vand.u32 4294901760, %v3738_v41  ;;  %v4426_v36 = vand.u32 4294901760, %v4425_v60  ;;  %v4437_v41 = vsub.f32 %v8591_v35, %v9898_v55  ;;  %v3752_v60 = vsub.f32 %v3678_v12, %v8617_v27 }
 0x64d   :  { %3857 = vmatmul.f32.gmra.mxu2 %v8471_v5  ;;  %4409 = vmatpush.msrb.mxu3 %v4408_v47  ;;  %v10037_v5 = vand.u32 4294901760, %v8575_v62 }
 0x64e   :  { %4324 = vmatpush.msrb.mxu2 %v8495_v1  ;;  %4594 = vmatpush.msra.mxu0 %v10036_v32  ;;  %v4442_v32 = vand.u32 4294901760, %v8611_v6  ;;  %v4438_v51 = vand.u32 4294901760, %v4437_v41 }
 0x64f   :  { %4415 = vmatpush.msrb.mxu3 %v4414_v61  ;;  %v4431_v47 = vsub.f32 %v8575_v62, %v10037_v5  ;;  %v3417_v61 = vld [vmem:[%s9875_s2 + $0xc0] sm:$0xff]  ;;  %4643 = vmatpush.msra.mxu1 %v8387_v50  ;;  %v10039_v5 = vand.u32 4294901760, %v8510_v53 }
 0x650   :  { %4326 = vmatpush.msrb.mxu2 %v8526_v37  ;;  %4598 = vmatpush.msra.mxu0 %v10038_v2  ;;  %v3681_v55 = vsel %vm396_vm7, %v3417_v61, 0  ;;  %v4443_v25 = vsub.f32 %v8611_v6, %v4442_v32 }
 0x651   :  { %4421 = vmatpush.msrb.mxu3 %v4420_v0  ;;  %v3746_v0 = vsub.f32 %v8600_v23, %v3745_v54  ;;  %v4432_v2 = vand.u32 4294901760, %v4431_v47  ;;  %4645 = vmatpush.msra.mxu1 %v8406_v44  ;;  %v8647_v12 = vand.u32 4294901760, %v3681_v55 }
 0x652   :  { %4328 = vmatpush.msrb.mxu2 %v8546_v14  ;;  %4602 = vmatpush.msra.mxu0 %v10039_v5  ;;  %v3753_v5 = vand.u32 4294901760, %v3752_v60 }
 0x653   :  { %3740 = vmatmul.f32.gmra.mxu0 %v3739_v4  ;;  %3802 = vmatmul.f32.gmra.mxu1 %v8440_v40  ;;  %v3747_v4 = vand.u32 4294901760, %v3746_v0 }
 0x654   :  { %3925 = vmatmul.f32.gmra.mxu3 %v3737_v29  ;;  %4330 = vmatpush.msrb.mxu2 %v8560_v48  ;;  %v10040_v29 = vand.u32 4294901760, %v8529_v13  ;;  %v3754_v47 = vsub.f32 %v3752_v60, %v3753_v5 }
 0x655   :  { %3862 = vmatmul.f32.gmra.mxu2 %v8543_v15  ;;  %4427 = vmatpush.msrb.mxu3 %v4426_v36  ;;  %v4444_v15 = vand.u32 4294901760, %v4443_v25  ;;  %v8659_v36 = vadd.f32 %v8023_v28, %v7911_v18  ;;  %v10043_v28 = vand.u32 4294901760, %v8591_v35 }
 0x656   :  { %4332 = vmatpush.msrb.mxu2 %v8588_v16  ;;  %4606 = vmatpush.msra.mxu0 %v10040_v29  ;;  %v3755_v25 = vand.u32 4294901760, %v3754_v47  ;;  %v4291_v29 = vld [vmem:[%s9874_s1 + $0xb0] sm:$0xff] }
 0x657   :  { %4433 = vmatpush.msrb.mxu3 %v4432_v2  ;;  %4647 = vmatpush.msra.mxu1 %v8422_v20  ;;  %10041 = vst [vmem:[#allocation98_spill] sm:$0xff] %v8659_v36 }
 0x658   :  { %4457 = vmatpush.msra.mxu2 %v8339_v33  ;;  %4610 = vmatpush.msra.mxu0 %v4424_v56  ;;  %v3760_v33 = vsub.f32 %v3681_v55, %v8647_v12  ;;  %v8670_v55 = vand.u32 4294901760, %v8659_v36  ;;  %v4294_v56 = vld [vmem:[%s9874_s1 + $0xc8] sm:$0xff] }
 0x659   :  { %4439 = vmatpush.msrb.mxu3 %v4438_v51  ;;  %4649 = vmatpush.msra.mxu1 %v8435_v49  ;;  %v8783_v61 = vand.u32 4294901760, %v4294_v56 }
 0x65a   :  { %4460 = vmatpush.msra.mxu2 %v8353_v19  ;;  %v3761_v51 = vand.u32 4294901760, %v3760_v33  ;;  %v10042_v19 = vand.u32 4294901760, %v8575_v62 }
 0x65b   :  { %3748 = vmatmul.f32.gmra.mxu0 %v3747_v4  ;;  %3806 = vmatmul.f32.gmra.mxu1 %v8504_v46 }
 0x65c   :  { %3931 = vmatmul.f32.gmra.mxu3 %v3745_v54  ;;  %4463 = vmatpush.msra.mxu2 %v8367_v52  ;;  %v3762_v54 = vsub.f32 %v3760_v33, %v3761_v51 }
 0x65d   :  { %3867 = vmatmul.f32.gmra.mxu2 %v8600_v23  ;;  %4445 = vmatpush.msrb.mxu3 %v4444_v15  ;;  %v8816_v15 = vsub.f32 %v4294_v56, %v8783_v61 }
 0x65e   :  { %4466 = vmatpush.msra.mxu2 %v8378_v58  ;;  %4614 = vmatpush.msra.mxu0 %v10042_v19  ;;  %v8685_v58 = vsub.f32 %v8659_v36, %v8670_v55  ;;  %v4290_v19 = vld [vmem:[%s9874_s1 + $0xa8] sm:$0xff] }
 0x65f   :  { %4515 = vmatpush.msra.mxu3 %v8330_v43  ;;  %4651 = vmatpush.msra.mxu1 %v8453_v17  ;;  %v8681_v43 = vadd.f32 %v7935_v30, %v7911_v18 }
 0x660   :  { %4469 = vmatpush.msra.mxu2 %v8394_v38  ;;  %4618 = vmatpush.msra.mxu0 %v10043_v28  ;;  %v4335_v30 = vand.u32 4294901760, %v8685_v58 }
 0x661   :  { %4517 = vmatpush.msra.mxu3 %v8341_v45  ;;  %4653 = vmatpush.msra.mxu1 %v8482_v31  ;;  %10044 = vst [vmem:[#allocation99_spill] sm:$0xff] %v8681_v43  ;;  %v8693_v18 = vand.u32 4294901760, %v8681_v43  ;;  %v4299_v45 = vld [vmem:[%s9874_s1 + $0xf0] sm:$0xff] }
 0x662   :  { %4472 = vmatpush.msra.mxu2 %v8409_v26  ;;  %4622 = vmatpush.msra.mxu0 %v4442_v32 }
 0x663   :  { %4519 = vmatpush.msra.mxu3 %v8350_v9  ;;  %3756 = vmatmul.f32.gmra.mxu0 %v3755_v25  ;;  %v3763_v9 = vand.u32 4294901760, %v3762_v54 }
 0x664   :  { %3810 = vmatmul.f32.gmra.mxu1 %v8569_v8  ;;  %3937 = vmatmul.f32.gmra.mxu3 %v3753_v5 }
 0x665   :  { %4475 = vmatpush.msra.mxu2 %v8433_v59  ;;  %4521 = vmatpush.msra.mxu3 %v8362_v34  ;;  %v4336_v34 = vsub.f32 %v8685_v58, %v4335_v30 }
 0x666   :  { %3872 = vmatmul.f32.gmra.mxu2 %v3752_v60  ;;  %4655 = vmatpush.msra.mxu1 %v8495_v1 }
 0x667   :  { %4478 = vmatpush.msra.mxu2 %v8448_v63  ;;  %4523 = vmatpush.msra.mxu3 %v8375_v24  ;;  %v4337_v24 = vand.u32 4294901760, %v4336_v34  ;;  %v9904_v34 = vand.u32 4294901760, %v8816_v15 }
 0x668   :  { %4657 = vmatpush.msra.mxu1 %v8526_v37 }
 0x669   :  { %4481 = vmatpush.msra.mxu2 %v8466_v7  ;;  %4525 = vmatpush.msra.mxu3 %v8387_v50  ;;  %v8707_v50 = vsub.f32 %v8681_v43, %v8693_v18 }
 0x66a   :  { %4659 = vmatpush.msra.mxu1 %v8546_v14 }
 0x66b   :  { %4484 = vmatpush.msra.mxu2 %v8488_v39  ;;  %3764 = vmatmul.f32.gmra.mxu0 %v3763_v9  ;;  %v4300_v39 = vld [vmem:[%s9874_s1 + $0xf8] sm:$0xff]  ;;  %v4343_v38 = vand.u32 4294901760, %v8707_v50 }
 0x66c   :  { %3814 = vmatmul.f32.gmra.mxu1 %v8617_v27  ;;  %3943 = vmatmul.f32.gmra.mxu3 %v3761_v51  ;;  %v8719_v52 = vand.u32 4294901760, %v4300_v39  ;;  %v8828_v51 = vand.u32 4294901760, %v4291_v29 }
 0x66d   :  { %4487 = vmatpush.msra.mxu2 %v8510_v53  ;;  %4527 = vmatpush.msra.mxu3 %v8406_v44  ;;  %v4298_v44 = vld [vmem:[%s9874_s1 + $0xe8] sm:$0xff]  ;;  %v4344_v59 = vsub.f32 %v8707_v50, %v4343_v38 }
 0x66e   :  { %3877 = vmatmul.f32.gmra.mxu2 %v3760_v33  ;;  %4661 = vmatpush.msra.mxu1 %v8560_v48  ;;  %v8739_v26 = vsub.f32 %v4300_v39, %v8719_v52  ;;  %v8741_v63 = vand.u32 4294901760, %v4298_v44 }
 0x66f   :  { %4490 = vmatpush.msra.mxu2 %v8529_v13  ;;  %4529 = vmatpush.msra.mxu3 %v8422_v20  ;;  %v8728_v20 = vand.u32 4294901760, %v4299_v45 }
 0x670   :  { %4663 = vmatpush.msra.mxu1 %v8588_v16  ;;  %v4724_v13 = vand.u32 4294901760, %v8739_v26  ;;  %v8764_v53 = vsub.f32 %v4298_v44, %v8741_v63  ;;  %v8857_v44 = vand.u32 4294901760, %v4290_v19 }
 0x671   :  { %4493 = vmatpush.msra.mxu2 %v8558_v42  ;;  %4531 = vmatpush.msra.mxu3 %v8435_v49  ;;  %v4297_v42 = vld [vmem:[%s9874_s1 + $0xe0] sm:$0xff]  ;;  %v4296_v49 = vld [vmem:[%s9874_s1 + $0xd8] sm:$0xff] }
 0x672   :  { %v8754_v7 = vand.u32 4294901760, %v4297_v42  ;;  %v4725_v32 = vsub.f32 %v8739_v26, %v4724_v13  ;;  %v4736_v0 = vand.u32 4294901760, %v8764_v53 }
 0x673   :  { %4496 = vmatpush.msra.mxu2 %v8575_v62  ;;  %3967 = vmatmul.f32.vlgmr.msrb.gmra.mxu0 %v8318_v22  ;;  %v8766_v62 = vand.u32 4294901760, %v4296_v49 }
 0x674   :  { %3818 = vmatmul.f32.gmra.mxu1 %v8647_v12  ;;  %4447 = vmatmul.f32.vlgmr.msrb.gmra.mxu3 %v8670_v55  ;;  %v4737_v47 = vsub.f32 %v8764_v53, %v4736_v0 }
 0x675   :  { %4499 = vmatpush.msra.mxu2 %v8591_v35  ;;  %4533 = vmatpush.msra.mxu3 %v8453_v17  ;;  %v8752_v35 = vsub.f32 %v4299_v45, %v8728_v20  ;;  %v4295_v17 = vld [vmem:[%s9874_s1 + $0xd0] sm:$0xff]  ;;  %v8795_v60 = vsub.f32 %v4296_v49, %v8766_v62 }
 0x676   :  { %4338 = vmatmul.f32.vlgmr.msrb.gmra.mxu2 %v4337_v24  ;;  %4829 = vmatpush.msrb.mxu0 %v8739_v26  ;;  %v8778_v41 = vand.u32 4294901760, %v4295_v17  ;;  %v4738_v39 = vand.u32 4294901760, %v4737_v47 }
 0x677   :  { %4502 = vmatpush.msra.mxu2 %v8611_v6  ;;  %4535 = vmatpush.msra.mxu3 %v8482_v31  ;;  %v4345_v31 = vand.u32 4294901760, %v4344_v59  ;;  %v4730_v23 = vand.u32 4294901760, %v8752_v35  ;;  %v8776_v6 = vsub.f32 %v4297_v42, %v8754_v7  ;;  %v4748_v33 = vand.u32 4294901760, %v8795_v60  ;;  %v4288_v59 = vld [vmem:[%s9874_s1 + $0x98] sm:$0xff] }
 0x678   :  { %4832 = vmatpush.msrb.mxu0 %v8752_v35  ;;  %v8808_v4 = vsub.f32 %v4295_v17, %v8778_v41  ;;  %v8867_v42 = vsub.f32 %v4291_v29, %v8828_v51 }
 0x679   :  { %4674 = vmatpush.msrb.mxu2 %v8719_v52  ;;  %4537 = vmatpush.msra.mxu3 %v8495_v1  ;;  %v4293_v1 = vld [vmem:[%s9874_s1 + $0xc0] sm:$0xff]  ;;  %v4742_v2 = vand.u32 4294901760, %v8776_v6  ;;  %v4749_v45 = vsub.f32 %v8795_v60, %v4748_v33 }
 0x67a   :  { %4835 = vmatpush.msrb.mxu0 %v8764_v53  ;;  %v8810_v5 = vand.u32 4294901760, %v4293_v1  ;;  %v9905_v54 = vand.u32 4294901760, %v8808_v4  ;;  %v4778_v29 = vand.u32 4294901760, %v8867_v42  ;;  %v10048_v53 = vand.u32 4294901760, %v8816_v15 }
 0x67b   :  { %4676 = vmatpush.msrb.mxu2 %v8728_v20  ;;  %3971 = vmatmul.f32.gmra.mxu0 %v8336_v10  ;;  %v4743_v28 = vsub.f32 %v8776_v6, %v4742_v2 }
 0x67c   :  { %4017 = vmatmul.f32.vlgmr.msrb.gmra.mxu1 %v8318_v22  ;;  %4539 = vmatpush.msra.mxu3 %v8526_v37  ;;  %v4292_v22 = vld [vmem:[%s9874_s1 + $0xb8] sm:$0xff]  ;;  %v4731_v37 = vsub.f32 %v8752_v35, %v4730_v23  ;;  %v8842_v9 = vsub.f32 %v4293_v1, %v8810_v5  ;;  %v4755_v17 = vsub.f32 %v8808_v4, %v9905_v54 }
 0x67d   :  { %4678 = vmatpush.msrb.mxu2 %v8741_v63  ;;  %4451 = vmatmul.f32.gmra.mxu3 %v8693_v18  ;;  %v8826_v25 = vand.u32 4294901760, %v4292_v22  ;;  %v4744_v49 = vand.u32 4294901760, %v4743_v28  ;;  %v8946_v54 = vadd.f32 %v7947_v57, %v7913_v11 }
 0x67e   :  { %4346 = vmatmul.f32.gmra.mxu2 %v4345_v31  ;;  %4541 = vmatpush.msra.mxu3 %v8546_v14  ;;  %v4726_v14 = vand.u32 4294901760, %v4725_v32  ;;  %v4750_v31 = vand.u32 4294901760, %v4749_v45  ;;  %v8890_v32 = vsub.f32 %v4290_v19, %v8857_v44  ;;  %v4756_v47 = vand.u32 4294901760, %v4755_v17  ;;  %v4285_v45 = vld [vmem:[%s9874_s1 + $0x80] sm:$0xff] }
 0x67f   :  { %4680 = vmatpush.msrb.mxu2 %v8754_v7  ;;  %4838 = vmatpush.msrb.mxu0 %v8776_v6  ;;  %v8855_v24 = vsub.f32 %v4292_v22, %v8826_v25  ;;  %v8892_v22 = vand.u32 4294901760, %v4288_v59  ;;  %10046 = vst [vmem:[#allocation101_spill] sm:$0xff] %v8946_v54  ;;  %v10049_v6 = vand.u32 4294901760, %v8842_v9 }
 0x680   :  { %4887 = vmatpush.msrb.mxu1 %v8719_v52  ;;  %4543 = vmatpush.msra.mxu3 %v8560_v48  ;;  %v4732_v48 = vand.u32 4294901760, %v4731_v37 }
 0x681   :  { %4682 = vmatpush.msrb.mxu2 %v8766_v62  ;;  %4841 = vmatpush.msrb.mxu0 %v8795_v60  ;;  %v9903_v1 = vand.u32 4294901760, %v8855_v24  ;;  %v8923_v17 = vsub.f32 %v4288_v59, %v8892_v22 }
 0x682   :  { %4889 = vmatpush.msrb.mxu1 %v8728_v20  ;;  %4545 = vmatpush.msra.mxu3 %v8588_v16  ;;  %v4289_v16 = vld [vmem:[%s9874_s1 + $0xa0] sm:$0xff] }
 0x683   :  { %4684 = vmatpush.msrb.mxu2 %v8778_v41  ;;  %3975 = vmatmul.f32.gmra.mxu0 %v8385_v21  ;;  %v8877_v56 = vand.u32 4294901760, %v4289_v16 }
 0x684   :  { %4021 = vmatmul.f32.gmra.mxu1 %v8336_v10  ;;  %4727 = vmatpush.msrb.mxu3 %v4726_v14  ;;  %v8861_v10 = vadd.f32 %v8025_v3, %v7913_v11  ;;  %v9902_v3 = vand.u32 4294901760, %v8842_v9  ;;  %v4286_v14 = vld [vmem:[%s9874_s1 + $0x88] sm:$0xff] }
 0x685   :  { %4686 = vmatpush.msrb.mxu2 %v8783_v61  ;;  %4549 = vmatmul.f32.vlgmr.msra.gmra.mxu3 %v4335_v30  ;;  %v4287_v30 = vld [vmem:[%s9874_s1 + $0x90] sm:$0xff] }
 0x686   :  { %10045 = vst [vmem:[#allocation100_spill] sm:$0xff] %v8861_v10  ;;  %4505 = vmatmul.f32.vlgmr.msra.gmra.mxu2 %v8685_v58  ;;  %4733 = vmatpush.msrb.mxu3 %v4732_v48  ;;  %v4761_v58 = vsub.f32 %v8816_v15, %v9904_v34  ;;  %v8895_v37 = vand.u32 4294901760, %v8861_v10  ;;  %v4767_v19 = vsub.f32 %v8842_v9, %v9902_v3  ;;  %v8910_v28 = vand.u32 4294901760, %v4287_v30 }
 0x687   :  { %4688 = vmatpush.msrb.mxu2 %v8810_v5  ;;  %4844 = vmatpush.msrb.mxu0 %v8808_v4  ;;  %v8908_v48 = vsub.f32 %v4289_v16, %v8877_v56  ;;  %v4784_v16 = vand.u32 4294901760, %v8890_v32  ;;  %v8925_v3 = vand.u32 4294901760, %v4286_v14  ;;  %v8942_v34 = vand.u32 4294901760, %v4285_v45 }
 0x688   :  { %4891 = vmatpush.msrb.mxu1 %v8741_v63  ;;  %4739 = vmatpush.msrb.mxu3 %v4738_v39  ;;  %v4762_v39 = vand.u32 4294901760, %v4761_v58  ;;  %v4779_v58 = vsub.f32 %v8867_v42, %v4778_v29 }
 0x689   :  { %4690 = vmatpush.msrb.mxu2 %v8826_v25  ;;  %4847 = vmatpush.msrb.mxu0 %v8816_v15  ;;  %v9906_v59 = vand.u32 4294901760, %v8908_v48 }
 0x68a   :  { %4893 = vmatpush.msrb.mxu1 %v8754_v7  ;;  %4745 = vmatpush.msrb.mxu3 %v4744_v49  ;;  %v4773_v49 = vsub.f32 %v8855_v24, %v9903_v1  ;;  %v8940_v1 = vsub.f32 %v4287_v30, %v8910_v28  ;;  %v9907_v30 = vand.u32 4294901760, %v8923_v17 }
 0x68b   :  { %4692 = vmatpush.msrb.mxu2 %v8828_v51  ;;  %3979 = vmatmul.f32.gmra.mxu0 %v8440_v40  ;;  %v4791_v57 = vsub.f32 %v8908_v48, %v9906_v59 }
 0x68c   :  { %4025 = vmatmul.f32.gmra.mxu1 %v8385_v21  ;;  %4751 = vmatpush.msrb.mxu3 %v4750_v31  ;;  %v8929_v21 = vsub.f32 %v8861_v10, %v8895_v37  ;;  %v4768_v31 = vand.u32 4294901760, %v4767_v19  ;;  %v4780_v19 = vand.u32 4294901760, %v4779_v58  ;;  %v4802_v11 = vand.u32 4294901760, %v8940_v1 }
 0x68d   :  { %4694 = vmatpush.msrb.mxu2 %v8857_v44  ;;  %4555 = vmatmul.f32.gmra.mxu3 %v4343_v38  ;;  %v4785_v38 = vsub.f32 %v8890_v32, %v4784_v16 }
 0x68e   :  { %4510 = vmatmul.f32.gmra.mxu2 %v8707_v50  ;;  %4757 = vmatpush.msrb.mxu3 %v4756_v47  ;;  %v4774_v50 = vand.u32 4294901760, %v4773_v49  ;;  %v8956_v47 = vsub.f32 %v4286_v14, %v8925_v3  ;;  %v9908_v14 = vand.u32 4294901760, %v8929_v21  ;;  %v8970_v49 = vand.u32 4294901760, %v8946_v54 }
 0x68f   :  { %4696 = vmatpush.msrb.mxu2 %v8877_v56  ;;  %4850 = vmatpush.msrb.mxu0 %v8842_v9  ;;  %v4786_v58 = vand.u32 4294901760, %v4785_v38 }
 0x690   :  { %4895 = vmatpush.msrb.mxu1 %v8766_v62  ;;  %4763 = vmatpush.msrb.mxu3 %v4762_v39  ;;  %v8966_v39 = vsub.f32 %v4285_v45, %v8942_v34  ;;  %v4808_v45 = vand.u32 4294901760, %v8956_v47  ;;  %v4708_v59 = vsub.f32 %v8929_v21, %v9908_v14 }
 0x691   :  { %4698 = vmatpush.msrb.mxu2 %v8892_v22  ;;  %4853 = vmatpush.msrb.mxu0 %v8855_v24 }
 0x692   :  { %4897 = vmatpush.msrb.mxu1 %v8778_v41  ;;  %4769 = vmatpush.msrb.mxu3 %v4768_v31  ;;  %v4797_v31 = vsub.f32 %v8923_v17, %v9907_v30  ;;  %v4814_v38 = vand.u32 4294901760, %v8966_v39  ;;  %v4709_v30 = vand.u32 4294901760, %v4708_v59 }
 0x693   :  { %4700 = vmatpush.msrb.mxu2 %v8910_v28  ;;  %3983 = vmatmul.f32.gmra.mxu0 %v8504_v46 }
 0x694   :  { %4029 = vmatmul.f32.gmra.mxu1 %v8440_v40  ;;  %4775 = vmatpush.msrb.mxu3 %v4774_v50  ;;  %v4792_v40 = vand.u32 4294901760, %v4791_v57  ;;  %v4803_v50 = vsub.f32 %v8940_v1, %v4802_v11  ;;  %v4798_v14 = vand.u32 4294901760, %v4797_v31  ;;  %v8997_v57 = vsub.f32 %v8946_v54, %v8970_v49 }
 0x695   :  { %4702 = vmatpush.msrb.mxu2 %v8925_v3  ;;  %4856 = vmatpush.msrb.mxu0 %v8867_v42 }
 0x696   :  { %4899 = vmatpush.msrb.mxu1 %v8783_v61  ;;  %4781 = vmatpush.msrb.mxu3 %v4780_v19  ;;  %v4809_v19 = vsub.f32 %v8956_v47, %v4808_v45  ;;  %v4804_v26 = vand.u32 4294901760, %v4803_v50  ;;  %v4715_v59 = vand.u32 4294901760, %v8997_v57 }
 0x697   :  { %4704 = vmatpush.msrb.mxu2 %v8942_v34  ;;  %4859 = vmatpush.msrb.mxu0 %v8890_v32 }
 0x698   :  { %4787 = vmatpush.msrb.mxu3 %v4786_v58  ;;  %4710 = vmatmul.f32.vlgmr.msrb.gmra.mxu2 %v4709_v30  ;;  %v4810_v30 = vand.u32 4294901760, %v4809_v19  ;;  %v4716_v35 = vsub.f32 %v8997_v57, %v4715_v59 }
 0x699   :  { %4934 = vmatpush.msra.mxu2 %v4724_v13  ;;  %4862 = vmatpush.msrb.mxu0 %v8908_v48  ;;  %v4815_v13 = vsub.f32 %v8966_v39, %v4814_v38 }
 0x69a   :  { %4793 = vmatpush.msrb.mxu3 %v4792_v40  ;;  %4901 = vmatpush.msrb.mxu1 %v8810_v5  ;;  %v4717_v58 = vand.u32 4294901760, %v4716_v35 }
 0x69b   :  { %4938 = vmatpush.msra.mxu2 %v4730_v23  ;;  %3987 = vmatmul.f32.gmra.mxu0 %v8569_v8  ;;  %v4816_v23 = vand.u32 4294901760, %v4815_v13 }
 0x69c   :  { %4033 = vmatmul.f32.gmra.mxu1 %v8504_v46  ;;  %4799 = vmatpush.msrb.mxu3 %v4798_v14  ;;  %v10047_v46 = vand.u32 4294901760, %v8808_v4  ;;  %v10053_v4 = vand.u32 4294901760, %v8929_v21 }
 0x69d   :  { %4942 = vmatpush.msra.mxu2 %v4736_v0  ;;  %4865 = vmatpush.msrb.mxu0 %v8923_v17 }
 0x69e   :  { %4903 = vmatpush.msrb.mxu1 %v8826_v25  ;;  %4805 = vmatpush.msrb.mxu3 %v4804_v26 }
 0x69f   :  { %4946 = vmatpush.msra.mxu2 %v4742_v2  ;;  %4868 = vmatpush.msrb.mxu0 %v8940_v1 }
 0x6a0   :  { %4905 = vmatpush.msrb.mxu1 %v8828_v51  ;;  %4811 = vmatpush.msrb.mxu3 %v4810_v30 }
 0x6a1   :  { %4950 = vmatpush.msra.mxu2 %v4748_v33  ;;  %4871 = vmatpush.msrb.mxu0 %v8956_v47 }
 0x6a2   :  { %4718 = vmatmul.f32.gmra.mxu2 %v4717_v58  ;;  %4817 = vmatpush.msrb.mxu3 %v4816_v23 }
 0x6a3   :  { %4954 = vmatpush.msra.mxu2 %v10047_v46  ;;  %3991 = vmatmul.f32.gmra.mxu0 %v8617_v27 }
 0x6a4   :  { %4037 = vmatmul.f32.gmra.mxu1 %v8569_v8  ;;  %5005 = vmatpush.msra.mxu3 %v8719_v52  ;;  %v10050_v8 = vand.u32 4294901760, %v8855_v24  ;;  %v10051_v52 = vand.u32 4294901760, %v8908_v48 }
 0x6a5   :  { %4958 = vmatpush.msra.mxu2 %v10048_v53  ;;  %4819 = vmatmul.f32.vlgmr.msrb.gmra.mxu3 %v8895_v37 }
 0x6a6   :  { %4907 = vmatpush.msrb.mxu1 %v8857_v44  ;;  %5007 = vmatpush.msra.mxu3 %v8728_v20 }
 0x6a7   :  { %4962 = vmatpush.msra.mxu2 %v10049_v6  ;;  %4874 = vmatpush.msrb.mxu0 %v8966_v39 }
 0x6a8   :  { %4909 = vmatpush.msrb.mxu1 %v8877_v56  ;;  %5009 = vmatpush.msra.mxu3 %v8741_v63 }
 0x6a9   :  { %4966 = vmatpush.msra.mxu2 %v10050_v8 }
 0x6aa   :  { %4911 = vmatpush.msrb.mxu1 %v8892_v22  ;;  %5011 = vmatpush.msra.mxu3 %v8754_v7 }
 0x6ab   :  { %4970 = vmatpush.msra.mxu2 %v4778_v29  ;;  %3995 = vmatmul.f32.gmra.mxu0 %v8647_v12 }
 0x6ac   :  { %4041 = vmatmul.f32.gmra.mxu1 %v8617_v27  ;;  %5013 = vmatpush.msra.mxu3 %v8766_v62  ;;  %v10052_v27 = vand.u32 4294901760, %v8923_v17 }
 0x6ad   :  { %4974 = vmatpush.msra.mxu2 %v4784_v16  ;;  %4823 = vmatmul.f32.gmra.mxu3 %v8970_v49 }
 0x6ae   :  { %4913 = vmatpush.msrb.mxu1 %v8910_v28  ;;  %5015 = vmatpush.msra.mxu3 %v8778_v41 }
 0x6af   :  { %4978 = vmatpush.msra.mxu2 %v10051_v52  ;;  %v3709_v20 = vpop.f32.mrf.mxu0 }
 0x6b0   :  { %4915 = vmatpush.msrb.mxu1 %v8925_v3  ;;  %5017 = vmatpush.msra.mxu3 %v8783_v61 }
 0x6b1   :  { %4982 = vmatpush.msra.mxu2 %v10052_v27 }
 0x6b2   :  { %4917 = vmatpush.msrb.mxu1 %v8942_v34  ;;  %5019 = vmatpush.msra.mxu3 %v8810_v5 }
 0x6b3   :  { %4986 = vmatpush.msra.mxu2 %v4802_v11  ;;  %4624 = vmatmul.f32.vlgmr.msra.gmra.mxu0 %v8670_v55 }
 0x6b4   :  { %4045 = vmatmul.f32.gmra.mxu1 %v8647_v12  ;;  %5021 = vmatpush.msra.mxu3 %v8826_v25 }
 0x6b5   :  { %4990 = vmatpush.msra.mxu2 %v4808_v45  ;;  %v3902_v61 = vpop.f32.mrf.mxu3 }
 0x6b6   :  { %5023 = vmatpush.msra.mxu3 %v8828_v51 }
 0x6b7   :  { %4994 = vmatpush.msra.mxu2 %v4814_v38  ;;  %v9071_v63 = vpop.f32.mrf.mxu0  ;;  %v3843_v12 = vpop.f32.mrf.mxu2 }
 0x6b8   :  { %4996 = vmatmul.f32.vlgmr.msra.gmra.mxu2 %v8895_v37  ;;  %v3791_v7 = vpop.f32.mrf.mxu1  ;;  %5025 = vmatpush.msra.mxu3 %v8857_v44 }
 0x6b9   :  { %v3792_v32 = vadd.f32 %v3791_v7, %v3709_v20 }
 0x6ba   :  { %5027 = vmatpush.msra.mxu3 %v8877_v56 }
 0x6bb   :  { %4628 = vmatmul.f32.gmra.mxu0 %v8693_v18  ;;  %v3844_v29 = vadd.f32 %v3843_v12, %v3792_v32 }
 0x6bc   :  { %4665 = vmatmul.f32.vlgmr.msra.gmra.mxu1 %v8670_v55  ;;  %5029 = vmatpush.msra.mxu3 %v8892_v22 }
 0x6bd   :  { %v3903_v16 = vadd.f32 %v3902_v61, %v3844_v29 }
 0x6be   :  { %5031 = vmatpush.msra.mxu3 %v8910_v28  ;;  %v9093_v2 = vpop.f32.mrf.mxu3 }
 0x6bf   :  { %v9091_v60 = vpop.f32.mrf.mxu2 }
 0x6c0   :  { %5000 = vmatmul.f32.gmra.mxu2 %v8970_v49  ;;  %v9080_v62 = vpop.f32.mrf.mxu0  ;;  %v9082_v41 = vpop.f32.mrf.mxu1  ;;  %5033 = vmatpush.msra.mxu3 %v8925_v3 }
 0x6c2   :  { %5035 = vmatpush.msra.mxu3 %v8942_v34 }
 0x6c3   :  { %4877 = vmatmul.f32.vlgmr.msrb.gmra.mxu0 %v8929_v21  ;;  %5037 = vmatmul.f32.vlgmr.msra.gmra.mxu3 %v8895_v37 }
 0x6c4   :  { %4669 = vmatmul.f32.gmra.mxu1 %v8693_v18 }
 0x6c7   :  { %v9105_v33 = vpop.f32.mrf.mxu3 }
 0x6c8   :  { %v3733_v55 = vpop.f32.mrf.mxu0  ;;  %v9089_v0 = vpop.f32.mrf.mxu1 }
 0x6c9   :  { %v9101_v15 = vpop.f32.mrf.mxu2 }
 0x6cb   :  { %4882 = vmatmul.f32.gmra.mxu0 %v8997_v57  ;;  %5041 = vmatmul.f32.gmra.mxu3 %v8970_v49 }
 0x6cc   :  { %4921 = vmatmul.f32.vlgmr.msrb.gmra.mxu1 %v10053_v4 }
 0x6cf   :  { %v3920_v34 = vpop.f32.mrf.mxu3 }
 0x6d0   :  { %v9099_v5 = vpop.f32.mrf.mxu0  ;;  %v3803_v18 = vpop.f32.mrf.mxu1 }
 0x6d1   :  { %v3858_v9 = vpop.f32.mrf.mxu2  ;;  %v3804_v45 = vadd.f32 %v3803_v18, %v3733_v55 }
 0x6d3   :  { %v3859_v57 = vadd.f32 %v3858_v9, %v3804_v45 }
 0x6d4   :  { %4927 = vmatmul.f32.gmra.mxu1 %v4715_v59 }
 0x6d5   :  { %v3921_v26 = vadd.f32 %v3920_v34, %v3859_v57 }
 0x6d7   :  { %v9117_v1 = vpop.f32.mrf.mxu3 }
 0x6d8   :  { %v9107_v25 = vpop.f32.mrf.mxu0  ;;  %v9109_v51 = vpop.f32.mrf.mxu1 }
 0x6d9   :  { %v9113_v42 = vpop.f32.mrf.mxu2 }
 0x6df   :  { %v9123_v28 = vpop.f32.mrf.mxu3 }
 0x6e0   :  { %v3757_v24 = vpop.f32.mrf.mxu0 }
 0x6e1   :  { %v9111_v44 = vpop.f32.mrf.mxu1  ;;  %v9121_v48 = vpop.f32.mrf.mxu2 }
 0x6e7   :  { %v3938_v14 = vpop.f32.mrf.mxu3 }
 0x6e8   :  { %v9115_v3 = vpop.f32.mrf.mxu0 }
 0x6e9   :  { %v3815_v56 = vpop.f32.mrf.mxu1  ;;  %v3873_v39 = vpop.f32.mrf.mxu2 }
 0x6ea   :  { %v3816_v52 = vadd.f32 %v3815_v56, %v3757_v24 }
 0x6ec   :  { %v3874_v7 = vadd.f32 %v3873_v39, %v3816_v52 }
 0x6ee   :  { %v3939_v55 = vadd.f32 %v3938_v14, %v3874_v7 }
 0x6ef   :  { %v9137_v50 = vpop.f32.mrf.mxu3 }
 0x6f0   :  { %v3968_v37 = vpop.f32.mrf.mxu0 }
 0x6f1   :  { %v9119_v22 = vpop.f32.mrf.mxu1  ;;  %v3969_v17 = vadd.f32 %v3968_v37, %v3903_v16  ;;  %v9135_v40 = vpop.f32.mrf.mxu2 }
 0x6f7   :  { %v4448_v59 = vpop.f32.mrf.mxu3 }
 0x6f8   :  { %v9125_v21 = vpop.f32.mrf.mxu0 }
 0x6f9   :  { %v4018_v47 = vpop.f32.mrf.mxu1  ;;  %v4339_v13 = vpop.f32.mrf.mxu2 }
 0x6fa   :  { %v9127_v11 = vadd.f32 %v4018_v47, %v3969_v17  ;;  %v4449_v56 = vadd.f32 %v4448_v59, %v4339_v13 }
 0x6fc   :  { %4057 = vrot.lane.b32.xlu0 %v9127_v11, %s6783_s28 }
 0x700   :  { %v9131_v49 = vpop.f32.mrf.mxu0  ;;  %v4452_v8 = vpop.f32.mrf.mxu3 }
 0x701   :  { %v9133_v31 = vpop.f32.mrf.mxu1  ;;  %v4347_v46 = vpop.f32.mrf.mxu2 }
 0x702   :  { %v4453_v45 = vadd.f32 %v4452_v8, %v4347_v46 }
 0x708   :  { %v3980_v38 = vpop.f32.mrf.mxu0  ;;  %v4550_v61 = vpop.f32.mrf.mxu3 }
 0x709   :  { %v9139_v19 = vpop.f32.mrf.mxu1  ;;  %v3981_v30 = vadd.f32 %v3980_v38, %v3921_v26  ;;  %v4506_v12 = vpop.f32.mrf.mxu2 }
 0x70a   :  { %v4507_v47 = vadd.f32 %v4506_v12, %v4449_v56 }
 0x70c   :  { %v4551_v38 = vadd.f32 %v4550_v61, %v4507_v47 }
 0x710   :  { %v9141_v35 = vpop.f32.mrf.mxu0  ;;  %v4556_v37 = vpop.f32.mrf.mxu3 }
 0x711   :  { %v4030_v23 = vpop.f32.mrf.mxu1  ;;  %v4511_v32 = vpop.f32.mrf.mxu2 }
 0x712   :  { %v9143_v58 = vadd.f32 %v4030_v23, %v3981_v30  ;;  %v4512_v30 = vadd.f32 %v4511_v32, %v4453_v45 }
 0x714   :  { %4063 = vrot.lane.b32.xlu0 %v9143_v58, %s6783_s28  ;;  %v4557_v7 = vadd.f32 %v4556_v37, %v4512_v30 }
 0x718   :  { %v9147_v53 = vpop.f32.mrf.mxu0 }
 0x719   :  { %v9149_v6 = vpop.f32.mrf.mxu1 }
 0x71b   :  { %v4711_v16 = vpop.f32.mrf.mxu2 }
 0x720   :  { %v3992_v20 = vpop.f32.mrf.mxu0 }
 0x721   :  { %v9151_v27 = vpop.f32.mrf.mxu1  ;;  %v3993_v4 = vadd.f32 %v3992_v20, %v3939_v55 }
 0x725   :  { %v4719_v26 = vpop.f32.mrf.mxu2 }
 0x728   :  { %v9153_v18 = vpop.f32.mrf.mxu0  ;;  %v4820_v17 = vpop.f32.mrf.mxu3 }
 0x729   :  { %v4042_v9 = vpop.f32.mrf.mxu1 }
 0x72a   :  { %v9155_v34 = vadd.f32 %v4042_v9, %v3993_v4 }
 0x72c   :  { %4069 = vrot.lane.b32.xlu0 %v9155_v34, %s6783_s28 }
 0x730   :  { %v4625_v24 = vpop.f32.mrf.mxu0  ;;  %v4824_v52 = vpop.f32.mrf.mxu3 }
 0x731   :  { %v9159_v29 = vpop.f32.mrf.mxu1  ;;  %v4626_v57 = vadd.f32 %v4625_v24, %v4551_v38 }
 0x738   :  { %v4629_v39 = vpop.f32.mrf.mxu0 }
 0x739   :  { %v4666_v14 = vpop.f32.mrf.mxu1  ;;  %v4630_v9 = vadd.f32 %v4629_v39, %v4557_v7  ;;  %v10056_v7 = vld [vmem:[#allocation41_spill] sm:$0xff] }
 0x73a   :  { %v4667_v23 = vadd.f32 %v4666_v14, %v4626_v57 }
 0x73b   :  { %v4997_v13 = vpop.f32.mrf.mxu2 }
 0x73c   :  { %v4712_v55 = vadd.f32 %v4711_v16, %v4667_v23 }
 0x73e   :  { %v4821_v54 = vadd.f32 %v4820_v17, %v4712_v55  ;;  %v10057_v55 = vld [vmem:[#allocation42_spill] sm:$0xff] }
 0x740   :  { %v4878_v4 = vpop.f32.mrf.mxu0 }
 0x741   :  { %v4670_v20 = vpop.f32.mrf.mxu1  ;;  %v4879_v59 = vadd.f32 %v4878_v4, %v4821_v54 }
 0x742   :  { %v4671_v10 = vadd.f32 %v4670_v20, %v4630_v9  ;;  %v5049_v9 = vpop.permute.xlu0 %5048 }
 0x743   :  { %v5001_v14 = vpop.f32.mrf.mxu2 }
 0x744   :  { %v4720_v56 = vadd.f32 %v4719_v26, %v4671_v10  ;;  %v10055_v26 = vld [vmem:[#allocation43_spill] sm:$0xff] }
 0x746   :  { %v5038_v12 = vpop.f32.mrf.mxu3  ;;  %v4825_v61 = vadd.f32 %v4824_v52, %v4720_v56 }
 0x748   :  { %v4883_v8 = vpop.f32.mrf.mxu0 }
 0x749   :  { %v4922_v43 = vpop.f32.mrf.mxu1  ;;  %v4884_v32 = vadd.f32 %v4883_v8, %v4825_v61 }
 0x74a   :  { %v4923_v36 = vadd.f32 %v4922_v43, %v4879_v59 }
 0x74c   :  { %v4998_v46 = vadd.f32 %v4997_v13, %v4923_v36  ;;  %v10054_v36 = vld [vmem:[#allocation40_spill] sm:$0xff] }
 0x74e   :  { %v5039_v24 = vadd.f32 %v5038_v12, %v4998_v46  ;;  %v5042_v16 = vpop.f32.mrf.mxu3  ;;  %v5217_v46 = vld [vmem:[%s9875_s2 + $0xe0] sm:$0xff] }
 0x74f   :  { %v5229_v8 = vsel %vm1969_vm10, %v5217_v46, 0  ;;  %5418 = vrot.lane.b32.xlu2 %v5217_v46, %s6779_s24 }
 0x750   :  { %v5069_v45 = vand.u32 4294901760, %v5039_v24 }
 0x751   :  { %v4928_v47 = vpop.f32.mrf.mxu1 }
 0x752   :  { %v4929_v37 = vadd.f32 %v4928_v47, %v4884_v32  ;;  %v5101_v39 = vsub.f32 %v5039_v24, %v5069_v45  ;;  %v5250_v47 = vand.u32 4294901760, %v5229_v8 }
 0x754   :  { %v5002_v38 = vadd.f32 %v5001_v14, %v4929_v37  ;;  %v5102_v54 = vand.u32 4294901760, %v5101_v39 }
 0x756   :  { %v5043_v17 = vadd.f32 %v5042_v16, %v5002_v38  ;;  %v5103_v23 = vsub.f32 %v5101_v39, %v5102_v54  ;;  %v5251_v16 = vsub.f32 %v5229_v8, %v5250_v47 }
 0x758   :  { %v5067_v57 = vand.u32 4294901760, %v5043_v17  ;;  %v5104_v20 = vand.u32 4294901760, %v5103_v23 }
 0x75a   :  { %v5095_v30 = vsub.f32 %v5043_v17, %v5067_v57  ;;  %5068 = vmatpush.msra.mxu0 %v5067_v57  ;;  %5204 = vmatpush.msrb.mxu3 %v5067_v57 }
 0x75c   :  { %v5096_v10 = vand.u32 4294901760, %v5095_v30  ;;  %5070 = vmatpush.msra.mxu0 %v5069_v45  ;;  %5206 = vmatpush.msrb.mxu3 %v5069_v45 }
 0x75d   :  { %5208 = vmatmul.f32.vlgmr.msrb.gmra.mxu3 %v10054_v36  ;;  %5076 = vmatmul.f32.vlgmr.msra.gmra.mxu0 %v10055_v26 }
 0x75e   :  { %5127 = vmatpush.msrb.mxu0 %v5095_v30  ;;  %v5097_v43 = vsub.f32 %v5095_v30, %v5096_v10  ;;  %5179 = vmatpush.msrb.mxu2 %v5096_v10 }
 0x760   :  { %5130 = vmatpush.msrb.mxu0 %v5101_v39  ;;  %5183 = vmatpush.msrb.mxu2 %v5102_v54  ;;  %v5098_v52 = vand.u32 4294901760, %v5097_v43  ;;  %v6742_v39 = vld [vmem:[%s9875_s2 + $0xf0] sm:$0xff] }
 0x761   :  { %5185 = vmatmul.f32.vlgmr.msrb.gmra.mxu2 %v10054_v36  ;;  %5420 = vrot.lane.b32.xlu2 %v6742_v39, %s6779_s24 }
 0x762   :  { %5099 = vmatpush.msra.mxu1 %v5098_v52 }
 0x764   :  { %5105 = vmatpush.msra.mxu1 %v5104_v20 }
 0x765   :  { %5107 = vmatmul.f32.vlgmr.msra.gmra.mxu1 %v10054_v36  ;;  %5133 = vmatmul.f32.vlgmr.msrb.gmra.mxu0 %v10056_v7 }
 0x766   :  { %5152 = vmatpush.msrb.mxu1 %v5067_v57  ;;  %v5252_v57 = vand.u32 4294901760, %v5251_v16 }
 0x768   :  { %5154 = vmatpush.msrb.mxu1 %v5069_v45  ;;  %v5253_v10 = vsub.f32 %v5251_v16, %v5252_v57 }
 0x769   :  { %5415 = vperm.xlu2 %6646, %v6742_v39  }
 0x76a   :  { %v5254_v26 = vand.u32 4294901760, %v5253_v10 }
 0x76d   :  { %5158 = vmatmul.f32.vlgmr.msrb.gmra.mxu1 %v10057_v55 }
 0x7da   :  { %v5077_v4 = vpop.f32.mrf.mxu0 }
 0x7db   :  { %v5078_v13 = vadd.f32 %v5077_v4, %v5049_v9  ;;  %v10058_v4 = vld [vmem:[#allocation45_spill] sm:$0xff]  ;;  %v10059_v9 = vmov 8  }
 0x7e0   :  { %v5209_v45 = vpop.f32.mrf.mxu3 }
 0x7e2   :  { %v5108_v59 = vpop.f32.mrf.mxu1  ;;  %v5134_v56 = vpop.f32.mrf.mxu0 }
 0x7e3   :  { %v5109_v12 = vadd.f32 %v5108_v59, %v5078_v13  ;;  %v10060_v13 = vld [vmem:[#allocation44_spill] sm:$0xff]  ;;  %v10061_v59 = vld [vmem:[#allocation46_spill] sm:$0xff] }
 0x7e4   :  { %v5186_v32 = vpop.f32.mrf.mxu2 }
 0x7e5   :  { %v5135_v61 = vadd.f32 %v5134_v56, %v5109_v12  ;;  %v10062_v12 = vld [vmem:[#allocation47_spill] sm:$0xff]  ;;  %v5419_v56 = vpop.permute.xlu2 %5418 }
 0x7e6   :  { %v5426_v8 = vsel %vm1969_vm10, %v5419_v56, 0 }
 0x7ea   :  { %v5159_v24 = vpop.f32.mrf.mxu1 }
 0x7eb   :  { %v5160_v14 = vadd.f32 %v5159_v24, %v5135_v61  ;;  %v5447_v61 = vand.u32 4294901760, %v5426_v8 }
 0x7ed   :  { %v5187_v37 = vadd.f32 %v5186_v32, %v5160_v14  ;;  %v5421_v24 = vpop.permute.xlu2 %5420  ;;  %v5448_v32 = vsub.f32 %v5426_v8, %v5447_v61 }
 0x7ef   :  { %v5210_v38 = vadd.f32 %v5209_v45, %v5187_v37  ;;  %v5449_v14 = vand.u32 4294901760, %v5448_v32 }
 0x7f1   :  { %v5212_v17 = vadd.f32 3.0, %v5210_v38  ;;  %v5450_v37 = vsub.f32 %v5448_v32, %v5449_v14 }
 0x7f3   :  { %v5213_v30 = vmax.f32 %v5212_v17, 0.0 }
 0x7f5   :  { %v5214_v54 = vmin.f32 %v5213_v30, 6.0 }
 0x7f7   :  { %v5215_v36 = vmul.f32 0.16666667, %v5214_v54 }
 0x7f9   :  { %v5216_v43 = vmul.f32 %v5215_v36, %v5210_v38  ;;  %v5451_v38 = vand.u32 4294901760, %v5450_v37 }
 0x7fb   :  { %v5248_v23 = vand.u32 4294901760, %v5216_v43  ;;  %5423 = vrot.lane.b32.xlu1 %v5216_v43, %s6779_s24 }
 0x7fd   :  { %v5283_v52 = vsub.f32 %v5216_v43, %v5248_v23  ;;  %5249 = vmatpush.msra.mxu0 %v5248_v23  ;;  %5342 = vmatpush.msra.mxu3 %v5248_v23 }
 0x7fe   :  { %5255 = vmatmul.f32.vlgmr.msra.gmra.mxu0 %v5254_v26  ;;  %5346 = vmatmul.f32.vlgmr.msra.gmra.mxu3 %v5252_v57 }
 0x7ff   :  { %5314 = vmatpush.msra.mxu2 %v5283_v52  ;;  %v5284_v20 = vand.u32 4294901760, %v5283_v52 }
 0x800   :  { %5317 = vmatmul.f32.vlgmr.msra.gmra.mxu2 %v5251_v16 }
 0x801   :  { %5374 = vmatpush.msrb.mxu0 %v5284_v20  ;;  %v5285_v7 = vsub.f32 %v5283_v52, %v5284_v20  ;;  %v5227_v52 = vpop.permute.xlu0 %5226 }
 0x803   :  { %v5286_v55 = vand.u32 4294901760, %v5285_v7  ;;  %5411 = vperm.xlu1 %6645, %v5217_v46  }
 0x805   :  { %5287 = vmatpush.msra.mxu1 %v5286_v55 }
 0x806   :  { %5289 = vmatmul.f32.vlgmr.msra.gmra.mxu1 %v5250_v47  ;;  %5352 = vmatmul.f32.gmra.mxu3 %v10061_v59 }
 0x807   :  { %5400 = vmatpush.msrb.mxu1 %v5248_v23  ;;  %5263 = vmatmul.f32.gmra.mxu0 %v10062_v12 }
 0x808   :  { %5322 = vmatmul.f32.gmra.mxu2 %v10058_v4 }
 0x80b   :  { %6647 = vset.pattern.permute.xlu1 %v10059_v9 }
 0x80c   :  { %5221 = vperm.xlu1 %6647, %v5217_v46   ;;  %v5428_v46 = vsel %vm1969_vm10, %v5421_v24, 0 }
 0x80d   :  { %v5455_v45 = vand.u32 4294901760, %v5428_v46 }
 0x80e   :  { %5293 = vmatmul.f32.gmra.mxu1 %v10060_v13 }
 0x80f   :  { %5376 = vmatmul.f32.vlgmr.msrb.gmra.mxu0 %v5250_v47  ;;  %v5456_v16 = vsub.f32 %v5428_v46, %v5455_v45 }
 0x811   :  { %v5457_v39 = vand.u32 4294901760, %v5456_v16 }
 0x816   :  { %5402 = vmatmul.f32.vlgmr.msrb.gmra.mxu1 %v5250_v47  ;;  %v5458_v47 = vsub.f32 %v5456_v16, %v5457_v39 }
 0x817   :  { %5380 = vmatmul.f32.gmra.mxu0 %v10060_v13 }
 0x818   :  { %v5459_v36 = vand.u32 4294901760, %v5458_v47 }
 0x81e   :  { %5406 = vmatmul.f32.gmra.mxu1 %v10060_v13 }
 0x86d   :  { %v5424_v17 = vpop.permute.xlu1 %5423 }
 0x86e   :  { %v5445_v57 = vand.u32 4294901760, %v5424_v17 }
 0x870   :  { %v5480_v30 = vsub.f32 %v5424_v17, %v5445_v57  ;;  %5446 = vmatpush.msrb.mxu2 %v5445_v57  ;;  %5539 = vmatpush.msra.mxu1 %v5445_v57 }
 0x871   :  { %5452 = vmatmul.f32.vlgmr.msrb.gmra.mxu2 %v5451_v38  ;;  %5543 = vmatmul.f32.vlgmr.msra.gmra.mxu1 %v5449_v14 }
 0x872   :  { %v5481_v54 = vand.u32 4294901760, %v5480_v30  ;;  %5511 = vmatpush.msra.mxu0 %v5480_v30 }
 0x873   :  { %5514 = vmatmul.f32.vlgmr.msra.gmra.mxu0 %v5448_v32 }
 0x874   :  { %v5482_v10 = vsub.f32 %v5480_v30, %v5481_v54  ;;  %5571 = vmatpush.msra.mxu2 %v5481_v54 }
 0x875   :  { %v5412_v9 = vpop.permute.xlu1 %5411 }
 0x876   :  { %v5483_v43 = vand.u32 4294901760, %v5482_v10 }
 0x878   :  { %5484 = vmatpush.msrb.mxu3 %v5483_v43 }
 0x879   :  { %5460 = vmatmul.f32.gmra.mxu2 %v5459_v36  ;;  %5486 = vmatmul.f32.vlgmr.msrb.gmra.mxu3 %v5447_v61 }
 0x87a   :  { %5597 = vmatpush.msra.mxu3 %v5445_v57  ;;  %5549 = vmatmul.f32.gmra.mxu1 %v5457_v39 }
 0x87b   :  { %5519 = vmatmul.f32.gmra.mxu0 %v5456_v16  ;;  %v5256_v26 = vpop.f32.mrf.mxu0 }
 0x87e   :  { %v5222_v12 = vpop.permute.xlu1 %5221 }
 0x87f   :  { %v5257_v56 = vadd.f32 %v5256_v26, %v5222_v12 }
 0x881   :  { %5490 = vmatmul.f32.gmra.mxu3 %v5455_v45  ;;  %5573 = vmatmul.f32.vlgmr.msra.gmra.mxu2 %v5447_v61  ;;  %v5347_v59 = vpop.f32.mrf.mxu3 }
 0x883   :  { %v5290_v23 = vpop.f32.mrf.mxu1  ;;  %v5318_v13 = vpop.f32.mrf.mxu2 }
 0x884   :  { %v5264_v20 = vpop.f32.mrf.mxu0  ;;  %v5291_v24 = vadd.f32 %v5290_v23, %v5257_v56 }
 0x885   :  { %v5265_v7 = vadd.f32 %v5264_v20, %v5227_v52  ;;  %v5416_v52 = vpop.permute.xlu2 %5415 }
 0x886   :  { %v5319_v14 = vadd.f32 %v5318_v13, %v5291_v24 }
 0x889   :  { %5577 = vmatmul.f32.gmra.mxu2 %v5455_v45  ;;  %5599 = vmatmul.f32.vlgmr.msra.gmra.mxu3 %v5447_v61  ;;  %v5353_v61 = vpop.f32.mrf.mxu3 }
 0x88b   :  { %v5294_v55 = vpop.f32.mrf.mxu1  ;;  %v5323_v32 = vpop.f32.mrf.mxu2 }
 0x88c   :  { %v5295_v4 = vadd.f32 %v5294_v55, %v5265_v7  ;;  %v5377_v8 = vpop.f32.mrf.mxu0 }
 0x88e   :  { %v5324_v37 = vadd.f32 %v5323_v32, %v5295_v4 }
 0x890   :  { %v5354_v38 = vadd.f32 %v5353_v61, %v5324_v37 }
 0x891   :  { %5603 = vmatmul.f32.gmra.mxu3 %v5455_v45  ;;  %v5348_v45 = vadd.f32 %v5347_v59, %v5319_v14 }
 0x893   :  { %v5403_v46 = vpop.f32.mrf.mxu1  ;;  %v5378_v16 = vadd.f32 %v5377_v8, %v5348_v45 }
 0x894   :  { %v5381_v17 = vpop.f32.mrf.mxu0 }
 0x895   :  { %v5404_v39 = vadd.f32 %v5403_v46, %v5378_v16  ;;  %v5382_v57 = vadd.f32 %v5381_v17, %v5354_v38  ;;  %v5657_v38 = vld [vmem:[%s9875_s2 + $0x10] sm:$0xff] }
 0x896   :  { %v5679_v17 = vand.u32 4294901760, %v5657_v38 }
 0x898   :  { %5781 = vmatpush.msrb.mxu3 %v5679_v17  ;;  %5680 = vmatpush.msrb.mxu0 %v5679_v17 }
 0x89b   :  { %v5407_v30 = vpop.f32.mrf.mxu1 }
 0x89c   :  { %v9186_v47 = vadd.f32 %v5407_v30, %v5382_v57  ;;  %v5715_v57 = vsub.f32 %v5657_v38, %v5679_v17 }
 0x89e   :  { %v5716_v30 = vand.u32 4294901760, %v5715_v57  ;;  %5751 = vmatpush.msrb.mxu2 %v5715_v57 }
 0x8ee   :  { %v5544_v55 = vpop.f32.mrf.mxu1 }
 0x8f0   :  { %v5515_v23 = vpop.f32.mrf.mxu0 }
 0x8f4   :  { %v5453_v54 = vpop.f32.mrf.mxu2 }
 0x8f5   :  { %v5454_v43 = vadd.f32 %v5453_v54, %v5412_v9  ;;  %v5717_v54 = vsub.f32 %v5715_v57, %v5716_v30 }
 0x8f7   :  { %v5550_v14 = vpop.f32.mrf.mxu1 }
 0x8f8   :  { %v5520_v8 = vpop.f32.mrf.mxu0 }
 0x8fc   :  { %v5461_v10 = vpop.f32.mrf.mxu2  ;;  %v5487_v36 = vpop.f32.mrf.mxu3 }
 0x8fd   :  { %v5488_v26 = vadd.f32 %v5487_v36, %v5454_v43  ;;  %v5462_v13 = vadd.f32 %v5461_v10, %v5416_v52  ;;  %v5718_v10 = vand.u32 4294901760, %v5717_v54  ;;  %v5655_v36 = vld [vmem:[%s9875_s2] sm:$0xff] }
 0x8fe   :  { %v5681_v43 = vand.u32 4294901760, %v5655_v36 }
 0x8ff   :  { %v5516_v7 = vadd.f32 %v5515_v23, %v5488_v26  ;;  %5719 = vmatpush.msrb.mxu1 %v5718_v10  ;;  %v10066_v10 = vld [vmem:[#allocation15_spill] sm:$0xff] }
 0x900   :  { %v5721_v26 = vsub.f32 %v5655_v36, %v5681_v43  ;;  %5783 = vmatpush.msrb.mxu3 %v5681_v43  ;;  %5682 = vmatpush.msrb.mxu0 %v5681_v43 }
 0x901   :  { %v5545_v59 = vadd.f32 %v5544_v55, %v5516_v7 }
 0x902   :  { %5814 = vmatpush.msra.mxu0 %v5716_v30  ;;  %v5722_v23 = vand.u32 4294901760, %v5721_v26  ;;  %5754 = vmatpush.msrb.mxu2 %v5721_v26 }
 0x904   :  { %v5491_v20 = vpop.f32.mrf.mxu3  ;;  %v5574_v4 = vpop.f32.mrf.mxu2  ;;  %v5723_v52 = vsub.f32 %v5721_v26, %v5722_v23  ;;  %5818 = vmatpush.msra.mxu0 %v5722_v23  ;;  %v10068_v26 = vld [vmem:[#allocation20_spill] sm:$0xff] }
 0x905   :  { %v5492_v12 = vadd.f32 %v5491_v20, %v5462_v13  ;;  %v5575_v56 = vadd.f32 %v5574_v4, %v5545_v59 }
 0x906   :  { %v5724_v20 = vand.u32 4294901760, %v5723_v52 }
 0x907   :  { %v5521_v32 = vadd.f32 %v5520_v8, %v5492_v12 }
 0x908   :  { %5725 = vmatpush.msrb.mxu1 %v5724_v20  ;;  %v5658_v20 = vld [vmem:[%s9875_s2 + $0x18] sm:$0xff] }
 0x909   :  { %v5551_v9 = vadd.f32 %v5550_v14, %v5521_v32  ;;  %v10064_v14 = vld [vmem:[#allocation12_spill] sm:$0xff] }
 0x90a   :  { %5843 = vmatpush.msra.mxu1 %v5679_v17 }
 0x90c   :  { %v5600_v24 = vpop.f32.mrf.mxu3  ;;  %v5578_v37 = vpop.f32.mrf.mxu2  ;;  %5845 = vmatpush.msra.mxu1 %v5681_v43  ;;  %v10067_v43 = vld [vmem:[#allocation16_spill] sm:$0xff] }
 0x90d   :  { %v5601_v46 = vadd.f32 %v5600_v24, %v5575_v56  ;;  %v5579_v61 = vadd.f32 %v5578_v37, %v5551_v9  ;;  %v797_v24 = vpop.permute.xlu0 %796  ;;  %v547_v23 = vadd.f32 %v10068_v26, %v10067_v43  ;;  %v10074_v26 = vld [vmem:[#allocation24_spill] sm:$0xff] }
 0x90f   :  { %5609 = vrot.lane.b32.xlu2 %v5601_v46, %s6782_s27  ;;  %v10063_v46 = vld [vmem:[#allocation10_spill] sm:$0xff] }
 0x910   :  { %v535_v37 = vadd.f32 %v10064_v14, %v10063_v46  ;;  %v5656_v46 = vld [vmem:[%s9875_s2 + $0x8] sm:$0xff] }
 0x914   :  { %v5604_v45 = vpop.f32.mrf.mxu3 }
 0x915   :  { %v5605_v16 = vadd.f32 %v5604_v45, %v5579_v61 }
 0x917   :  { %5611 = vrot.lane.b32.xlu1 %v5605_v16, %s6782_s27  ;;  %v10065_v16 = vld [vmem:[#allocation14_spill] sm:$0xff] }
 0x918   :  { %v588_v38 = vadd.f32 %v10065_v16, %v535_v37  ;;  %v10073_v16 = vld [vmem:[#allocation9_spill] sm:$0xff] }
 0x91a   :  { %v648_v36 = vadd.f32 %v10066_v10, %v588_v38 }
 0x969   :  { %v5610_v7 = vpop.permute.xlu2 %5609 }
 0x96a   :  { %v5615_v55 = vsel %vm1790_vm9, %v5404_v39, %v5610_v7  ;;  %v803_v7 = vpop.permute.xlu0 %802 }
 0x96b   :  { %v6615_v4 = vmul.f32 -1.442695, %v5615_v55 }
 0x96d   :  { %6670 = vpow2.f32 %v6615_v4 }
 0x973   :  { %v6671_v13 = vpop.eup %6670 }
 0x974   :  { %v5623_v59 = vadd.f32 1.0, %v6671_v13  ;;  %v5869_v13 = vand.u32 4294901760, %v5658_v20 }
 0x976   :  { %6672 = vrcp.f32 %v5623_v59  ;;  %v5636_v32 = vand.u32 2147483648, %v5623_v59  ;;  %v5634_v61 = vand.u32 2147483647, %v5623_v59  ;;  %vm5630_vm6 = vweird.f32 %v5623_v59  ;;  %5870 = vmatpush.msra.mxu2 %v5869_v13 }
 0x977   :  { %v5905_v37 = vsub.f32 %v5658_v20, %v5869_v13  ;;  %v10076_v20 = vld [vmem:[#allocation25_spill] sm:$0xff] }
 0x978   :  { %v5637_v45 = vor.u32 1.1754944e-38, %v5636_v32  ;;  %vm5635_vm8 = vcmp.eq.f32.partialorder %v5634_v61, 8.507059e+37 }
 0x97c   :  { %v6673_v12 = vpop.eup %6672 }
 0x97d   :  { %v5626_v56 = vmul.f32 %v6673_v12, %v5623_v59  ;;  %vm5631_vm5 = vweird.f32 %v6673_v12  ;;  %v10069_v59 = vld [vmem:[#allocation28_spill] sm:$0xff] }
 0x97e   :  { %vm5632_vm7 = vmor %vm5630_vm6, %vm5631_vm5 }
 0x97f   :  { %v5627_v8 = vsub.f32 1.0, %v5626_v56  ;;  %v10070_v56 = vld [vmem:[#allocation48_spill] sm:$0xff] }
 0x981   :  { %v5628_v9 = vmul.f32 %v6673_v12, %v5627_v8  ;;  %v820_v8 = vadd.f32 %v797_v24, %v10070_v56  ;;  %v823_v24 = vadd.f32 %v803_v7, %v10073_v16 }
 0x983   :  { %v5629_v39 = vadd.f32 %v6673_v12, %v5628_v9  ;;  %v5871_v9 = vand.u32 4294901760, %v5656_v46 }
 0x985   :  { %v5633_v17 = vsel %vm5632_vm7, %v6673_v12, %v5629_v39  ;;  %v712_v12 = vadd.f32 %v10069_v59, %v648_v36  ;;  %v10072_v39 = vld [vmem:[#allocation30_spill] sm:$0xff]  ;;  %5872 = vmatpush.msra.mxu2 %v5871_v9 }
 0x986   :  { %v5638_v57 = vsel %vm5635_vm8, %v5637_v45, %v5633_v17  ;;  %v5906_v17 = vand.u32 4294901760, %v5905_v37 }
 0x987   :  { %6049 = vrot.lane.b32.xlu2 %v5638_v57, %s6779_s24  ;;  %v5660_v30 = vsel %vm1790_vm9, %v5638_v57, 0  ;;  %v9227_v45 = vadd.f32 %v10072_v39, %v712_v12  ;;  %v5911_v57 = vsub.f32 %v5656_v46, %v5871_v9  ;;  %v10078_v39 = vld [vmem:[#allocation31_spill] sm:$0xff] }
 0x988   :  { %v9202_v54 = vand.u32 4294901760, %v5660_v30  ;;  %v5907_v36 = vsub.f32 %v5905_v37, %v5906_v17 }
 0x989   :  { %v5612_v52 = vpop.permute.xlu1 %5611  ;;  %v5912_v43 = vand.u32 4294901760, %v5911_v57 }
 0x98a   :  { %v9211_v55 = vsub.f32 %v5660_v30, %v9202_v54  ;;  %v5616_v4 = vsel %vm1790_vm9, %v9186_v47, %v5612_v52  ;;  %5727 = vmatmul.f32.vlgmr.msrb.gmra.mxu1 %v9202_v54  ;;  %v10071_v47 = vld [vmem:[#allocation22_spill] sm:$0xff]  ;;  %v6567_v30 = vmul.f32 -1.442695, %v820_v8  ;;  %v10075_v52 = vld [vmem:[#allocation23_spill] sm:$0xff]  ;;  %v5908_v59 = vand.u32 4294901760, %v5907_v36 }
 0x98b   :  { %v6616_v32 = vmul.f32 -1.442695, %v5616_v4  ;;  %5971 = vmatpush.msrb.mxu1 %v5869_v13  ;;  %v603_v61 = vadd.f32 %v10071_v47, %v547_v23  ;;  %v559_v7 = vadd.f32 %v10076_v20, %v10075_v52  ;;  %v6570_v4 = vmul.f32 -1.442695, %v823_v24  ;;  %v10077_v8 = vld [vmem:[#allocation34_spill] sm:$0xff]  ;;  %v10082_v20 = vld [vmem:[#allocation39_spill] sm:$0xff] }
 0x98c   :  { %v9222_v14 = vand.u32 4294901760, %v9211_v55  ;;  %5757 = vmatmul.f32.vlgmr.msrb.gmra.mxu2 %v9211_v55  ;;  %v5913_v12 = vsub.f32 %v5911_v57, %v5912_v43  ;;  %5909 = vmatpush.msra.mxu3 %v5908_v59  ;;  %v3796_v24 = vadd.f32 %v9082_v41, %v9071_v63  ;;  %v10084_v59 = vld [vmem:[#allocation13_spill] sm:$0xff] }
 0x98d   :  { %6674 = vpow2.f32 %v6616_v32  ;;  %5973 = vmatpush.msrb.mxu1 %v5871_v9  ;;  %6004 = vmatpush.msrb.mxu2 %v5906_v17  ;;  %v666_v23 = vadd.f32 %v10074_v26, %v603_v61  ;;  %v618_v16 = vadd.f32 %v10078_v39, %v559_v7  ;;  %v10079_v61 = vld [vmem:[#allocation36_spill] sm:$0xff] }
 0x98e   :  { %v5686_v38 = vsub.f32 %v9211_v55, %v9222_v14  ;;  %5787 = vmatmul.f32.vlgmr.msrb.gmra.mxu3 %v9222_v14  ;;  %6676 = vpow2.f32 %v6567_v30  ;;  %v5914_v47 = vand.u32 4294901760, %v5913_v12  ;;  %v10080_v17 = vld [vmem:[#allocation32_spill] sm:$0xff] }
 0x98f   :  { %798 = vrot.lane.b32.xlu2 %v9227_v45, %s6783_s28  ;;  %6008 = vmatpush.msrb.mxu2 %v5912_v43  ;;  %v724_v32 = vadd.f32 %v10077_v8, %v666_v23  ;;  %6678 = vpow2.f32 %v6570_v4  ;;  %v684_v30 = vadd.f32 %v10080_v17, %v618_v16  ;;  %v10081_v43 = vld [vmem:[#allocation38_spill] sm:$0xff]  ;;  %v3808_v8 = vadd.f32 %v9109_v51, %v9099_v5 }
 0x990   :  { %v9235_v10 = vand.u32 4294901760, %v5686_v38  ;;  %5915 = vmatpush.msra.mxu3 %v5914_v47 }
 0x991   :  { %v9244_v38 = vadd.f32 %v10079_v61, %v724_v32  ;;  %v736_v26 = vadd.f32 %v10081_v43, %v684_v30  ;;  %v10085_v61 = vld [vmem:[#allocation17_spill] sm:$0xff]  ;;  %v3864_v17 = vadd.f32 %v9113_v42, %v3808_v8  ;;  %v10086_v42 = vld [vmem:[#allocation18_spill] sm:$0xff] }
 0x992   :  { %5688 = vmatmul.f32.vlgmr.msrb.gmra.mxu0 %v9235_v10  ;;  %6033 = vmatpush.msrb.mxu3 %v5869_v13  ;;  %v6784_v13 = vmov 0  }
 0x993   :  { %v6675_v56 = vpop.eup %6674  ;;  %5941 = vmatpush.msrb.mxu0 %v5905_v37  ;;  %v9256_v7 = vadd.f32 %v10082_v20, %v736_v26  ;;  %6651 = vset.pattern.permute.xlu2 %v6784_v13  ;;  %v10088_v26 = vld [vmem:[#allocation21_spill] sm:$0xff]  ;;  %v3820_v20 = vadd.f32 %v9119_v22, %v9115_v3  ;;  %v10090_v3 = vld [vmem:[#allocation26_spill] sm:$0xff] }
 0x994   :  { %v5624_v46 = vadd.f32 1.0, %v6675_v56  ;;  %v6677_v37 = vpop.eup %6676  ;;  %6035 = vmatpush.msrb.mxu3 %v5871_v9  ;;  %6649 = vset.pattern.permute.xlu1 %v6784_v13  ;;  %v10083_v9 = vld [vmem:[#allocation11_spill] sm:$0xff] }
 0x995   :  { %5944 = vmatpush.msrb.mxu0 %v5911_v57  ;;  %v6679_v36 = vpop.eup %6678  ;;  %v9252_v52 = vadd.f32 1.0, %v6677_v37  ;;  %v3849_v57 = vadd.f32 %v9091_v60, %v3796_v24  ;;  %6650 = vset.pattern.permute.xlu0 %v6784_v13  ;;  %v539_v12 = vadd.f32 %v10084_v59, %v10083_v9  ;;  %v10089_v13 = vld [vmem:[#allocation29_spill] sm:$0xff]  ;;  %v3879_v8 = vadd.f32 %v9135_v40, %v3820_v20 }
 0x996   :  { %6680 = vrcp.f32 %v5624_v46  ;;  %v9258_v63 = vadd.f32 1.0, %v6679_v36  ;;  %v5651_v56 = vand.u32 2147483648, %v5624_v46  ;;  %v5649_v47 = vand.u32 2147483647, %v5624_v46 }
 0x997   :  { %804 = vrot.lane.b32.xlu2 %v9244_v38, %s6783_s28  ;;  %6682 = vrcp.f32 %v9252_v52  ;;  %v3909_v60 = vadd.f32 %v9093_v2, %v3849_v57  ;;  %vm5645_vm13 = vweird.f32 %v5624_v46  ;;  %v593_v24 = vadd.f32 %v10085_v61, %v539_v12  ;;  %v10092_v61 = vld [vmem:[#allocation27_spill] sm:$0xff] }
 0x998   :  { %6684 = vrcp.f32 %v9258_v63  ;;  %v5652_v37 = vor.u32 1.1754944e-38, %v5651_v56  ;;  %vm5650_vm15 = vcmp.eq.f32.partialorder %v5649_v47, 8.507059e+37  ;;  %v3927_v57 = vadd.f32 %v9117_v1, %v3864_v17 }
 0x999   :  { %v3973_v39 = vadd.f32 %v9125_v21, %v3909_v60  ;;  %v654_v43 = vadd.f32 %v10086_v42, %v593_v24  ;;  %v10091_v60 = vld [vmem:[#allocation33_spill] sm:$0xff]  ;;  %v3945_v40 = vadd.f32 %v9137_v50, %v3879_v8  ;;  %vm865_vm2 = vweird.f32 %v9252_v52 }
 0x99a   :  { %v3985_v9 = vadd.f32 %v9141_v35, %v3927_v57  ;;  %vm910_vm4 = vweird.f32 %v9258_v63  ;;  %v914_v20 = vand.u32 2147483647, %v9258_v63 }
 0x99b   :  { %v9273_v2 = vadd.f32 %v9133_v31, %v3973_v39  ;;  %v10087_v31 = vld [vmem:[#allocation19_spill] sm:$0xff]  ;;  %v3997_v17 = vadd.f32 %v9153_v18, %v3945_v40 }
 0x99c   :  { %v6681_v23 = vpop.eup %6680  ;;  %v9311_v35 = vadd.f32 %v9149_v6, %v3985_v9  ;;  %v10093_v6 = vld [vmem:[#allocation35_spill] sm:$0xff]  ;;  %vm915_vm5 = vcmp.eq.f32.partialorder %v914_v20, 8.507059e+37 }
 0x99d   :  { %v5641_v4 = vmul.f32 %v6681_v23, %v5624_v46  ;;  %vm5646_vm10 = vweird.f32 %v6681_v23  ;;  %v9275_v5 = vpop.eup %6682 }
 0x99e   :  { %vm5647_vm14 = vmor %vm5645_vm13, %vm5646_vm10  ;;  %v9281_v46 = vpop.eup %6684  ;;  %v861_v59 = vmul.f32 %v9275_v5, %v9252_v52  ;;  %vm866_vm0 = vweird.f32 %v9275_v5 }
 0x99f   :  { %810 = vrot.lane.b32.xlu2 %v9256_v7, %s6783_s28  ;;  %v5642_v41 = vsub.f32 1.0, %v5641_v4  ;;  %v906_v12 = vmul.f32 %v9281_v46, %v9258_v63  ;;  %vm911_vm1 = vweird.f32 %v9281_v46  ;;  %vm9352_vm3 = vmor %vm865_vm2, %vm866_vm0 }
 0x9a0   :  { %v862_v47 = vsub.f32 1.0, %v861_v59  ;;  %vm9360_vm11 = vmor %vm910_vm4, %vm911_vm1 }
 0x9a1   :  { %v5643_v32 = vmul.f32 %v6681_v23, %v5642_v41  ;;  %v716_v41 = vadd.f32 %v10089_v13, %v654_v43  ;;  %v907_v39 = vsub.f32 1.0, %v906_v12  ;;  %v9332_v43 = vadd.f32 %v9159_v29, %v3997_v17 }
 0x9a2   :  { %v869_v29 = vand.u32 2147483647, %v9252_v52 }
 0x9a3   :  { %v5644_v16 = vadd.f32 %v6681_v23, %v5643_v32  ;;  %v9307_v56 = vadd.f32 %v10091_v60, %v716_v41 }
 0x9a4   :  { %vm870_vm12 = vcmp.eq.f32.partialorder %v869_v29, 8.507059e+37 }
 0x9a5   :  { %v5648_v30 = vsel %vm5647_vm14, %v6681_v23, %v5644_v16  ;;  %v551_v23 = vadd.f32 %v10088_v26, %v10087_v31  ;;  %v916_v31 = vand.u32 2147483648, %v9258_v63  ;;  %v6047_v26 = vld [vmem:[%s9875_s2 + $0x30] sm:$0xff] }
 0x9a6   :  { %v5653_v51 = vsel %vm5650_vm15, %v5652_v37, %v5648_v30  ;;  %v863_v30 = vmul.f32 %v9275_v5, %v862_v47  ;;  %v6071_v13 = vand.u32 4294901760, %v6047_v26 }
 0x9a7   :  { %6051 = vrot.lane.b32.xlu1 %v5653_v51, %s6779_s24  ;;  %v5663_v21 = vsel %vm1790_vm9, %v5653_v51, 0  ;;  %4059 = vrot.lane.b32.xlu2 %v9273_v2, %s6783_s28  ;;  %v608_v22 = vadd.f32 %v10090_v3, %v551_v23  ;;  %v908_v51 = vmul.f32 %v9281_v46, %v907_v39  ;;  %v3800_v23 = vadd.f32 %v9089_v0, %v9080_v62  ;;  %v6045_v62 = vld [vmem:[%s9875_s2 + $0x20] sm:$0xff] }
 0x9a8   :  { %v9283_v36 = vand.u32 4294901760, %v5663_v21  ;;  %v864_v50 = vadd.f32 %v9275_v5, %v863_v30  ;;  %v6107_v41 = vsub.f32 %v6047_v26, %v6071_v13  ;;  %v6073_v9 = vand.u32 4294901760, %v6045_v62  ;;  %v10101_v26 = vld [vmem:[#allocation54_spill] sm:$0xff] }
 0x9a9   :  { %v672_v24 = vadd.f32 %v10092_v61, %v608_v22  ;;  %v909_v18 = vadd.f32 %v9281_v46, %v908_v51  ;;  %v917_v12 = vor.u32 1.1754944e-38, %v916_v31  ;;  %v3854_v3 = vadd.f32 %v9101_v15, %v3800_v23 }
 0x9aa   :  { %v9292_v4 = vsub.f32 %v5663_v21, %v9283_v36  ;;  %5731 = vmatmul.f32.gmra.mxu1 %v9283_v36  ;;  %v10094_v21 = vld [vmem:[#allocation37_spill] sm:$0xff]  ;;  %v868_v0 = vsel %vm9352_vm3, %v9275_v5, %v864_v50  ;;  %v6108_v22 = vand.u32 4294901760, %v6107_v41  ;;  %v6113_v60 = vsub.f32 %v6045_v62, %v6073_v9 }
 0x9ab   :  { %v728_v37 = vadd.f32 %v10093_v6, %v672_v24  ;;  %v913_v63 = vsel %vm9360_vm11, %v9281_v46, %v909_v18  ;;  %v3915_v47 = vadd.f32 %v9105_v33, %v3854_v3  ;;  %v3812_v15 = vadd.f32 %v9111_v44, %v9107_v25  ;;  %v10105_v3 = vld [vmem:[#allocation71_spill] sm:$0xff] }
 0x9ac   :  { %5762 = vmatmul.f32.gmra.mxu2 %v9292_v4  ;;  %v9303_v1 = vand.u32 4294901760, %v9292_v4  ;;  %v918_v8 = vsel %vm915_vm5, %v917_v12, %v913_v63  ;;  %v6109_v46 = vsub.f32 %v6107_v41, %v6108_v22 }
 0x9ad   :  { %v9329_v42 = vadd.f32 %v10094_v21, %v728_v37  ;;  %v3977_v61 = vadd.f32 %v9131_v49, %v3915_v47  ;;  %v3869_v40 = vadd.f32 %v9121_v48, %v3812_v15 }
 0x9ae   :  { %5793 = vmatmul.f32.gmra.mxu3 %v9303_v1  ;;  %v5694_v32 = vsub.f32 %v9292_v4, %v9303_v1  ;;  %v6110_v39 = vand.u32 4294901760, %v6109_v46 }
 0x9af   :  { %800 = vrot.lane.b32.xlu1 %v9307_v56, %s6783_s28  ;;  %4065 = vrot.lane.b32.xlu2 %v9311_v35, %s6783_s28  ;;  %v9384_v6 = vadd.f32 %v9139_v19, %v3977_v61  ;;  %v3933_v33 = vadd.f32 %v9123_v28, %v3869_v40  ;;  %v809_v28 = vpop.permute.xlu0 %808 }
 0x9b0   :  { %v5695_v16 = vand.u32 4294901760, %v5694_v32  ;;  %v6114_v32 = vand.u32 4294901760, %v6113_v60 }
 0x9b1   :  { %v3989_v25 = vadd.f32 %v9147_v53, %v3933_v33  ;;  %v10099_v53 = vld [vmem:[#allocation49_spill] sm:$0xff] }
 0x9b2   :  { %5696 = vmatmul.f32.gmra.mxu0 %v5695_v16  ;;  %5847 = vmatmul.f32.vlgmr.msra.gmra.mxu1 %v9202_v54 }
 0x9b3   :  { %6111 = vmatpush.msra.mxu1 %v6110_v39  ;;  %v9395_v44 = vadd.f32 %v9151_v27, %v3989_v25  ;;  %v10108_v39 = vld [vmem:[#allocation88_spill] sm:$0xff] }
 0x9b4   :  { %5878 = vmatmul.f32.vlgmr.msra.gmra.mxu2 %v9235_v10  ;;  %v871_v10 = vand.u32 2147483648, %v9252_v52  ;;  %v10103_v52 = vld [vmem:[#allocation65_spill] sm:$0xff] }
 0x9b5   :  { %6143 = vmatpush.msra.mxu2 %v6107_v41 }
 0x9b6   :  { %5917 = vmatmul.f32.vlgmr.msra.gmra.mxu3 %v9202_v54  ;;  %v872_v59 = vor.u32 1.1754944e-38, %v871_v10 }
 0x9b7   :  { %806 = vrot.lane.b32.xlu1 %v9329_v42, %s6783_s28  ;;  %4071 = vrot.lane.b32.xlu2 %v9332_v43, %s6783_s28 }
 0x9b8   :  { %6173 = vmatpush.msra.mxu3 %v6071_v13  ;;  %v873_v5 = vsel %vm870_vm12, %v872_v59, %v868_v0  ;;  %6146 = vmatpush.msra.mxu2 %v6113_v60  ;;  %v10104_v59 = vld [vmem:[#allocation56_spill] sm:$0xff] }
 0x9ba   :  { %5820 = vmatmul.f32.vlgmr.msra.gmra.mxu0 %v9202_v54  ;;  %5851 = vmatmul.f32.gmra.mxu1 %v9283_v36 }
 0x9bb   :  { %6072 = vmatpush.msra.mxu0 %v6071_v13  ;;  %6175 = vmatpush.msra.mxu3 %v6073_v9 }
 0x9bc   :  { %5886 = vmatmul.f32.gmra.mxu2 %v5695_v16  ;;  %v6115_v16 = vsub.f32 %v6113_v60, %v6114_v32 }
 0x9bd   :  { %6074 = vmatpush.msra.mxu0 %v6073_v9 }
 0x9be   :  { %5921 = vmatmul.f32.gmra.mxu3 %v9283_v36  ;;  %v6116_v24 = vand.u32 4294901760, %v6115_v16  ;;  %v10109_v16 = vld [vmem:[#allocation89_spill] sm:$0xff] }
 0x9bf   :  { %3192 = vperm.xlu1 %6649, %v873_v5   ;;  %3223 = vperm.xlu2 %6651, %v918_v8   ;;  %v10106_v5 = vld [vmem:[#allocation79_spill] sm:$0xff]  ;;  %v10107_v8 = vld [vmem:[#allocation78_spill] sm:$0xff]  ;;  %v3056_v61 = vadd.f32 %v10109_v16, %v10108_v39 }
 0x9c0   :  { %6117 = vmatpush.msra.mxu1 %v6116_v24  ;;  %v2866_v46 = vadd.f32 %v10107_v8, %v10106_v5  ;;  %v10117_v5 = vld [vmem:[#allocation81_spill] sm:$0xff] }
 0x9c2   :  { %5824 = vmatmul.f32.gmra.mxu0 %v9283_v36  ;;  %5977 = vmatmul.f32.vlgmr.msrb.gmra.mxu1 %v9222_v14 }
 0x9c3   :  { %6235 = vmatpush.msrb.mxu1 %v6071_v13  ;;  %v10102_v13 = vld [vmem:[#allocation64_spill] sm:$0xff] }
 0x9c4   :  { %6010 = vmatmul.f32.vlgmr.msrb.gmra.mxu2 %v9202_v54  ;;  %v2664_v62 = vadd.f32 %v10103_v52, %v10102_v13 }
 0x9c5   :  { %6237 = vmatpush.msrb.mxu1 %v6073_v9  ;;  %v6046_v9 = vld [vmem:[%s9875_s2 + $0x28] sm:$0xff] }
 0x9c6   :  { %6037 = vmatmul.f32.vlgmr.msrb.gmra.mxu3 %v9202_v54  ;;  %v826_v54 = vadd.f32 %v809_v28, %v10099_v53  ;;  %v9450_v15 = vand.u32 4294901760, %v6046_v9  ;;  %v10110_v53 = vld [vmem:[#allocation95_spill] sm:$0xff] }
 0x9c7   :  { %4061 = vrot.lane.b32.xlu1 %v9384_v6, %s6783_s28 }
 0x9c8   :  { %v6573_v14 = vmul.f32 -1.442695, %v826_v54  ;;  %v3087_v54 = vadd.f32 %v10110_v53, %v3056_v61  ;;  %v10118_v61 = vld [vmem:[#allocation87_spill] sm:$0xff]  ;;  %v10120_v53 = vld [vmem:[#allocation62_spill] sm:$0xff] }
 0x9ca   :  { %5947 = vmatmul.f32.vlgmr.msrb.gmra.mxu0 %v9211_v55  ;;  %5983 = vmatmul.f32.gmra.mxu1 %v9303_v1  ;;  %6686 = vpow2.f32 %v6573_v14 }
 0x9cb   :  { %6206 = vmatpush.msrb.mxu0 %v6108_v22  ;;  %v2695_v22 = vadd.f32 %v10105_v3, %v2664_v62  ;;  %v10114_v62 = vld [vmem:[#allocation63_spill] sm:$0xff]  ;;  %v10116_v3 = vld [vmem:[#allocation72_spill] sm:$0xff] }
 0x9cc   :  { %6014 = vmatmul.f32.gmra.mxu2 %v9283_v36 }
 0x9cd   :  { %6210 = vmatpush.msrb.mxu0 %v6114_v32 }
 0x9ce   :  { %6041 = vmatmul.f32.gmra.mxu3 %v9283_v36 }
 0x9cf   :  { %4067 = vrot.lane.b32.xlu1 %v9395_v44, %s6783_s28 }
 0x9d0   :  { %v6687_v21 = vpop.eup %6686 }
 0x9d1   :  { %v9421_v10 = vadd.f32 1.0, %v6687_v21  ;;  %v10112_v21 = vld [vmem:[#allocation70_spill] sm:$0xff] }
 0x9d2   :  { %5952 = vmatmul.f32.gmra.mxu0 %v9292_v4 }
 0x9d3   :  { %vm955_vm2 = vweird.f32 %v9421_v10 }
 0x9e1   :  { %v6050_v48 = vpop.permute.xlu2 %6049 }
 0x9e2   :  { %v6053_v49 = vsel %vm1790_vm9, %v6050_v48, 0 }
 0x9e3   :  { %v9402_v19 = vand.u32 4294901760, %v6053_v49 }
 0x9e5   :  { %v9406_v55 = vsub.f32 %v6053_v49, %v9402_v19  ;;  %6119 = vmatmul.f32.vlgmr.msra.gmra.mxu1 %v9402_v19  ;;  %v6303_v49 = vsub.f32 %v6046_v9, %v9450_v15  ;;  %v10115_v9 = vld [vmem:[#allocation94_spill] sm:$0xff] }
 0x9e7   :  { %v9410_v27 = vand.u32 4294901760, %v9406_v55  ;;  %6149 = vmatmul.f32.vlgmr.msra.gmra.mxu2 %v9406_v55 }
 0x9e9   :  { %v6078_v36 = vsub.f32 %v9406_v55, %v9410_v27  ;;  %v799_v4 = vpop.permute.xlu2 %798  ;;  %6179 = vmatmul.f32.vlgmr.msra.gmra.mxu3 %v9410_v27 }
 0x9ea   :  { %v821_v1 = vadd.f32 %v799_v4, %v9227_v45  ;;  %v10100_v45 = vld [vmem:[#allocation55_spill] sm:$0xff] }
 0x9eb   :  { %v9417_v37 = vand.u32 4294901760, %v6078_v36  ;;  %v2474_v23 = vadd.f32 %v10101_v26, %v10100_v45 }
 0x9ec   :  { %v6568_v17 = vmul.f32 -1.442695, %v821_v1 }
 0x9ed   :  { %6080 = vmatmul.f32.vlgmr.msra.gmra.mxu0 %v9417_v37  ;;  %v2505_v12 = vadd.f32 %v10104_v59, %v2474_v23  ;;  %v3118_v59 = vadd.f32 %v10115_v9, %v3087_v54 }
 0x9ee   :  { %6688 = vpow2.f32 %v6568_v17  ;;  %v6304_v17 = vand.u32 4294901760, %v6303_v49 }
 0x9f0   :  { %v6305_v52 = vsub.f32 %v6303_v49, %v6304_v17 }
 0x9f1   :  { %v805_v30 = vpop.permute.xlu2 %804 }
 0x9f2   :  { %v824_v51 = vadd.f32 %v805_v30, %v9244_v38  ;;  %v6048_v38 = vld [vmem:[%s9875_s2 + $0x38] sm:$0xff]  ;;  %v10111_v30 = vld [vmem:[#allocation57_spill] sm:$0xff] }
 0x9f3   :  { %v9435_v63 = vand.u32 4294901760, %v6048_v38 }
 0x9f4   :  { %v6689_v50 = vpop.eup %6688  ;;  %v6571_v18 = vmul.f32 -1.442695, %v824_v51  ;;  %v2536_v51 = vadd.f32 %v10111_v30, %v2505_v12  ;;  %v10123_v30 = vld [vmem:[#allocation50_spill] sm:$0xff] }
 0x9f5   :  { %v853_v29 = vadd.f32 1.0, %v6689_v50  ;;  %6262 = vmatpush.msrb.mxu2 %v9435_v63  ;;  %6363 = vmatpush.msra.mxu1 %v9435_v63  ;;  %v6297_v47 = vsub.f32 %v6048_v38, %v9435_v63  ;;  %v2726_v50 = vadd.f32 %v10112_v21, %v2695_v22 }
 0x9f6   :  { %6690 = vpow2.f32 %v6571_v18  ;;  %v10113_v18 = vld [vmem:[#allocation80_spill] sm:$0xff] }
 0x9f7   :  { %6692 = vrcp.f32 %v853_v29  ;;  %v884_v40 = vand.u32 2147483647, %v853_v29  ;;  %v886_v33 = vand.u32 2147483648, %v853_v29  ;;  %6264 = vmatpush.msrb.mxu2 %v9450_v15  ;;  %v6298_v28 = vand.u32 4294901760, %v6297_v47  ;;  %6365 = vmatpush.msra.mxu1 %v9450_v15 }
 0x9f8   :  { %6694 = vrcp.f32 %v9421_v10  ;;  %vm880_vm7 = vweird.f32 %v853_v29  ;;  %6333 = vmatpush.msra.mxu0 %v6297_v47  ;;  %v2897_v45 = vadd.f32 %v10113_v18, %v2866_v46  ;;  %v2757_v22 = vadd.f32 %v10116_v3, %v2726_v50  ;;  %v10125_v50 = vld [vmem:[#allocation97_spill] sm:$0xff] }
 0x9f9   :  { %v9423_v31 = vpop.permute.xlu2 %810  ;;  %v6299_v1 = vsub.f32 %v6297_v47, %v6298_v28  ;;  %6396 = vmatpush.msra.mxu2 %v6298_v28  ;;  %v887_v26 = vor.u32 1.1754944e-38, %v886_v33  ;;  %vm885_vm10 = vcmp.eq.f32.partialorder %v884_v40, 8.507059e+37 }
 0x9fa   :  { %6336 = vmatpush.msra.mxu0 %v6303_v49  ;;  %v2928_v8 = vadd.f32 %v10117_v5, %v2897_v45  ;;  %v10131_v5 = vld [vmem:[#allocation60_spill] sm:$0xff] }
 0x9fb   :  { %6400 = vmatpush.msra.mxu2 %v6304_v17  ;;  %v6300_v13 = vand.u32 4294901760, %v6299_v1  ;;  %v10122_v17 = vld [vmem:[#allocation51_spill] sm:$0xff] }
 0x9fc   :  { %v6691_v57 = vpop.eup %6690 }
 0x9fd   :  { %v6693_v20 = vpop.eup %6692  ;;  %v9433_v0 = vadd.f32 1.0, %v6691_v57  ;;  %6301 = vmatpush.msrb.mxu3 %v6300_v13  ;;  %v959_v13 = vand.u32 2147483647, %v9421_v10 }
 0x9fe   :  { %v876_v41 = vmul.f32 %v6693_v20, %v853_v29  ;;  %v9445_v60 = vpop.eup %6694  ;;  %vm881_vm6 = vweird.f32 %v6693_v20 }
 0x9ff   :  { %6696 = vrcp.f32 %v9433_v0  ;;  %v951_v14 = vmul.f32 %v9445_v60, %v9421_v10  ;;  %vm882_vm8 = vmor %vm880_vm7, %vm881_vm6  ;;  %v929_v16 = vand.u32 2147483647, %v9433_v0  ;;  %vm925_vm14 = vweird.f32 %v9433_v0 }
 0xa00   :  { %v877_v32 = vsub.f32 1.0, %v876_v41  ;;  %v2567_v41 = vadd.f32 %v10114_v62, %v2536_v51  ;;  %v2470_v51 = vadd.f32 %v10123_v30, %v10122_v17  ;;  %vm956_vm1 = vweird.f32 %v9445_v60 }
 0xa01   :  { %v4060_v24 = vpop.permute.xlu2 %4059  ;;  %v952_v38 = vsub.f32 1.0, %v951_v14  ;;  %vm930_vm0 = vcmp.eq.f32.partialorder %v929_v16, 8.507059e+37  ;;  %vm9497_vm3 = vmor %vm955_vm2, %vm956_vm1  ;;  %v10133_v16 = vld [vmem:[#allocation84_spill] sm:$0xff]  ;;  %vm960_vm4 = vcmp.eq.f32.partialorder %v959_v13, 8.507059e+37 }
 0xa02   :  { %v4082_v25 = vadd.f32 %v4060_v24, %v9273_v2  ;;  %v878_v48 = vmul.f32 %v6693_v20, %v877_v32  ;;  %v6306_v32 = vand.u32 4294901760, %v6305_v52  ;;  %v2959_v24 = vadd.f32 %v10118_v61, %v2928_v8  ;;  %v10128_v52 = vld [vmem:[#allocation52_spill] sm:$0xff]  ;;  %v10132_v8 = vld [vmem:[#allocation61_spill] sm:$0xff] }
 0xa03   :  { %v953_v40 = vmul.f32 %v9445_v60, %v952_v38  ;;  %v2500_v62 = vadd.f32 %v10128_v52, %v2470_v51 }
 0xa04   :  { %v6596_v36 = vmul.f32 -1.442695, %v4082_v25  ;;  %v879_v4 = vadd.f32 %v6693_v20, %v878_v48  ;;  %6307 = vmatpush.msrb.mxu3 %v6306_v32  ;;  %v10119_v25 = vld [vmem:[#allocation96_spill] sm:$0xff] }
 0xa05   :  { %v6697_v2 = vpop.eup %6696  ;;  %v3149_v48 = vadd.f32 %v10119_v25, %v3118_v59  ;;  %v954_v45 = vadd.f32 %v9445_v60, %v953_v40  ;;  %v10135_v40 = vld [vmem:[#allocation67_spill] sm:$0xff] }
 0xa06   :  { %6698 = vpow2.f32 %v6596_v36  ;;  %v883_v29 = vsel %vm882_vm8, %v6693_v20, %v879_v4  ;;  %v921_v23 = vmul.f32 %v6697_v2, %v9433_v0  ;;  %v931_v20 = vand.u32 2147483648, %v9433_v0  ;;  %6425 = vmatpush.msra.mxu3 %v9435_v63  ;;  %v10121_v36 = vld [vmem:[#allocation73_spill] sm:$0xff]  ;;  %v10124_v63 = vld [vmem:[#allocation86_spill] sm:$0xff] }
 0xa07   :  { %v888_v57 = vsel %vm885_vm10, %v887_v26, %v883_v29  ;;  %vm926_vm13 = vweird.f32 %v6697_v2  ;;  %v2784_v4 = vadd.f32 %v10121_v36, %v2757_v22  ;;  %v2986_v21 = vadd.f32 %v10124_v63, %v2959_v24  ;;  %v10126_v26 = vld [vmem:[#allocation5_spill] sm:$0xff] }
 0xa08   :  { %3197 = vperm.xlu1 %6649, %v888_v57   ;;  %v922_v12 = vsub.f32 1.0, %v921_v23  ;;  %vm927_vm15 = vmor %vm925_vm14, %vm926_vm13  ;;  %v932_v14 = vor.u32 1.1754944e-38, %v931_v20  ;;  %6427 = vmatpush.msra.mxu3 %v9450_v15  ;;  %v3176_v18 = vadd.f32 %v10125_v50, %v3149_v48  ;;  %v961_v15 = vand.u32 2147483648, %v9421_v10  ;;  %v10127_v23 = vld [vmem:[#allocation6_spill] sm:$0xff] }
 0xa09   :  { %v4066_v46 = vpop.permute.xlu2 %4065  ;;  %v3181_v57 = vmul.f32 %v2784_v4, %v10127_v23  ;;  %v2660_v10 = vadd.f32 %v10132_v8, %v10131_v5 }
 0xa0a   :  { %v4085_v47 = vadd.f32 %v4066_v46, %v9311_v35  ;;  %v923_v39 = vmul.f32 %v6697_v2, %v922_v12  ;;  %v2594_v35 = vadd.f32 %v10120_v53, %v2567_v41  ;;  %v827_v46 = vadd.f32 %v9423_v31, %v9256_v7  ;;  %v10136_v31 = vld [vmem:[#allocation75_spill] sm:$0xff]  ;;  %v4058_v53 = vpop.permute.xlu0 %4057  ;;  %v10142_v41 = vld [vmem:[#allocation90_spill] sm:$0xff] }
 0xa0b   :  { %v9503_v12 = vmul.f32 %v3181_v57, %v3176_v18  ;;  %v962_v32 = vor.u32 1.1754944e-38, %v961_v15  ;;  %v2690_v7 = vadd.f32 %v10135_v40, %v2660_v10  ;;  %v10139_v18 = vld [vmem:[#allocation53_spill] sm:$0xff]  ;;  %v10140_v15 = vld [vmem:[#allocation66_spill] sm:$0xff]  ;;  %v10141_v57 = vld [vmem:[#allocation76_spill] sm:$0xff] }
 0xa0c   :  { %v6699_v33 = vpop.eup %6698  ;;  %v6599_v28 = vmul.f32 -1.442695, %v4085_v47  ;;  %v924_v49 = vadd.f32 %v6697_v2, %v923_v39  ;;  %v3210_v47 = vld [vmem:[%s9873_s0 + $0x30] sm:$0xff]  ;;  %v3211_v39 = vld [vmem:[%s9873_s0 + $0x38] sm:$0xff]  ;;  %v6574_v4 = vmul.f32 -1.442695, %v827_v46 }
 0xa0d   :  { %v9479_v54 = vadd.f32 1.0, %v6699_v33  ;;  %v10137_v33 = vld [vmem:[#allocation74_spill] sm:$0xff]  ;;  %v2720_v23 = vadd.f32 %v10140_v15, %v2690_v7  ;;  %v10143_v46 = vld [vmem:[#allocation59_spill] sm:$0xff] }
 0xa0e   :  { %6700 = vpow2.f32 %v6599_v28  ;;  %v928_v1 = vsel %vm927_vm15, %v6697_v2, %v924_v49  ;;  %v3180_v2 = vmul.f32 %v2594_v35, %v10126_v26  ;;  %v2862_v25 = vadd.f32 %v10137_v33, %v10136_v31  ;;  %v10138_v28 = vld [vmem:[#allocation91_spill] sm:$0xff] }
 0xa0f   :  { %6702 = vrcp.f32 %v9479_v54  ;;  %v933_v0 = vsel %vm930_vm0, %v932_v14, %v928_v1  ;;  %v3215_v14 = vadd.f32 %v3211_v39, %v9503_v12  ;;  %v4145_v30 = vand.u32 2147483647, %v9479_v54  ;;  %v10144_v39 = vld [vmem:[#allocation68_spill] sm:$0xff] }
 0xa10   :  { %3244 = vperm.xlu1 %6649, %v933_v0   ;;  %v9501_v59 = vmul.f32 %v3180_v2, %v2986_v21  ;;  %v4147_v51 = vand.u32 2147483648, %v9479_v54  ;;  %v4081_v26 = vadd.f32 %v4058_v53, %v9127_v11  ;;  %vm4141_vm12 = vweird.f32 %v9479_v54 }
 0xa11   :  { %v4072_v29 = vpop.permute.xlu2 %4071  ;;  %vm4146_vm5 = vcmp.eq.f32.partialorder %v4145_v30, 8.507059e+37  ;;  %v10148_v30 = vld [vmem:[#allocation58_spill] sm:$0xff] }
 0xa12   :  { %v4088_v38 = vadd.f32 %v4072_v29, %v9332_v43  ;;  %v958_v43 = vsel %vm9497_vm3, %v9445_v60, %v954_v45  ;;  %v10134_v60 = vld [vmem:[#allocation85_spill] sm:$0xff]  ;;  %v3214_v35 = vadd.f32 %v3210_v47, %v9501_v59  ;;  %v2530_v45 = vadd.f32 %v10139_v18, %v2500_v62 }
 0xa13   :  { %v3052_v61 = vadd.f32 %v10134_v60, %v10133_v16  ;;  %v963_v48 = vsel %vm960_vm4, %v962_v32, %v958_v43  ;;  %v4148_v11 = vor.u32 1.1754944e-38, %v4147_v51  ;;  %v2753_v16 = vadd.f32 %v10144_v39, %v2720_v23  ;;  %v10145_v60 = vld [vmem:[#allocation77_spill] sm:$0xff] }
 0xa14   :  { %v6701_v9 = vpop.eup %6700  ;;  %v6602_v3 = vmul.f32 -1.442695, %v4088_v38  ;;  %v2892_v38 = vadd.f32 %v10141_v57, %v2862_v25  ;;  %v2563_v32 = vadd.f32 %v10143_v46, %v2530_v45  ;;  %v10149_v51 = vld [vmem:[#allocation69_spill] sm:$0xff] }
 0xa15   :  { %v6703_v22 = vpop.eup %6702  ;;  %v9512_v20 = vadd.f32 1.0, %v6701_v9  ;;  %v3082_v49 = vadd.f32 %v10138_v28, %v3052_v61  ;;  %v4064_v61 = vpop.permute.xlu0 %4063  ;;  %v10151_v45 = vld [vmem:[#allocation93_spill] sm:$0xff] }
 0xa16   :  { %6704 = vpow2.f32 %v6602_v3  ;;  %v4137_v24 = vmul.f32 %v6703_v22, %v9479_v54  ;;  %vm4142_vm11 = vweird.f32 %v6703_v22  ;;  %v6595_v54 = vmul.f32 -1.442695, %v4081_v26 }
 0xa17   :  { %6706 = vrcp.f32 %v9512_v20  ;;  %v3112_v9 = vadd.f32 %v10142_v41, %v3082_v49  ;;  %v4192_v7 = vand.u32 2147483648, %v9512_v20  ;;  %v4190_v25 = vand.u32 2147483647, %v9512_v20  ;;  %v10147_v49 = vld [vmem:[#allocation92_spill] sm:$0xff] }
 0xa18   :  { %3270 = vperm.xlu1 %6649, %v963_v48   ;;  %v4138_v36 = vsub.f32 1.0, %v4137_v24  ;;  %6708 = vpow2.f32 %v6574_v4  ;;  %v10146_v48 = vld [vmem:[#allocation83_spill] sm:$0xff]  ;;  %vm4186_vm7 = vweird.f32 %v9512_v20  ;;  %v10153_v41 = vld [vmem:[#allocation8_spill] sm:$0xff] }
 0xa19   :  { %v6052_v1 = vpop.permute.xlu1 %6051  ;;  %v3224_v17 = vpop.permute.xlu2 %3223  ;;  %v3145_v53 = vadd.f32 %v10147_v49, %v3112_v9  ;;  %vm4191_vm10 = vcmp.eq.f32.partialorder %v4190_v25, 8.507059e+37 }
 0xa1a   :  { %v6055_v0 = vsel %vm1790_vm9, %v6052_v1, 0  ;;  %v3228_v63 = vmul.f32 %v3224_v17, %v3214_v35  ;;  %v3229_v21 = vmul.f32 %v3224_v17, %v3215_v14  ;;  %v4139_v50 = vmul.f32 %v6703_v22, %v4138_v36  ;;  %vm4143_vm9 = vmor %vm4141_vm12, %vm4142_vm11 }
 0xa1b   :  { %v9535_v2 = vand.u32 4294901760, %v6055_v0  ;;  %v4084_v36 = vadd.f32 %v4064_v61, %v9143_v58 }
 0xa1c   :  { %v6705_v29 = vpop.eup %6704  ;;  %3232 = vst [vmem:[#allocation2 + $0x30] sm:$0xff] %v3228_v63  ;;  %v4140_v13 = vadd.f32 %v6703_v22, %v4139_v50  ;;  %v4193_v63 = vor.u32 1.1754944e-38, %v4192_v7  ;;  %v10150_v50 = vld [vmem:[#allocation82_spill] sm:$0xff] }
 0xa1d   :  { %v6707_v52 = vpop.eup %6706  ;;  %v9541_v3 = vadd.f32 1.0, %v6705_v29  ;;  %v9544_v62 = vsub.f32 %v6055_v0, %v9535_v2  ;;  %3233 = vst [vmem:[#allocation2 + $0x38] sm:$0xff] %v3229_v21  ;;  %6123 = vmatmul.f32.gmra.mxu1 %v9535_v2  ;;  %v2780_v0 = vadd.f32 %v10149_v51, %v2753_v16  ;;  %v6598_v15 = vmul.f32 -1.442695, %v4084_v36  ;;  %v4070_v46 = vpop.permute.xlu0 %4069  ;;  %v6744_v7 = vld [vmem:[%s9873_s0 + $0x8] sm:$0xff] }
 0xa1e   :  { %v4144_v43 = vsel %vm4143_vm9, %v6703_v22, %v4140_v13  ;;  %v4182_v5 = vmul.f32 %v6707_v52, %v9512_v20  ;;  %v2922_v22 = vadd.f32 %v10145_v60, %v2892_v38  ;;  %vm4187_vm6 = vweird.f32 %v6707_v52  ;;  %v6709_v14 = vpop.eup %6708  ;;  %v10152_v38 = vld [vmem:[#allocation7_spill] sm:$0xff] }
 0xa1f   :  { %6710 = vrcp.f32 %v9541_v3  ;;  %6154 = vmatmul.f32.gmra.mxu2 %v9544_v62  ;;  %v4149_v8 = vsel %vm4146_vm5, %v4148_v11, %v4144_v43  ;;  %v9552_v10 = vand.u32 4294901760, %v9544_v62  ;;  %vm4188_vm8 = vmor %vm4186_vm7, %vm4187_vm6  ;;  %v3172_v20 = vadd.f32 %v10151_v45, %v3145_v53 }
 0xa20   :  { %6456 = vperm.xlu1 %6649, %v4149_v8   ;;  %v4183_v47 = vsub.f32 1.0, %v4182_v5  ;;  %v2955_v28 = vadd.f32 %v10146_v48, %v2922_v22  ;;  %6712 = vpow2.f32 %v6595_v54  ;;  %v9574_v26 = vadd.f32 1.0, %v6709_v14 }
 0xa21   :  { %v801_v24 = vpop.permute.xlu1 %800  ;;  %6185 = vmatmul.f32.gmra.mxu3 %v9552_v10  ;;  %v6086_v40 = vsub.f32 %v9544_v62, %v9552_v10  ;;  %v4237_v11 = vand.u32 2147483648, %v9541_v3  ;;  %vm4231_vm14 = vweird.f32 %v9541_v3  ;;  %v4087_v22 = vadd.f32 %v4070_v46, %v9155_v34 }
 0xa22   :  { %v822_v31 = vadd.f32 %v801_v24, %v9307_v56  ;;  %v4184_v33 = vmul.f32 %v6707_v52, %v4183_v47  ;;  %v2590_v56 = vadd.f32 %v10148_v30, %v2563_v32  ;;  %v2982_v18 = vadd.f32 %v10150_v50, %v2955_v28  ;;  %v6743_v24 = vld [vmem:[%s9873_s0] sm:$0xff] }
 0xa23   :  { %v6087_v35 = vand.u32 4294901760, %v6086_v40  ;;  %v4238_v60 = vor.u32 1.1754944e-38, %v4237_v11  ;;  %v6601_v48 = vmul.f32 -1.442695, %v4087_v22  ;;  %vm970_vm12 = vweird.f32 %v9574_v26 }
 0xa24   :  { %v6569_v4 = vmul.f32 -1.442695, %v822_v31  ;;  %v4185_v1 = vadd.f32 %v6707_v52, %v4184_v33  ;;  %v3178_v13 = vmul.f32 %v2590_v56, %v10152_v38 }
 0xa25   :  { %v6711_v17 = vpop.eup %6710  ;;  %6088 = vmatmul.f32.gmra.mxu0 %v6087_v35  ;;  %6239 = vmatmul.f32.vlgmr.msrb.gmra.mxu1 %v9402_v19 }
 0xa26   :  { %6714 = vpow2.f32 %v6569_v4  ;;  %v4189_v21 = vsel %vm4188_vm8, %v6707_v52, %v4185_v1  ;;  %v4227_v58 = vmul.f32 %v6711_v17, %v9541_v3  ;;  %v6713_v57 = vpop.eup %6712  ;;  %v3179_v52 = vmul.f32 %v2780_v0, %v10153_v41 }
 0xa27   :  { %6270 = vmatmul.f32.vlgmr.msrb.gmra.mxu2 %v9417_v37  ;;  %v4194_v29 = vsel %vm4191_vm10, %v4193_v63, %v4189_v21  ;;  %vm4232_vm13 = vweird.f32 %v6711_v17  ;;  %v4235_v37 = vand.u32 2147483647, %v9541_v3  ;;  %v9583_v54 = vmul.f32 %v3178_v13, %v2982_v18 }
 0xa28   :  { %6504 = vperm.xlu1 %6649, %v4194_v29   ;;  %v4228_v23 = vsub.f32 1.0, %v4227_v58  ;;  %v9585_v8 = vmul.f32 %v3179_v52, %v3172_v20  ;;  %6716 = vrcp.f32 %v9574_v26  ;;  %v9589_v16 = vadd.f32 1.0, %v6713_v57  ;;  %vm4233_vm15 = vmor %vm4231_vm14, %vm4232_vm13 }
 0xa29   :  { %v807_v9 = vpop.permute.xlu1 %806  ;;  %6309 = vmatmul.f32.vlgmr.msrb.gmra.mxu3 %v9402_v19  ;;  %6718 = vpow2.f32 %v6598_v15  ;;  %vm4236_vm0 = vcmp.eq.f32.partialorder %v4235_v37, 8.507059e+37  ;;  %v3186_v40 = vadd.f32 %v6743_v24, %v9583_v54  ;;  %v974_v52 = vand.u32 2147483647, %v9574_v26 }
 0xa2a   :  { %v825_v43 = vadd.f32 %v807_v9, %v9329_v42  ;;  %v4229_v5 = vmul.f32 %v6711_v17, %v4228_v23  ;;  %v3187_v34 = vadd.f32 %v6744_v7, %v9585_v8  ;;  %v976_v9 = vand.u32 2147483648, %v9574_v26 }
 0xa2b   :  { %vm975_vm8 = vcmp.eq.f32.partialorder %v974_v52, 8.507059e+37  ;;  %vm4126_vm14 = vweird.f32 %v9589_v16 }
 0xa2c   :  { %v6715_v32 = vpop.eup %6714  ;;  %v6572_v47 = vmul.f32 -1.442695, %v825_v43  ;;  %v4230_v39 = vadd.f32 %v6711_v17, %v4229_v5 }
 0xa2d   :  { %v9591_v42 = vadd.f32 1.0, %v6715_v32  ;;  %6212 = vmatmul.f32.vlgmr.msrb.gmra.mxu0 %v9402_v19  ;;  %6243 = vmatmul.f32.gmra.mxu1 %v9535_v2 }
 0xa2e   :  { %6720 = vpow2.f32 %v6572_v47  ;;  %v4234_v61 = vsel %vm4233_vm15, %v6711_v17, %v4230_v39  ;;  %v9606_v31 = vpop.eup %6716 }
 0xa2f   :  { %6722 = vrcp.f32 %v9591_v42  ;;  %6278 = vmatmul.f32.gmra.mxu2 %v6087_v35  ;;  %v4239_v3 = vsel %vm4236_vm0, %v4238_v60, %v4234_v61  ;;  %v6719_v25 = vpop.eup %6718  ;;  %v966_v35 = vmul.f32 %v9606_v31, %v9574_v26  ;;  %v901_v0 = vand.u32 2147483648, %v9591_v42 }
 0xa30   :  { %6535 = vperm.xlu1 %6649, %v4239_v3   ;;  %6724 = vrcp.f32 %v9589_v16  ;;  %v9612_v36 = vadd.f32 1.0, %v6719_v25  ;;  %v899_v21 = vand.u32 2147483647, %v9591_v42  ;;  %vm895_vm2 = vweird.f32 %v9591_v42 }
 0xa31   :  { %v3193_v33 = vpop.permute.xlu1 %3192  ;;  %6313 = vmatmul.f32.gmra.mxu3 %v9535_v2  ;;  %6726 = vpow2.f32 %v6601_v48  ;;  %v967_v56 = vsub.f32 1.0, %v966_v35  ;;  %vm971_vm11 = vweird.f32 %v9606_v31  ;;  %v977_v60 = vor.u32 1.1754944e-38, %v976_v9 }
 0xa32   :  { %v3200_v28 = vmul.f32 %v3193_v33, %v3186_v40  ;;  %v3201_v49 = vmul.f32 %v3193_v33, %v3187_v34  ;;  %vm900_vm4 = vcmp.eq.f32.partialorder %v899_v21, 8.507059e+37  ;;  %vm9650_vm5 = vmor %vm970_vm12, %vm971_vm11 }
 0xa33   :  { %v968_v20 = vmul.f32 %v9606_v31, %v967_v56  ;;  %v4177_v56 = vand.u32 2147483648, %v9612_v36 }
 0xa34   :  { %v6721_v53 = vpop.eup %6720  ;;  %3204 = vst [vmem:[#allocation2] sm:$0xff] %v3200_v28 }
 0xa35   :  { %v6723_v14 = vpop.eup %6722  ;;  %v9614_v4 = vadd.f32 1.0, %v6721_v53  ;;  %3205 = vst [vmem:[#allocation2 + $0x8] sm:$0xff] %v3201_v49  ;;  %6216 = vmatmul.f32.gmra.mxu0 %v9535_v2  ;;  %6369 = vmatmul.f32.vlgmr.msra.gmra.mxu1 %v9410_v27 }
 0xa36   :  { %v891_v1 = vmul.f32 %v6723_v14, %v9591_v42  ;;  %v9621_v17 = vpop.eup %6724  ;;  %vm896_vm1 = vweird.f32 %v6723_v14 }
 0xa37   :  { %6728 = vrcp.f32 %v9614_v4  ;;  %6402 = vmatmul.f32.vlgmr.msra.gmra.mxu2 %v9402_v19  ;;  %v4122_v58 = vmul.f32 %v9621_v17, %v9589_v16  ;;  %v6727_v50 = vpop.eup %6726  ;;  %vm897_vm3 = vmor %vm895_vm2, %vm896_vm1  ;;  %v946_v11 = vand.u32 2147483648, %v9614_v4  ;;  %v944_v37 = vand.u32 2147483647, %v9614_v4 }
 0xa38   :  { %v892_v30 = vsub.f32 1.0, %v891_v1  ;;  %6730 = vrcp.f32 %v9612_v36  ;;  %v9637_v57 = vadd.f32 1.0, %v6727_v50  ;;  %vm940_vm6 = vweird.f32 %v9614_v4 }
 0xa39   :  { %6429 = vmatmul.f32.vlgmr.msra.gmra.mxu3 %v9402_v19  ;;  %v4062_v51 = vpop.permute.xlu1 %4061  ;;  %v4123_v13 = vsub.f32 1.0, %v4122_v58  ;;  %v947_v22 = vor.u32 1.1754944e-38, %v946_v11  ;;  %vm945_vm10 = vcmp.eq.f32.partialorder %v944_v37, 8.507059e+37  ;;  %vm4127_vm13 = vweird.f32 %v9621_v17 }
 0xa3a   :  { %v4083_v27 = vadd.f32 %v4062_v51, %v9384_v6  ;;  %v893_v63 = vmul.f32 %v6723_v14, %v892_v30  ;;  %v902_v6 = vor.u32 1.1754944e-38, %v901_v0  ;;  %vm4128_vm15 = vmor %vm4126_vm14, %vm4127_vm13  ;;  %vm4171_vm2 = vweird.f32 %v9612_v36 }
 0xa3c   :  { %v6597_v18 = vmul.f32 -1.442695, %v4083_v27  ;;  %v894_v45 = vadd.f32 %v6723_v14, %v893_v63  ;;  %v4175_v27 = vand.u32 2147483647, %v9612_v36 }
 0xa3d   :  { %v6729_v19 = vpop.eup %6728  ;;  %6339 = vmatmul.f32.vlgmr.msra.gmra.mxu0 %v9406_v55  ;;  %6375 = vmatmul.f32.gmra.mxu1 %v9552_v10  ;;  %v969_v55 = vadd.f32 %v9606_v31, %v968_v20 }
 0xa3e   :  { %6732 = vpow2.f32 %v6597_v18  ;;  %v898_v29 = vsel %vm897_vm3, %v6723_v14, %v894_v45  ;;  %v936_v15 = vmul.f32 %v6729_v19, %v9614_v4  ;;  %v9635_v23 = vpop.eup %6730  ;;  %vm941_vm9 = vweird.f32 %v6729_v19 }
 0xa3f   :  { %6406 = vmatmul.f32.gmra.mxu2 %v9535_v2  ;;  %v903_v38 = vsel %vm900_vm4, %v902_v6, %v898_v29  ;;  %6734 = vrcp.f32 %v9637_v57  ;;  %v4167_v32 = vmul.f32 %v9635_v23, %v9612_v36  ;;  %vm942_vm7 = vmor %vm940_vm6, %vm941_vm9  ;;  %vm4172_vm1 = vweird.f32 %v9635_v23 }
 0xa40   :  { %3218 = vperm.xlu0 %6650, %v903_v38   ;;  %v937_v10 = vsub.f32 1.0, %v936_v15  ;;  %vm4173_vm4 = vmor %vm4171_vm2, %vm4172_vm1  ;;  %v4178_v45 = vor.u32 1.1754944e-38, %v4177_v56  ;;  %v4222_v38 = vand.u32 2147483648, %v9637_v57  ;;  %v3261_v56 = vld [vmem:[%s9873_s0 + $0x68] sm:$0xff] }
 0xa41   :  { %6433 = vmatmul.f32.gmra.mxu3 %v9535_v2  ;;  %v4068_v41 = vpop.permute.xlu1 %4067  ;;  %v4124_v2 = vmul.f32 %v9621_v17, %v4123_v13  ;;  %v4168_v7 = vsub.f32 1.0, %v4167_v32  ;;  %v5758_v32 = vpop.f32.mrf.mxu2 }
 0xa42   :  { %v4086_v43 = vadd.f32 %v4068_v41, %v9395_v44  ;;  %v938_v5 = vmul.f32 %v6729_v19, %v937_v10  ;;  %v973_v44 = vsel %vm9650_vm5, %v9606_v31, %v969_v55  ;;  %v4130_v31 = vand.u32 2147483647, %v9589_v16  ;;  %v9685_v41 = vpop.f32.mrf.mxu1 }
 0xa43   :  { %v978_v3 = vsel %vm975_vm8, %v977_v60, %v973_v44  ;;  %v4125_v40 = vadd.f32 %v9621_v17, %v4124_v2  ;;  %v4169_v48 = vmul.f32 %v9635_v23, %v4168_v7  ;;  %vm4176_vm5 = vcmp.eq.f32.partialorder %v4175_v27, 8.507059e+37  ;;  %v5689_v2 = vpop.f32.mrf.mxu0  ;;  %v6746_v7 = vld [vmem:[%s9873_s0 + $0x18] sm:$0xff] }
 0xa44   :  { %v6733_v26 = vpop.eup %6732  ;;  %v6600_v47 = vmul.f32 -1.442695, %v4086_v43  ;;  %v939_v39 = vadd.f32 %v6729_v19, %v938_v5  ;;  %vm4131_vm0 = vcmp.eq.f32.partialorder %v4130_v31, 8.507059e+37  ;;  %v4220_v10 = vand.u32 2147483647, %v9637_v57 }
 0xa45   :  { %v4115_v42 = vadd.f32 1.0, %v6733_v26  ;;  %6344 = vmatmul.f32.gmra.mxu0 %v9544_v62  ;;  %v9664_v34 = vpop.eup %6734  ;;  %v4132_v62 = vand.u32 2147483648, %v9589_v16  ;;  %v4129_v25 = vsel %vm4128_vm15, %v9621_v17, %v4125_v40  ;;  %v4170_v16 = vadd.f32 %v9635_v23, %v4169_v48 }
 0xa46   :  { %6736 = vpow2.f32 %v6600_v47  ;;  %v943_v61 = vsel %vm942_vm7, %v6729_v19, %v939_v39  ;;  %v4212_v28 = vmul.f32 %v9664_v34, %v9637_v57  ;;  %vm4217_vm6 = vweird.f32 %v9664_v34 }
 0xa47   :  { %6738 = vrcp.f32 %v4115_v42  ;;  %v948_v24 = vsel %vm945_vm10, %v947_v22, %v943_v61  ;;  %v4133_v35 = vor.u32 1.1754944e-38, %v4132_v62  ;;  %v4162_v17 = vand.u32 2147483648, %v4115_v42 }
 0xa48   :  { %3275 = vperm.xlu0 %6650, %v978_v3   ;;  %3249 = vperm.xlu2 %6651, %v948_v24   ;;  %v4213_v30 = vsub.f32 1.0, %v4212_v28  ;;  %v4160_v0 = vand.u32 2147483647, %v4115_v42  ;;  %vm4156_vm11 = vweird.f32 %v4115_v42  ;;  %v4174_v21 = vsel %vm4173_vm4, %v9635_v23, %v4170_v16  ;;  %v6745_v24 = vld [vmem:[%s9873_s0 + $0x10] sm:$0xff]  ;;  %v3234_v28 = vld [vmem:[%s9873_s0 + $0x40] sm:$0xff] }
 0xa49   :  { %v4134_v4 = vsel %vm4131_vm0, %v4133_v35, %v4129_v25  ;;  %v4163_v18 = vor.u32 1.1754944e-38, %v4162_v17  ;;  %v4179_v29 = vsel %vm4176_vm5, %v4178_v45, %v4174_v21  ;;  %vm4216_vm7 = vweird.f32 %v9637_v57  ;;  %v5788_v57 = vpop.f32.mrf.mxu3  ;;  %v9688_v44 = vpop.f32.mrf.mxu2  ;;  %v3260_v17 = vld [vmem:[%s9873_s0 + $0x60] sm:$0xff] }
 0xa4a   :  { %v4214_v58 = vmul.f32 %v9664_v34, %v4213_v30  ;;  %vm4161_vm9 = vcmp.eq.f32.partialorder %v4160_v0, 8.507059e+37  ;;  %vm4218_vm10 = vmor %vm4216_vm7, %vm4217_vm6  ;;  %v4223_v43 = vor.u32 1.1754944e-38, %v4222_v38  ;;  %vm4221_vm0 = vcmp.eq.f32.partialorder %v4220_v10, 8.507059e+37  ;;  %v5732_v26 = vpop.f32.mrf.mxu1  ;;  %v3236_v10 = vld [vmem:[%s9873_s0 + $0x50] sm:$0xff] }
 0xa4b   :  { %v5697_v47 = vpop.f32.mrf.mxu0  ;;  %v3188_v40 = vadd.f32 %v6745_v24, %v9501_v59  ;;  %v3238_v35 = vadd.f32 %v3234_v28, %v9583_v54  ;;  %v3264_v27 = vadd.f32 %v3260_v17, %v9583_v54 }
 0xa4c   :  { %v6737_v33 = vpop.eup %6736  ;;  %v4215_v15 = vadd.f32 %v9664_v34, %v4214_v58 }
 0xa4d   :  { %v6739_v49 = vpop.eup %6738  ;;  %v4118_v53 = vadd.f32 1.0, %v6737_v33 }
 0xa4e   :  { %v4152_v14 = vmul.f32 %v6739_v49, %v4115_v42  ;;  %vm4157_vm3 = vweird.f32 %v6739_v49  ;;  %v4219_v9 = vsel %vm4218_vm10, %v9664_v34, %v4215_v15  ;;  %v3189_v34 = vadd.f32 %v6746_v7, %v9503_v12 }
 0xa4f   :  { %6740 = vrcp.f32 %v4118_v53  ;;  %vm4158_vm12 = vmor %vm4156_vm11, %vm4157_vm3  ;;  %v4207_v23 = vand.u32 2147483648, %v4118_v53  ;;  %v4205_v55 = vand.u32 2147483647, %v4118_v53  ;;  %vm4201_vm13 = vweird.f32 %v4118_v53 }
 0xa50   :  { %6451 = vperm.xlu2 %6651, %v4134_v4   ;;  %v4153_v1 = vsub.f32 1.0, %v4152_v14  ;;  %v4224_v46 = vsel %vm4221_vm0, %v4223_v43, %v4219_v9 }
 0xa51   :  { %v4208_v11 = vor.u32 1.1754944e-38, %v4207_v23  ;;  %vm4206_vm15 = vcmp.eq.f32.partialorder %v4205_v55, 8.507059e+37  ;;  %v9690_v39 = vpop.f32.mrf.mxu3  ;;  %v9694_v22 = vpop.f32.mrf.mxu2  ;;  %v5729_v23 = vadd.f32 %v9685_v41, %v5689_v2 }
 0xa52   :  { %v4154_v51 = vmul.f32 %v6739_v49, %v4153_v1  ;;  %v9692_v42 = vpop.f32.mrf.mxu1 }
 0xa53   :  { %v5821_v60 = vpop.f32.mrf.mxu0  ;;  %v5759_v55 = vadd.f32 %v5758_v32, %v5729_v23 }
 0xa54   :  { %v4155_v63 = vadd.f32 %v6739_v49, %v4154_v51 }
 0xa55   :  { %v6741_v50 = vpop.eup %6740 }
 0xa56   :  { %v4159_v20 = vsel %vm4158_vm12, %v6739_v49, %v4155_v63  ;;  %v4197_v19 = vmul.f32 %v6741_v50, %v4118_v53  ;;  %vm4202_vm8 = vweird.f32 %v6741_v50  ;;  %v3235_v49 = vld [vmem:[%s9873_s0 + $0x48] sm:$0xff]  ;;  %v3265_v63 = vadd.f32 %v3261_v56, %v9585_v8 }
 0xa57   :  { %v4164_v6 = vsel %vm4161_vm9, %v4163_v18, %v4159_v20  ;;  %vm4203_vm14 = vmor %vm4201_vm13, %vm4202_vm8  ;;  %v3239_v14 = vadd.f32 %v3235_v49, %v9585_v8 }
 0xa58   :  { %6478 = vperm.xlu0 %6650, %v4164_v6   ;;  %6483 = vperm.xlu2 %6651, %v4179_v29   ;;  %v4198_v36 = vsub.f32 1.0, %v4197_v19 }
 0xa59   :  { %v9696_v61 = vpop.f32.mrf.mxu3  ;;  %v9710_v48 = vpop.f32.mrf.mxu2 }
 0xa5a   :  { %v4199_v13 = vmul.f32 %v6741_v50, %v4198_v36  ;;  %v9698_v3 = vpop.f32.mrf.mxu1 }
 0xa5b   :  { %v9708_v25 = vpop.f32.mrf.mxu0 }
 0xa5c   :  { %v4200_v52 = vadd.f32 %v6741_v50, %v4199_v13 }
 0xa5e   :  { %v4204_v5 = vsel %vm4203_vm14, %v6741_v50, %v4200_v52  ;;  %v3237_v52 = vld [vmem:[%s9873_s0 + $0x58] sm:$0xff] }
 0xa5f   :  { %v4209_v37 = vsel %vm4206_vm15, %v4208_v11, %v4204_v5  ;;  %v5789_v5 = vadd.f32 %v5788_v57, %v5759_v55  ;;  %v3241_v41 = vadd.f32 %v3237_v52, %v9503_v12 }
 0xa60   :  { %6509 = vperm.xlu0 %6650, %v4209_v37   ;;  %6530 = vperm.xlu2 %6651, %v4224_v46   ;;  %v5733_v37 = vadd.f32 %v5732_v26, %v5697_v47  ;;  %v3240_v46 = vadd.f32 %v3236_v10, %v9501_v59 }
 0xa61   :  { %v9718_v53 = vpop.f32.mrf.mxu3  ;;  %v9730_v0 = vpop.f32.mrf.mxu2  ;;  %v5822_v32 = vadd.f32 %v5821_v60, %v5789_v5 }
 0xa62   :  { %v9722_v4 = vpop.f32.mrf.mxu1 }
 0xa63   :  { %v5948_v51 = vpop.f32.mrf.mxu0  ;;  %v5849_v57 = vadd.f32 %v9692_v42, %v5822_v32  ;;  %v6621_v42 = vld [vmem:[%s9873_s0 + $0xd0] sm:$0xff] }
 0xa64   :  { %v3262_v32 = vld [vmem:[%s9873_s0 + $0x70] sm:$0xff] }
 0xa69   :  { %v9734_v21 = vpop.f32.mrf.mxu3  ;;  %v9740_v19 = vpop.f32.mrf.mxu2 }
 0xa6a   :  { %v9736_v45 = vpop.f32.mrf.mxu1 }
 0xa6b   :  { %v9738_v20 = vpop.f32.mrf.mxu0 }
 0xa71   :  { %v9742_v6 = vpop.f32.mrf.mxu3  ;;  %v6150_v15 = vpop.f32.mrf.mxu2 }
 0xa72   :  { %v6120_v29 = vpop.f32.mrf.mxu1 }
 0xa73   :  { %v6081_v36 = vpop.f32.mrf.mxu0 }
 0xa74   :  { %v6121_v9 = vadd.f32 %v6120_v29, %v6081_v36  ;;  %v6747_v36 = vld [vmem:[%s9873_s0 + $0x90] sm:$0xff] }
 0xa79   :  { %v6180_v38 = vpop.f32.mrf.mxu3 }
 0xa7a   :  { %v3198_v62 = vpop.permute.xlu1 %3197 }
 0xa7b   :  { %v3202_v31 = vmul.f32 %v3198_v62, %v3188_v40  ;;  %v3203_v33 = vmul.f32 %v3198_v62, %v3189_v34  ;;  %v6151_v40 = vadd.f32 %v6150_v15, %v6121_v9 }
 0xa7d   :  { %3206 = vst [vmem:[#allocation2 + $0x10] sm:$0xff] %v3202_v31  ;;  %v6181_v26 = vadd.f32 %v6180_v38, %v6151_v40 }
 0xa7e   :  { %3207 = vst [vmem:[#allocation2 + $0x18] sm:$0xff] %v3203_v33  ;;  %v5764_v33 = vadd.f32 %v9688_v44, %v5733_v37 }
 0xa82   :  { %v3245_v1 = vpop.permute.xlu1 %3244 }
 0xa83   :  { %v3252_v16 = vmul.f32 %v3245_v1, %v3238_v35  ;;  %v3253_v30 = vmul.f32 %v3245_v1, %v3239_v14  ;;  %v5795_v35 = vadd.f32 %v9690_v39, %v5764_v33 }
 0xa85   :  { %3256 = vst [vmem:[#allocation2 + $0x40] sm:$0xff] %v3252_v16  ;;  %v10156_v16 = vld [vmem:[#allocation98_spill] sm:$0xff]  ;;  %v5826_v17 = vadd.f32 %v9708_v25, %v5795_v35 }
 0xa86   :  { %3257 = vst [vmem:[#allocation2 + $0x48] sm:$0xff] %v3253_v30  ;;  %v6437_v30 = vmul.f32 %v5849_v57, %v10156_v16  ;;  %v3209_v25 = vld [vmem:[%s9873_s0 + $0x28] sm:$0xff] }
 0xa87   :  { %v3213_v55 = vadd.f32 %v3209_v25, %v9585_v8  ;;  %v6627_v8 = vld [vmem:[%s9873_s0 + $0x100] sm:$0xff] }
 0xa8a   :  { %v3271_v58 = vpop.permute.xlu1 %3270 }
 0xa8b   :  { %v3278_v50 = vmul.f32 %v3271_v58, %v3264_v27  ;;  %v3279_v18 = vmul.f32 %v3271_v58, %v3265_v63  ;;  %v5919_v27 = vadd.f32 %v9696_v61, %v9694_v22  ;;  %v3208_v58 = vld [vmem:[%s9873_s0 + $0x20] sm:$0xff]  ;;  %v5853_v22 = vadd.f32 %v9698_v3, %v5826_v17 }
 0xa8d   :  { %3282 = vst [vmem:[#allocation2 + $0x60] sm:$0xff] %v3278_v50  ;;  %v5949_v50 = vadd.f32 %v5948_v51, %v5919_v27 }
 0xa8e   :  { %3283 = vst [vmem:[#allocation2 + $0x68] sm:$0xff] %v3279_v18 }
 0xa8f   :  { %v5979_v9 = vadd.f32 %v9722_v4, %v5949_v50  ;;  %v6619_v4 = vld [vmem:[%s9873_s0 + $0xc0] sm:$0xff] }
 0xa92   :  { %v9753_v7 = vpop.permute.xlu1 %6456 }
 0xa9a   :  { %v6124_v13 = vpop.f32.mrf.mxu1  ;;  %v9767_v63 = vpop.permute.xlu1 %6504 }
 0xaa2   :  { %v6089_v11 = vpop.f32.mrf.mxu0  ;;  %v6155_v43 = vpop.f32.mrf.mxu2 }
 0xaa3   :  { %v3250_v2 = vpop.permute.xlu2 %3249  ;;  %v6240_v31 = vpop.f32.mrf.mxu1  ;;  %v6125_v47 = vadd.f32 %v6124_v13, %v6089_v11  ;;  %v3212_v13 = vadd.f32 %v3208_v58, %v9583_v54  ;;  %v5923_v54 = vadd.f32 %v9718_v53, %v9710_v48  ;;  %v3263_v48 = vld [vmem:[%s9873_s0 + $0x78] sm:$0xff]  ;;  %v6012_v53 = vadd.f32 %v9730_v0, %v5979_v9  ;;  %v6625_v0 = vld [vmem:[%s9873_s0 + $0xf0] sm:$0xff] }
 0xaa4   :  { %v6186_v24 = vpop.f32.mrf.mxu3  ;;  %v3254_v34 = vmul.f32 %v3250_v2, %v3240_v46  ;;  %v3255_v62 = vmul.f32 %v3250_v2, %v3241_v41  ;;  %v10157_v46 = vld [vmem:[#allocation99_spill] sm:$0xff] }
 0xaa5   :  { %v6156_v56 = vadd.f32 %v6155_v43, %v6125_v47  ;;  %v6439_v41 = vmul.f32 %v5853_v22, %v10157_v46  ;;  %v5954_v40 = vadd.f32 %v9738_v20, %v5923_v54  ;;  %v6039_v58 = vadd.f32 %v9734_v21, %v6012_v53  ;;  %v6622_v21 = vld [vmem:[%s9873_s0 + $0xd8] sm:$0xff] }
 0xaa6   :  { %3258 = vst [vmem:[#allocation2 + $0x50] sm:$0xff] %v3254_v34  ;;  %v9809_v34 = vpop.permute.xlu1 %6535 }
 0xaa7   :  { %3259 = vst [vmem:[#allocation2 + $0x58] sm:$0xff] %v3255_v62  ;;  %v6187_v61 = vadd.f32 %v6186_v24, %v6156_v56  ;;  %v5985_v17 = vadd.f32 %v9736_v45, %v5954_v40  ;;  %v6620_v40 = vld [vmem:[%s9873_s0 + $0xc8] sm:$0xff] }
 0xaa9   :  { %v6016_v22 = vadd.f32 %v9740_v19, %v5985_v17 }
 0xaaa   :  { %v6213_v28 = vpop.f32.mrf.mxu0  ;;  %v6271_v49 = vpop.f32.mrf.mxu2 }
 0xaab   :  { %v6214_v14 = vadd.f32 %v6213_v28, %v6181_v26  ;;  %v9758_v60 = vpop.permute.xlu2 %6451  ;;  %v6244_v18 = vpop.f32.mrf.mxu1  ;;  %v3266_v28 = vadd.f32 %v3262_v32, %v9501_v59  ;;  %v6043_v19 = vadd.f32 %v9742_v6, %v6016_v22 }
 0xaac   :  { %v6310_v1 = vpop.f32.mrf.mxu3 }
 0xaad   :  { %v6241_v44 = vadd.f32 %v6240_v31, %v6214_v14  ;;  %v6311_v62 = vadd.f32 %v6310_v1, %v6271_v49  ;;  %v6748_v31 = vld [vmem:[%s9873_s0 + $0xa0] sm:$0xff]  ;;  %v3267_v49 = vadd.f32 %v3263_v48, %v9503_v12 }
 0xaaf   :  { %v9769_v39 = vmul.f32 %v6437_v30, %v6241_v44 }
 0xab1   :  { %v6498_v29 = vadd.f32 %v6621_v42, %v9769_v39  ;;  %v6445_v15 = vadd.f32 %v6747_v36, %v9769_v39  ;;  %v6524_v27 = vadd.f32 %v6625_v0, %v9769_v39 }
 0xab2   :  { %v6217_v23 = vpop.f32.mrf.mxu0  ;;  %v6279_v38 = vpop.f32.mrf.mxu2 }
 0xab3   :  { %v6512_v51 = vmul.f32 %v9767_v63, %v6498_v29  ;;  %v6459_v10 = vmul.f32 %v9758_v60, %v6445_v15  ;;  %v6218_v3 = vadd.f32 %v6217_v23, %v6187_v61  ;;  %v3219_v52 = vpop.permute.xlu0 %3218  ;;  %v9788_v5 = vpop.permute.xlu2 %6483  ;;  %v10158_v61 = vld [vmem:[#allocation100_spill] sm:$0xff] }
 0xab4   :  { %v3226_v11 = vmul.f32 %v3219_v52, %v3212_v13  ;;  %v3227_v43 = vmul.f32 %v3219_v52, %v3213_v55  ;;  %v6314_v37 = vpop.f32.mrf.mxu3  ;;  %v6370_v47 = vpop.f32.mrf.mxu1  ;;  %v6438_v45 = vmul.f32 %v6039_v58, %v10158_v61  ;;  %v6626_v15 = vld [vmem:[%s9873_s0 + $0xf8] sm:$0xff] }
 0xab5   :  { %6516 = vst [vmem:[#allocation2 + $0xc0] sm:$0xff] %v6512_v51  ;;  %v6245_v2 = vadd.f32 %v6244_v18, %v6218_v3  ;;  %v6315_v29 = vadd.f32 %v6314_v37, %v6279_v38  ;;  %v6749_v38 = vld [vmem:[%s9873_s0 + $0x98] sm:$0xff] }
 0xab6   :  { %6464 = vst [vmem:[#allocation2 + $0x80] sm:$0xff] %v6459_v10  ;;  %v6618_v37 = vld [vmem:[%s9873_s0 + $0xb8] sm:$0xff] }
 0xab7   :  { %v9799_v24 = vmul.f32 %v6439_v41, %v6245_v2  ;;  %3230 = vst [vmem:[#allocation2 + $0x20] sm:$0xff] %v3226_v11 }
 0xab8   :  { %3231 = vst [vmem:[#allocation2 + $0x28] sm:$0xff] %v3227_v43  ;;  %v6617_v43 = vld [vmem:[%s9873_s0 + $0xb0] sm:$0xff] }
 0xab9   :  { %v6447_v33 = vadd.f32 %v6748_v31, %v9799_v24  ;;  %v6526_v57 = vadd.f32 %v6627_v8, %v9799_v24  ;;  %v6474_v26 = vadd.f32 %v6619_v4, %v9799_v24  ;;  %v10159_v8 = vld [vmem:[#allocation101_spill] sm:$0xff]  ;;  %v6472_v48 = vadd.f32 %v6617_v43, %v9769_v39 }
 0xaba   :  { %v6340_v20 = vpop.f32.mrf.mxu0  ;;  %v6403_v56 = vpop.f32.mrf.mxu2  ;;  %v6440_v4 = vmul.f32 %v6043_v19, %v10159_v8 }
 0xabb   :  { %v6461_v35 = vmul.f32 %v9753_v7, %v6447_v33  ;;  %v6540_v14 = vmul.f32 %v9809_v34, %v6526_v57  ;;  %v6488_v1 = vmul.f32 %v9788_v5, %v6474_v26  ;;  %v6341_v16 = vadd.f32 %v6340_v20, %v6311_v62  ;;  %v3276_v30 = vpop.permute.xlu0 %3275  ;;  %v6531_v42 = vpop.permute.xlu2 %6530  ;;  %v6750_v57 = vld [vmem:[%s9873_s0 + $0xa8] sm:$0xff] }
 0xabc   :  { %v3280_v44 = vmul.f32 %v3276_v30, %v3266_v28  ;;  %v3281_v12 = vmul.f32 %v3276_v30, %v3267_v49  ;;  %v6538_v25 = vmul.f32 %v6531_v42, %v6524_v27  ;;  %v6430_v50 = vpop.f32.mrf.mxu3  ;;  %v6376_v51 = vpop.f32.mrf.mxu1  ;;  %v6624_v20 = vld [vmem:[%s9873_s0 + $0xe8] sm:$0xff] }
 0xabd   :  { %6466 = vst [vmem:[#allocation2 + $0x90] sm:$0xff] %v6461_v35  ;;  %v6371_v59 = vadd.f32 %v6370_v47, %v6341_v16  ;;  %v6623_v47 = vld [vmem:[%s9873_s0 + $0xe0] sm:$0xff] }
 0xabe   :  { %6544 = vst [vmem:[#allocation2 + $0xf0] sm:$0xff] %v6540_v14  ;;  %v6500_v14 = vadd.f32 %v6623_v47, %v9799_v24 }
 0xabf   :  { %6492 = vst [vmem:[#allocation2 + $0xb0] sm:$0xff] %v6488_v1  ;;  %v6404_v18 = vadd.f32 %v6403_v56, %v6371_v59 }
 0xac0   :  { %3284 = vst [vmem:[#allocation2 + $0x70] sm:$0xff] %v3280_v44 }
 0xac1   :  { %3285 = vst [vmem:[#allocation2 + $0x78] sm:$0xff] %v3281_v12  ;;  %v6431_v36 = vadd.f32 %v6430_v50, %v6404_v18 }
 0xac2   :  { %6542 = vst [vmem:[#allocation2 + $0xe0] sm:$0xff] %v6538_v25  ;;  %v6345_v23 = vpop.f32.mrf.mxu0  ;;  %v6407_v11 = vpop.f32.mrf.mxu2 }
 0xac3   :  { %v6442_v13 = vmul.f32 %v6438_v45, %v6431_v36  ;;  %v6346_v55 = vadd.f32 %v6345_v23, %v6315_v29 }
 0xac4   :  { %v6434_v54 = vpop.f32.mrf.mxu3 }
 0xac5   :  { %v6446_v10 = vadd.f32 %v6749_v38, %v6442_v13  ;;  %v6499_v3 = vadd.f32 %v6622_v21, %v6442_v13  ;;  %v6525_v52 = vadd.f32 %v6626_v15, %v6442_v13  ;;  %v6377_v9 = vadd.f32 %v6376_v51, %v6346_v55 }
 0xac6   :  { %v6473_v53 = vadd.f32 %v6618_v37, %v6442_v13 }
 0xac7   :  { %v6460_v6 = vmul.f32 %v9758_v60, %v6446_v10  ;;  %v6513_v46 = vmul.f32 %v9767_v63, %v6499_v3  ;;  %v6539_v41 = vmul.f32 %v6531_v42, %v6525_v52  ;;  %v6408_v2 = vadd.f32 %v6407_v11, %v6377_v9  ;;  %v6628_v60 = vld [vmem:[%s9873_s0 + $0x108] sm:$0xff]  ;;  %s6786_s0 = smov 256  }
 0xac9   :  { %6465 = vst [vmem:[#allocation2 + $0x88] sm:$0xff] %v6460_v6  ;;  %v6435_v32 = vadd.f32 %v6434_v54, %v6408_v2 }
 0xaca   :  { %6517 = vst [vmem:[#allocation2 + $0xc8] sm:$0xff] %v6513_v46  ;;  %v6479_v63 = vpop.permute.xlu0 %6478 }
 0xacb   :  { %6543 = vst [vmem:[#allocation2 + $0xe8] sm:$0xff] %v6539_v41  ;;  %v6444_v62 = vmul.f32 %v6440_v4, %v6435_v32  ;;  %v6486_v31 = vmul.f32 %v6479_v63, %v6472_v48  ;;  %v6487_v33 = vmul.f32 %v6479_v63, %v6473_v53 }
 0xacd   :  { %v6448_v39 = vadd.f32 %v6750_v57, %v6444_v62  ;;  %v6475_v26 = vadd.f32 %v6620_v40, %v6444_v62  ;;  %v6527_v0 = vadd.f32 %v6628_v60, %v6444_v62  ;;  %6490 = vst [vmem:[#allocation2 + $0xa0] sm:$0xff] %v6486_v31  ;;  %v6501_v1 = vadd.f32 %v6624_v20, %v6444_v62 }
 0xace   :  { %6491 = vst [vmem:[#allocation2 + $0xa8] sm:$0xff] %v6487_v33 }
 0xacf   :  { %v6462_v28 = vmul.f32 %v9753_v7, %v6448_v39  ;;  %v6489_v49 = vmul.f32 %v9788_v5, %v6475_v26  ;;  %v6541_v35 = vmul.f32 %v9809_v34, %v6527_v0 }
 0xad1   :  { %6467 = vst [vmem:[#allocation2 + $0x98] sm:$0xff] %v6462_v28 }
 0xad2   :  { %6493 = vst [vmem:[#allocation2 + $0xb8] sm:$0xff] %v6489_v49  ;;  %v6510_v16 = vpop.permute.xlu0 %6509 }
 0xad3   :  { %6545 = vst [vmem:[#allocation2 + $0xf8] sm:$0xff] %v6541_v35  ;;  %v6514_v30 = vmul.f32 %v6510_v16, %v6500_v14  ;;  %v6515_v17 = vmul.f32 %v6510_v16, %v6501_v1 }
 0xad5   :  { %6518 = vst [vmem:[#allocation2 + $0xd0] sm:$0xff] %v6514_v30 }
 0xad6   :  { %6519 = vst [vmem:[#allocation2 + $0xd8] sm:$0xff] %v6515_v17 }
 0xad7   :  { %6558 = dma.vmem_to_hbm [thread:$0]  %s6551_s15, 4096, %s6553_s13, [#allocation3], %s6786_s0, %s6786_s0, %s6782_s27  }
 0xad8   :  { %6775 = dma.done.wait [#allocation3], 4096  }
 0xad9   :  { %6776 = vsyncadd [#allocation3], 4294963200 }
 0xada   :  { %6563 = vsyncpa [#allocation3], 1 }

</bundles_post_ra>
